<compile_context>
chip_gen: v7x
topology: tpu7x:2x2x1
jax: 0.10.0
libtpu: 0.0.40
codegen_flags: <defaults>
</compile_context>

<pallas_src>
import jax
import jax.numpy as jnp
import numpy as np
from jax.experimental import pallas as pl
from jax.experimental.pallas import tpu as pltpu


def _round_up(a, b):
    return -(-a // b) * b


def _linear_kernel(x_ref, w_ref, b_ref, o_ref):
    # x_ref: (tn, k)   streamed row tile of (possibly lane-packed) inputs
    # w_ref: (k, m)    resident weight, already transposed to canonical (K, N)
    # b_ref: (1, m)    resident f32 bias row
    # o_ref: (tn, m)   output tile (m is a multiple of 128 when packing applies)
    acc = jnp.dot(x_ref[...], w_ref[...],
                  preferred_element_type=jnp.float32,
                  precision=jax.lax.Precision.HIGHEST)
    o_ref[...] = (acc + b_ref[...]).astype(o_ref.dtype)


def _vmem_capacity_bytes():
    """Physical VMEM of the current chip; conservative v7x default if unknown."""
    try:
        return int(pltpu.get_tpu_info().vmem_capacity_bytes)
    except Exception:
        return 64 << 20


def _sublane_multiple(itemsize):
    # dtype-aware sublane floor: 8 rows (f32), 16 (bf16/f16), 32 (int8/fp8)
    return 8 * max(1, 4 // max(1, itemsize))


def _pick_row_tile(n_rows, k, m, itemsize, vmem_cap):
    """Row tile for the streamed N axis of the (packed) [n_rows,k] @ [k,m] GEMM."""
    sub = _sublane_multiple(itemsize)
    per_row = 2 * (k + m) * itemsize              # double-buffered x + out rows
    fixed = 2 * k * m * itemsize + 2 * m * 4      # resident weight (dbl-buffered) + f32 bias
    budget = max((vmem_cap // 2) - fixed, per_row * sub)
    tn_mem = max(sub, (budget // per_row) // sub * sub)
    cap = min(tn_mem, 2048)

    n_up = _round_up(n_rows, sub)
    if n_up <= cap:
        if n_up <= 1024:
            return n_rows                          # single block == full array dims
        return _round_up(-(-n_rows // 2), sub)     # 2 steps: feeds both v7x TensorCores
    return cap


def _vmem_limit_bytes(tn, k, m, itemsize, vmem_cap):
    fp = (2 * tn * (k + m) * itemsize  # double-buffered streamed x / out tiles
          + 2 * k * m * itemsize       # resident weight (pipeline double-buffers it)
          + 2 * m * 4)                 # resident f32 bias
    want = fp + fp // 2 + (2 << 20)    # 1.5x + compiler-scratch headroom
    lo = 32 << 20                      # above v5e's 16 MiB scoped default
    hi = max(lo, vmem_cap - (16 << 20))  # chip-aware: ~48 MiB on v7x, ~112 MiB on v5e/v6e
    return int(min(max(lo, want), hi))


def last_unary_block(x, weight, bias, *, tile_n=None):
    """y = x @ weight.T + bias  (exactly nn.Linear forward).

    x:      [N, in_dim]
    weight: [out_dim, in_dim]   (PyTorch convention)
    bias:   [out_dim]
    """
    n, in_dim = x.shape
    out_dim = weight.shape[0]
    itemsize = jnp.dtype(x.dtype).itemsize
    vmem_cap = _vmem_capacity_bytes()

    # Lane-pack factor for lane-dense 128-wide output stores.
    p = 1
    if out_dim < 128 and 128 % out_dim == 0:
        cand = 128 // out_dim
        packed_w_bytes = (cand * in_dim) * (cand * out_dim) * itemsize
        if n % cand == 0 and packed_w_bytes <= (4 << 20):
            p = cand

    n_rows = n // p
    k = p * in_dim
    m = p * out_dim

    wt = weight.T.astype(x.dtype)                        # one-time 8 KB HBM transpose
    if p > 1:
        w_in = jnp.kron(jnp.eye(p, dtype=wt.dtype), wt)  # (k, m) block-diagonal weight
        b_in = jnp.tile(bias, p).reshape(1, m).astype(jnp.float32)
        x_in = x.reshape(n_rows, k)                      # free row-major reshape
    else:
        w_in = wt
        b_in = bias.reshape(1, m).astype(jnp.float32)
        x_in = x

    sub = _sublane_multiple(itemsize)
    if tile_n is not None:
        tn = max(1, int(tile_n) // p)
        tn = n_rows if tn >= n_rows else max(sub, (tn // sub) * sub)
    else:
        tn = _pick_row_tile(n_rows, k, m, itemsize, vmem_cap)

    grid = (pl.cdiv(n_rows, tn),)   # ragged last block: OOB output rows never written

    # TODO(synk): for large in_dim*out_dim (>~16 MiB resident on v7x, >~32 MiB on
    # v5e/v6e) switch to K/N tiling with an f32 VMEM accumulator instead of a
    # resident weight; also single-buffer the resident weight/bias
    # (pipeline_mode=pl.Buffered(1)) once that VMEM becomes load-bearing.
    y = pl.pallas_call(
        _linear_kernel,
        out_shape=jax.ShapeDtypeStruct((n_rows, m), x.dtype),
        grid_spec=pltpu.PrefetchScalarGridSpec(
            num_scalar_prefetch=0,
            grid=grid,
            in_specs=[
                pl.BlockSpec((tn, k), lambda i: (i, 0)),   # streamed input rows
                pl.BlockSpec((k, m), lambda i: (0, 0)),    # resident weight
                pl.BlockSpec((1, m), lambda i: (0, 0)),    # resident f32 bias
            ],
            out_specs=pl.BlockSpec((tn, m), lambda i: (i, 0)),
        ),
        compiler_params=pltpu.CompilerParams(
            dimension_semantics=("parallel",),
            vmem_limit_bytes=_vmem_limit_bytes(tn, k, m, itemsize, vmem_cap),
        ),
    )(x_in, w_in, b_in)

    return y.reshape(n, out_dim)    # free row-major reshape back to [N, out_dim]


def init_last_unary_params(key, in_dim, out_dim, dtype=jnp.float32):
    """Deterministic init mirroring nn.Linear defaults (kaiming_uniform-ish)."""
    kw, kb = jax.random.split(key)
    bound = (1.0 / in_dim) ** 0.5
    weight = jax.random.uniform(kw, (out_dim, in_dim), dtype, -bound, bound)
    bias = jax.random.uniform(kb, (out_dim,), dtype, -bound, bound)
    return weight, bias


if __name__ == "__main__":
    key = jax.random.PRNGKey(0)
    k_x, k_x2, k_p = jax.random.split(key, 3)

    in_dim, out_dim = 32, 64
    weight, bias = init_last_unary_params(k_p, in_dim, out_dim)

    def ref(xv):
        return (np.asarray(xv, np.float64) @ np.asarray(weight, np.float64).T
                + np.asarray(bias, np.float64))

    # Case 1: lane-packed (p=2 -> 128-lane dense stores), single-step grid.
    n_points = 1000
    x = jax.random.normal(k_x, (n_points, in_dim), jnp.float32)
    y = jax.block_until_ready(last_unary_block(x, weight, bias))
    assert y.shape == (n_points, out_dim)
    np.testing.assert_allclose(np.asarray(y, np.float64), ref(x), rtol=1e-3, atol=1e-3)

    # Case 2: explicit small tile -> multi-step grid with a ragged last block.
    y2 = jax.block_until_ready(last_unary_block(x, weight, bias, tile_n=256))
    np.testing.assert_allclose(np.asarray(y2, np.float64), ref(x), rtol=1e-3, atol=1e-3)

    # Case 3: odd N (packing disabled) -> plain [N, out_dim] path, full-dim block.
    x_small = jax.random.normal(k_x2, (45, in_dim), jnp.float32)
    y3 = jax.block_until_ready(last_unary_block(x_small, weight, bias))
    np.testing.assert_allclose(np.asarray(y3, np.float64), ref(x_small), rtol=1e-3, atol=1e-3)

    print("KERNEL_OK")
</pallas_src>

<mosaic_0001>
module attributes {stable_mosaic.version = 11 : i64} {
  func.func @_linear_kernel(%arg0: i32, %arg1: memref<500x64xf32, #tpu.memory_space<vmem>>, %arg2: memref<64x128xf32, #tpu.memory_space<vmem>>, %arg3: memref<1x128xf32, #tpu.memory_space<vmem>>, %arg4: memref<500x128xf32, #tpu.memory_space<vmem>>) attributes {dimension_semantics = [#tpu.dimension_semantics<parallel>], iteration_bounds = array<i64: 1>, scalar_prefetch = 0 : i64, scratch_operands = 0 : i64, tpu.core_type = #tpu.core_type<tc>, window_params = [{transform_indices = @transform_0, window_bounds = array<i64: 500, 64>}, {pipeline_mode = #tpu.pipeline_mode<synchronous>, transform_indices = @transform_1, window_bounds = array<i64: 64, 128>}, {pipeline_mode = #tpu.pipeline_mode<synchronous>, transform_indices = @transform_2, window_bounds = array<i64: 1, 128>}, {transform_indices = @transform_3, window_bounds = array<i64: 500, 128>}]} {
    %c0 = arith.constant 0 : index
    %c0_0 = arith.constant 0 : index
    %0 = vector.load %arg1[%c0, %c0_0] : memref<500x64xf32, #tpu.memory_space<vmem>>, vector<500x64xf32>
    %c0_1 = arith.constant 0 : index
    %c0_2 = arith.constant 0 : index
    %1 = vector.load %arg2[%c0_1, %c0_2] : memref<64x128xf32, #tpu.memory_space<vmem>>, vector<64x128xf32>
    %cst = arith.constant dense<0.000000e+00> : vector<500x128xf32>
    %2 = tpu.matmul %0, %1, %cst {dimension_numbers = #tpu.dot_dimension_numbers<[1], [0], [0], [1], [0, 0, 1, 1], [], []>, precision = #tpu.contract_precision<fp32>} : vector<500x64xf32>, vector<64x128xf32>, vector<500x128xf32> -> vector<500x128xf32>
    %c0_3 = arith.constant 0 : index
    %c0_4 = arith.constant 0 : index
    %3 = vector.load %arg3[%c0_3, %c0_4] : memref<1x128xf32, #tpu.memory_space<vmem>>, vector<1x128xf32>
    %4 = vector.broadcast %3 : vector<1x128xf32> to vector<500x128xf32>
    %5 = arith.addf %2, %4 : vector<500x128xf32>
    %c0_5 = arith.constant 0 : index
    %c0_6 = arith.constant 0 : index
    %6 = vector.load %arg4[%c0_5, %c0_6] : memref<500x128xf32, #tpu.memory_space<vmem>>, vector<500x128xf32>
    tpu.vector_store %arg4[%c0_5, %c0_6], %5 {strides = array<i32>} : memref<500x128xf32, #tpu.memory_space<vmem>>, vector<500x128xf32>,
    return
  }
  func.func @transform_0(%arg0: i32) -> (i32, i32) {
    %c0_i32 = arith.constant 0 : i32
    %c0_i32_0 = arith.constant 0 : i32
    return %arg0, %c0_i32 : i32, i32
  }
  func.func @transform_1(%arg0: i32) -> (i32, i32) {
    %c0_i32 = arith.constant 0 : i32
    %c0_i32_0 = arith.constant 0 : i32
    %c0_i32_1 = arith.constant 0 : i32
    return %c0_i32, %c0_i32_0 : i32, i32
  }
  func.func @transform_2(%arg0: i32) -> (i32, i32) {
    %c0_i32 = arith.constant 0 : i32
    %c0_i32_0 = arith.constant 0 : i32
    %c0_i32_1 = arith.constant 0 : i32
    return %c0_i32, %c0_i32_0 : i32, i32
  }
  func.func @transform_3(%arg0: i32) -> (i32, i32) {
    %c0_i32 = arith.constant 0 : i32
    %c0_i32_0 = arith.constant 0 : i32
    return %arg0, %c0_i32 : i32, i32
  }
}

</mosaic_0001>

<bundles_post_ra>
// kernel: tpu_custom_call.1
= control target key start
LH: loop header
LB: loop body
LE: loop exit
PB: predicated region body
PF: predicated region fallthrough
CT: control target
= control target key end

     0   :  { %v7905_v3 = vmov 0.0|0.0   ;;  %vm5955_vm0 = vmmov 0   ;;  %v7907_v13 = vmov 0.0   ;;  %vm93_vm1 = vcmask 523264   ;;  %s7901_s0 = inlined_call_operand.vmem [shape: f32[500,64], index: 0, kind: input, shape index: {}]   ;;  %s7902_s1 = inlined_call_operand.vmem [shape: f32[64,128], index: 1, kind: input, shape index: {}]   ;;  %s7903_s2 = inlined_call_operand.vmem [shape: f32[1,128], index: 2, kind: input, shape index: {}]   ;;  %s7904_s3 = inlined_call_operand.hbm [shape: f32[500,128], index: 3, kind: output, shape index: {}]  }
   0x1   :  { %v78_v0 = vld [vmem:[%s7902_s1] sm:$0xff]  ;;  %v79_v1 = vld [vmem:[%s7902_s1 + $0x8] sm:$0xff]  ;;  %v5989_v2 = vld [vmem:[%s7902_s1 + $0x10] sm:$0xff]  ;;  %5222 = vmatprep.subr.bf16.mxu1 %v7905_v3  ;;  %5258 = vmatprep.subr.bf16.mxu0 %v7905_v3 }
   0x2   :  { %v284_v4 = vand.u32 4294901760, %v78_v0  ;;  %v287_v5 = vand.u32 4294901760, %v79_v1  ;;  %v5996_v6 = vld [vmem:[%s7902_s1 + $0x18] sm:$0xff]  ;;  %v290_v7 = vand.u32 4294901760, %v5989_v2  ;;  %v6002_v8 = vld [vmem:[%s7902_s1 + $0x20] sm:$0xff]  ;;  %v6007_v9 = vld [vmem:[%s7902_s1 + $0x28] sm:$0xff]  ;;  %4008 = vmatprep.mubr.msk.f32.mxu1 %vm5955_vm0, %v7907_v13  ;;  %4623 = vmatprep.mubr.msk.f32.mxu0 %vm5955_vm0, %v7907_v13 }
   0x3   :  { %v293_v10 = vand.u32 4294901760, %v5996_v6  ;;  %v84_v11 = vld [vmem:[%s7902_s1 + $0x30] sm:$0xff]  ;;  %v85_v12 = vld [vmem:[%s7902_s1 + $0x38] sm:$0xff]  ;;  %v15_v17 = vld [vmem:[%s7901_s0] sm:$0xff]  ;;  %v296_v19 = vand.u32 4294901760, %v6002_v8  ;;  %v299_v20 = vand.u32 4294901760, %v6007_v9 }
   0x4   :  { %v6020_v14 = vpack.c.bf16 %v287_v5, %v284_v4  ;;  %v6022_v15 = vsub.f32 %v78_v0, %v284_v4  ;;  %v6024_v16 = vsub.f32 %v79_v1, %v287_v5  ;;  %v16_v18 = vld [vmem:[%s7901_s0 + $0x8] sm:$0xff]  ;;  %v302_v22 = vand.u32 4294901760, %v84_v11  ;;  %v17_v28 = vld [vmem:[%s7901_s0 + $0x10] sm:$0xff]  ;;  %v18_v29 = vld [vmem:[%s7901_s0 + $0x18] sm:$0xff] }
   0x5   :  { %v6040_v21 = vpack.c.bf16 %v293_v10, %v290_v7  ;;  %v305_v23 = vand.u32 4294901760, %v85_v12  ;;  %v95_v24 = vsel %vm93_vm1, %v15_v17, 0  ;;  %v98_v27 = vsel %vm93_vm1, %v16_v18, 0  ;;  %v19_v40 = vld [vmem:[%s7901_s0 + $0x20] sm:$0xff]  ;;  %v20_v48 = vld [vmem:[%s7901_s0 + $0x28] sm:$0xff] }
   0x6   :  { %5224 = vmatpush3.bf16.msra.mxu1 %v6020_v14  ;;  %5260 = vmatpush3.bf16.msra.mxu0 %v6020_v14  ;;  %v989_v25 = vand.u32 4294901760, %v6022_v15  ;;  %v996_v26 = vand.u32 4294901760, %v6024_v16  ;;  %v6054_v30 = vsub.f32 %v84_v11, %v302_v22  ;;  %v6058_v32 = vand.u32 4294901760, %v95_v24 }
   0x7   :  { %5225 = vmatprep.subr.bf16.mxu1 %v7905_v3  ;;  %5261 = vmatprep.subr.bf16.mxu0 %v7905_v3  ;;  %v6056_v31 = vsub.f32 %v85_v12, %v305_v23  ;;  %v6064_v33 = vpack.c.bf16 %v299_v20, %v296_v19  ;;  %v6067_v35 = vand.u32 4294901760, %v98_v27  ;;  %v101_v38 = vsel %vm93_vm1, %v17_v28, 0 }
   0x8   :  { %v990_v34 = vsub.f32 %v6022_v15, %v989_v25  ;;  %v6072_v36 = vsub.f32 %v95_v24, %v6058_v32  ;;  %v997_v37 = vsub.f32 %v6024_v16, %v996_v26  ;;  %v104_v39 = vsel %vm93_vm1, %v18_v29, 0 }
   0x9   :  { %v6083_v41 = vsub.f32 %v98_v27, %v6067_v35  ;;  %v6085_v42 = vand.u32 4294901760, %v101_v38  ;;  %v6092_v46 = vand.u32 4294901760, %v104_v39  ;;  %v107_v47 = vsel %vm93_vm1, %v19_v40, 0 }
   0xa   :  { %5227 = vmatpush3.bf16.msra.mxu1 %v6040_v21  ;;  %5263 = vmatpush3.bf16.msra.mxu0 %v6040_v21  ;;  %8031 = vst [vmem:[#allocation5_spill] sm:$0xff] %v6072_v36  ;;  %v358_v43 = vand.u32 4294901760, %v6072_v36  ;;  %v6100_v49 = vpack.c.bf16 %v305_v23, %v302_v22  ;;  %v991_v51 = vand.u32 4294901760, %v990_v34  ;;  %v998_v52 = vand.u32 4294901760, %v997_v37 }
   0xb   :  { %5228 = vmatprep.subr.bf16.mxu1 %v7905_v3  ;;  %5264 = vmatprep.subr.bf16.mxu0 %v7905_v3  ;;  %8032 = vst [vmem:[#allocation6_spill] sm:$0xff] %v6083_v41  ;;  %v368_v44 = vand.u32 4294901760, %v6083_v41  ;;  %v6090_v45 = vsub.f32 %v101_v38, %v6085_v42 }
   0xc   :  { %v359_v50 = vsub.f32 %v6072_v36, %v358_v43 }
   0xd   :  { %8033 = vst [vmem:[#allocation7_spill] sm:$0xff] %v6090_v45 }
   0xe   :  { %5230 = vmatpush3.bf16.msra.mxu1 %v6064_v33  ;;  %5266 = vmatpush3.bf16.msra.mxu0 %v6064_v33 }
   0xf   :  { %5231 = vmatprep.subr.bf16.mxu1 %v7905_v3  ;;  %5267 = vmatprep.subr.bf16.mxu0 %v7905_v3 }
  0x10   :  { %8 = vsyncpa [#allocation3], 0  ;;  %v6105_v53 = vand.u32 4294901760, %v107_v47  ;;  %v110_v54 = vsel %vm93_vm1, %v20_v48, 0  ;;  %v360_v55 = vand.u32 4294901760, %v359_v50  ;;  %v369_v56 = vsub.f32 %v6083_v41, %v368_v44  ;;  %v21_v60 = vld [vmem:[%s7901_s0 + $0x30] sm:$0xff] }
  0x11   :  { %v378_v57 = vand.u32 4294901760, %v6090_v45  ;;  %v6111_v58 = vsub.f32 %v104_v39, %v6092_v46  ;;  %v5235_v59 = vpack.c.bf16 %v998_v52, %v991_v51  ;;  %v5271_v61 = vpack.c.bf16 %v996_v26, %v989_v25  ;;  %v22_v11 = vld [vmem:[%s7901_s0 + $0x38] sm:$0xff]  ;;  %v23_v25 = vld [vmem:[%s7901_s0 + $0x40] sm:$0xff]  ;;  %v25_v51 = vld [vmem:[%s7901_s0 + $0x50] sm:$0xff] }
  0x12   :  { %5233 = vmatpush3.bf16.msra.mxu1 %v6100_v49  ;;  %5269 = vmatpush3.bf16.msra.mxu0 %v6100_v49  ;;  %v6121_v62 = vsub.f32 %v107_v47, %v6105_v53  ;;  %v6123_v63 = vand.u32 4294901760, %v110_v54  ;;  %v370_v0 = vand.u32 4294901760, %v369_v56  ;;  %v113_v5 = vsel %vm93_vm1, %v21_v60, 0 }
  0x13   :  { %8034 = vst [vmem:[#allocation8_spill] sm:$0xff] %v6111_v58  ;;  %5234 = vmatprep.subr.bf16.mxu1 %v7905_v3  ;;  %5270 = vmatprep.subr.bf16.mxu0 %v7905_v3  ;;  %v379_v1 = vsub.f32 %v6090_v45, %v378_v57  ;;  %v388_v4 = vand.u32 4294901760, %v6111_v58  ;;  %v6138_v17 = vand.u32 4294901760, %v113_v5  ;;  %v116_v24 = vsel %vm93_vm1, %v22_v11, 0 }
  0x14   :  { %8035 = vst [vmem:[#allocation9_spill] sm:$0xff] %v6121_v62  ;;  %v6136_v12 = vsub.f32 %v110_v54, %v6123_v63  ;;  %v398_v23 = vand.u32 4294901760, %v6121_v62  ;;  %v6155_v26 = vsub.f32 %v5989_v2, %v290_v7  ;;  %v6164_v29 = vsub.f32 %v5996_v6, %v293_v10  ;;  %v24_v6 = vld [vmem:[%s7901_s0 + $0x48] sm:$0xff] }
  0x15   :  { %4009 = vmatmul.mubr.f32.vlgmr.msra.gmra.mrb[0].mxu1 %v360_v55  ;;  %4624 = vmatmul.mubr.f32.vlgmr.msra.gmra.mrb[0].mxu0 %v358_v43  ;;  %v380_v18 = vand.u32 4294901760, %v379_v1  ;;  %v389_v22 = vsub.f32 %v6111_v58, %v388_v4  ;;  %v6159_v28 = vsub.f32 %v113_v5, %v6138_v17  ;;  %v6167_v38 = vand.u32 4294901760, %v116_v24 }
  0x16   :  { %5236 = vmatpush3.bf16.msra.mxu1 %v5235_v59  ;;  %4011 = vmatprep.mubr.msk.f32.mxu1 %vm5955_vm0, %v7907_v13  ;;  %8036 = vst [vmem:[#allocation10_spill] sm:$0xff] %v6136_v12  ;;  %v408_v27 = vand.u32 4294901760, %v6136_v12  ;;  %v399_v37 = vsub.f32 %v6121_v62, %v398_v23  ;;  %v119_v2 = vsel %vm93_vm1, %v23_v25, 0  ;;  %v1003_v39 = vand.u32 4294901760, %v6155_v26  ;;  %v46_v62 = vld [vmem:[%s7901_s0 + $0xf8] sm:$0xff] }
  0x17   :  { %4626 = vmatprep.mubr.msk.f32.mxu0 %vm5955_vm0, %v7907_v13  ;;  %5272 = vmatpush3.bf16.msra.mxu0 %v5271_v61  ;;  %8037 = vst [vmem:[#allocation11_spill] sm:$0xff] %v6159_v28  ;;  %v390_v34 = vand.u32 4294901760, %v389_v22  ;;  %v418_v10 = vand.u32 4294901760, %v6159_v28  ;;  %v6181_v43 = vsub.f32 %v116_v24, %v6167_v38  ;;  %v1010_v47 = vand.u32 4294901760, %v6164_v29 }
  0x18   :  { %5237 = vmatprep.subr.bf16.mxu1 %v7905_v3  ;;  %5273 = vmatprep.subr.bf16.mxu0 %v7905_v3  ;;  %v409_v7 = vsub.f32 %v6136_v12, %v408_v27  ;;  %v400_v40 = vand.u32 4294901760, %v399_v37  ;;  %v122_v48 = vsel %vm93_vm1, %v24_v6, 0  ;;  %v1004_v50 = vsub.f32 %v6155_v26, %v1003_v39  ;;  %v44_v12 = vld [vmem:[%s7901_s0 + $0xe8] sm:$0xff] }
  0x19   :  { %4012 = vmatmul.mubr.f32.gmra.mrb[2].mxu1 %v370_v0  ;;  %4627 = vmatmul.mubr.f32.gmra.mrb[2].mxu0 %v368_v44  ;;  %8038 = vst [vmem:[#allocation12_spill] sm:$0xff] %v6181_v43  ;;  %v6183_v44 = vand.u32 4294901760, %v119_v2  ;;  %v1011_v52 = vsub.f32 %v6164_v29, %v1010_v47  ;;  %v5274_v54 = vpack.c.bf16 %v1010_v47, %v1003_v39  ;;  %v428_v59 = vand.u32 4294901760, %v6181_v43  ;;  %v26_v0 = vld [vmem:[%s7901_s0 + $0x58] sm:$0xff] }
  0x1a   :  { %4014 = vmatprep.mubr.msk.f32.mxu1 %vm5955_vm0, %v7907_v13  ;;  %4629 = vmatprep.mubr.msk.f32.mxu0 %vm5955_vm0, %v7907_v13  ;;  %v410_v55 = vand.u32 4294901760, %v409_v7  ;;  %v419_v56 = vsub.f32 %v6159_v28, %v418_v10  ;;  %v6201_v61 = vand.u32 4294901760, %v122_v48 }
  0x1b   :  { %v6199_v60 = vsub.f32 %v119_v2, %v6183_v44  ;;  %v1012_v1 = vand.u32 4294901760, %v1011_v52  ;;  %5275 = vmatpush3.bf16.msra.mxu0 %v5274_v54  ;;  %v429_v22 = vsub.f32 %v6181_v43, %v428_v59  ;;  %v29_v54 = vld [vmem:[%s7901_s0 + $0x70] sm:$0xff] }
  0x1c   :  { %v420_v11 = vand.u32 4294901760, %v419_v56  ;;  %5276 = vmatprep.subr.bf16.mxu0 %v7905_v3  ;;  %v6216_v24 = vsub.f32 %v122_v48, %v6201_v61  ;;  %v6266_v56 = vsub.f32 %v6007_v9, %v299_v20  ;;  %v30_v9 = vld [vmem:[%s7901_s0 + $0x78] sm:$0xff] }
  0x1d   :  { %4015 = vmatmul.mubr.f32.gmra.mrb[4].mxu1 %v380_v18  ;;  %4630 = vmatmul.mubr.f32.gmra.mrb[4].mxu0 %v378_v57  ;;  %v1005_v57 = vand.u32 4294901760, %v1004_v50  ;;  %8039 = vst [vmem:[#allocation13_spill] sm:$0xff] %v6199_v60  ;;  %v128_v18 = vsel %vm93_vm1, %v26_v0, 0  ;;  %v430_v2 = vand.u32 4294901760, %v429_v22 }
  0x1e   :  { %4017 = vmatprep.mubr.msk.f32.mxu1 %vm5955_vm0, %v7907_v13  ;;  %4632 = vmatprep.mubr.msk.f32.mxu0 %vm5955_vm0, %v7907_v13  ;;  %8040 = vst [vmem:[#allocation14_spill] sm:$0xff] %v6216_v24  ;;  %v448_v7 = vand.u32 4294901760, %v6216_v24 }
  0x1f   :  { %v5238_v5 = vpack.c.bf16 %v1012_v1, %v1005_v57 }
  0x20   :  { %v449_v50 = vsub.f32 %v6216_v24, %v448_v7 }
  0x21   :  { %4018 = vmatmul.mubr.f32.gmra.mrb[6].mxu1 %v390_v34  ;;  %4633 = vmatmul.mubr.f32.gmra.mrb[6].mxu0 %v388_v4  ;;  %v125_v4 = vsel %vm93_vm1, %v25_v51, 0  ;;  %v27_v34 = vld [vmem:[%s7901_s0 + $0x60] sm:$0xff] }
  0x22   :  { %4020 = vmatprep.mubr.msk.f32.mxu1 %vm5955_vm0, %v7907_v13  ;;  %4635 = vmatprep.mubr.msk.f32.mxu0 %vm5955_vm0, %v7907_v13  ;;  %v6218_v25 = vand.u32 4294901760, %v125_v4  ;;  %v131_v37 = vsel %vm93_vm1, %v27_v34, 0  ;;  %v450_v0 = vand.u32 4294901760, %v449_v50  ;;  %v140_v34 = vsel %vm93_vm1, %v30_v9, 0 }
  0x23   :  { %5239 = vmatpush3.bf16.msra.mxu1 %v5238_v5  ;;  %v6243_v47 = vand.u32 4294901760, %v131_v37 }
  0x24   :  { %5240 = vmatprep.subr.bf16.mxu1 %v7905_v3  ;;  %v6234_v39 = vsub.f32 %v125_v4, %v6218_v25 }
  0x25   :  { %4021 = vmatmul.mubr.f32.gmra.mrb[8].mxu1 %v400_v40  ;;  %4636 = vmatmul.mubr.f32.gmra.mrb[8].mxu0 %v398_v23  ;;  %v438_v23 = vand.u32 4294901760, %v6199_v60  ;;  %v28_v40 = vld [vmem:[%s7901_s0 + $0x68] sm:$0xff]  ;;  %v6269_v57 = vsub.f32 %v131_v37, %v6243_v47 }
  0x26   :  { %4023 = vmatprep.mubr.msk.f32.mxu1 %vm5955_vm0, %v7907_v13  ;;  %4638 = vmatprep.mubr.msk.f32.mxu0 %vm5955_vm0, %v7907_v13  ;;  %8041 = vst [vmem:[#allocation15_spill] sm:$0xff] %v6234_v39  ;;  %v458_v51 = vand.u32 4294901760, %v6234_v39 }
  0x27   :  { %v439_v6 = vsub.f32 %v6199_v60, %v438_v23  ;;  %8043 = vst [vmem:[#allocation17_spill] sm:$0xff] %v6269_v57  ;;  %v478_v20 = vand.u32 4294901760, %v6269_v57 }
  0x28   :  { %v459_v1 = vsub.f32 %v6234_v39, %v458_v51 }
  0x29   :  { %4024 = vmatmul.mubr.f32.gmra.mrb[10].mxu1 %v410_v55  ;;  %4639 = vmatmul.mubr.f32.gmra.mrb[10].mxu0 %v408_v27  ;;  %v6227_v27 = vand.u32 4294901760, %v128_v18  ;;  %v440_v48 = vand.u32 4294901760, %v439_v6  ;;  %v6261_v55 = vsub.f32 %v6002_v8, %v296_v19  ;;  %v137_v8 = vsel %vm93_vm1, %v29_v54, 0 }
  0x2a   :  { %4026 = vmatprep.mubr.msk.f32.mxu1 %vm5955_vm0, %v7907_v13  ;;  %4641 = vmatprep.mubr.msk.f32.mxu0 %vm5955_vm0, %v7907_v13  ;;  %v460_v22 = vand.u32 4294901760, %v459_v1 }
  0x2b   :  { %v6249_v52 = vsub.f32 %v128_v18, %v6227_v27  ;;  %v1017_v19 = vand.u32 4294901760, %v6261_v55  ;;  %v1024_v18 = vand.u32 4294901760, %v6266_v56 }
  0x2d   :  { %4027 = vmatmul.mubr.f32.gmra.mrb[12].mxu1 %v420_v11  ;;  %4642 = vmatmul.mubr.f32.gmra.mrb[12].mxu0 %v418_v10  ;;  %v134_v10 = vsel %vm93_vm1, %v28_v40, 0  ;;  %8042 = vst [vmem:[#allocation16_spill] sm:$0xff] %v6249_v52  ;;  %v468_v4 = vand.u32 4294901760, %v6249_v52  ;;  %v6288_v11 = vand.u32 4294901760, %v137_v8  ;;  %v1018_v37 = vsub.f32 %v6261_v55, %v1017_v19 }
  0x2e   :  { %4029 = vmatprep.mubr.msk.f32.mxu1 %vm5955_vm0, %v7907_v13  ;;  %4644 = vmatprep.mubr.msk.f32.mxu0 %vm5955_vm0, %v7907_v13  ;;  %v1025_v6 = vsub.f32 %v6266_v56, %v1024_v18  ;;  %v5277_v50 = vpack.c.bf16 %v1024_v18, %v1017_v19  ;;  %v32_v19 = vld [vmem:[%s7901_s0 + $0x88] sm:$0xff] }
  0x2f   :  { %v6307_v1 = vsub.f32 %v137_v8, %v6288_v11 }
  0x30   :  { %5278 = vmatpush3.bf16.msra.mxu0 %v5277_v50 }
  0x31   :  { %4030 = vmatmul.mubr.f32.gmra.mrb[14].mxu1 %v430_v2  ;;  %4645 = vmatmul.mubr.f32.gmra.mrb[14].mxu0 %v428_v59  ;;  %v6271_v59 = vand.u32 4294901760, %v134_v10  ;;  %v31_v2 = vld [vmem:[%s7901_s0 + $0x80] sm:$0xff]  ;;  %8045 = vst [vmem:[#allocation19_spill] sm:$0xff] %v6307_v1 }
  0x32   :  { %4032 = vmatprep.mubr.msk.f32.mxu1 %vm5955_vm0, %v7907_v13  ;;  %4647 = vmatprep.mubr.msk.f32.mxu0 %vm5955_vm0, %v7907_v13  ;;  %v143_v9 = vsel %vm93_vm1, %v31_v2, 0  ;;  %v146_v2 = vsel %vm93_vm1, %v32_v19, 0 }
  0x33   :  { %v6286_v5 = vsub.f32 %v134_v10, %v6271_v59  ;;  %v6303_v10 = vand.u32 4294901760, %v140_v34  ;;  %v6318_v18 = vand.u32 4294901760, %v143_v9  ;;  %5279 = vmatprep.subr.bf16.mxu0 %v7905_v3  ;;  %v6339_v50 = vand.u32 4294901760, %v146_v2 }
  0x35   :  { %4033 = vmatmul.mubr.f32.gmra.mrb[16].mxu1 %v440_v48  ;;  %4648 = vmatmul.mubr.f32.gmra.mrb[16].mxu0 %v438_v23  ;;  %8044 = vst [vmem:[#allocation18_spill] sm:$0xff] %v6286_v5  ;;  %v469_v23 = vsub.f32 %v6249_v52, %v468_v4  ;;  %v488_v40 = vand.u32 4294901760, %v6286_v5  ;;  %v1026_v48 = vand.u32 4294901760, %v1025_v6  ;;  %v33_v6 = vld [vmem:[%s7901_s0 + $0x90] sm:$0xff]  ;;  %v38_v52 = vld [vmem:[%s7901_s0 + $0xb8] sm:$0xff] }
  0x36   :  { %4035 = vmatprep.mubr.msk.f32.mxu1 %vm5955_vm0, %v7907_v13  ;;  %4650 = vmatprep.mubr.msk.f32.mxu0 %vm5955_vm0, %v7907_v13  ;;  %v164_v60 = vsel %vm93_vm1, %v38_v52, 0  ;;  %v8054_v52 = vmov 0.0|0.0  }
  0x37   :  { %v470_v54 = vand.u32 4294901760, %v469_v23  ;;  %v6323_v23 = vsub.f32 %v140_v34, %v6303_v10 }
  0x39   :  { %4036 = vmatmul.mubr.f32.gmra.mrb[18].mxu1 %v450_v0  ;;  %4651 = vmatmul.mubr.f32.gmra.mrb[18].mxu0 %v448_v7  ;;  %v1019_v7 = vand.u32 4294901760, %v1018_v37  ;;  %v479_v0 = vsub.f32 %v6269_v57, %v478_v20  ;;  %8046 = vst [vmem:[#allocation20_spill] sm:$0xff] %v6323_v23 }
  0x3a   :  { %4038 = vmatprep.mubr.msk.f32.mxu1 %vm5955_vm0, %v7907_v13  ;;  %4653 = vmatprep.mubr.msk.f32.mxu0 %vm5955_vm0, %v7907_v13 }
  0x3b   :  { %v5241_v37 = vpack.c.bf16 %v1026_v48, %v1019_v7  ;;  %v480_v8 = vand.u32 4294901760, %v479_v0  ;;  %v6335_v7 = vsub.f32 %v143_v9, %v6318_v18  ;;  %v508_v48 = vand.u32 4294901760, %v6323_v23  ;;  %v34_v0 = vld [vmem:[%s7901_s0 + $0x98] sm:$0xff] }
  0x3d   :  { %4039 = vmatmul.mubr.f32.gmra.mrb[20].mxu1 %v460_v22  ;;  %4654 = vmatmul.mubr.f32.gmra.mrb[20].mxu0 %v458_v51  ;;  %v489_v51 = vsub.f32 %v6286_v5, %v488_v40  ;;  %v498_v22 = vand.u32 4294901760, %v6307_v1  ;;  %8047 = vst [vmem:[#allocation21_spill] sm:$0xff] %v6335_v7  ;;  %v509_v19 = vsub.f32 %v6323_v23, %v508_v48  ;;  %v8050_v23 = vmov 0.0  }
  0x3e   :  { %4041 = vmatprep.mubr.msk.f32.mxu1 %vm5955_vm0, %v7907_v13  ;;  %4656 = vmatprep.mubr.msk.f32.mxu0 %vm5955_vm0, %v7907_v13 }
  0x3f   :  { %5242 = vmatpush3.bf16.msra.mxu1 %v5241_v37  ;;  %v499_v34 = vsub.f32 %v6307_v1, %v498_v22  ;;  %v1031_v1 = vand.u32 4294901760, %v6054_v30 }
  0x40   :  { %5243 = vmatprep.subr.bf16.mxu1 %v7905_v3 }
  0x41   :  { %4042 = vmatmul.mubr.f32.gmra.mrb[22].mxu1 %v470_v54  ;;  %4657 = vmatmul.mubr.f32.gmra.mrb[22].mxu0 %v468_v4  ;;  %v490_v4 = vand.u32 4294901760, %v489_v51  ;;  %v149_v54 = vsel %vm93_vm1, %v33_v6, 0  ;;  %v500_v37 = vand.u32 4294901760, %v499_v34  ;;  %v6354_v51 = vsub.f32 %v146_v2, %v6339_v50  ;;  %v35_v6 = vld [vmem:[%s7901_s0 + $0xa0] sm:$0xff] }
  0x42   :  { %4044 = vmatprep.mubr.msk.f32.mxu1 %vm5955_vm0, %v7907_v13  ;;  %4659 = vmatprep.mubr.msk.f32.mxu0 %vm5955_vm0, %v7907_v13  ;;  %v6350_v9 = vand.u32 4294901760, %v149_v54  ;;  %v510_v2 = vand.u32 4294901760, %v509_v19 }
  0x43   :  { %8048 = vst [vmem:[#allocation22_spill] sm:$0xff] %v6354_v51  ;;  %v528_v34 = vand.u32 4294901760, %v6354_v51 }
  0x45   :  { %4045 = vmatmul.mubr.f32.gmra.mrb[24].mxu1 %v480_v8  ;;  %4660 = vmatmul.mubr.f32.gmra.mrb[24].mxu0 %v478_v20  ;;  %v518_v20 = vand.u32 4294901760, %v6335_v7  ;;  %v152_v8 = vsel %vm93_vm1, %v34_v0, 0  ;;  %v529_v19 = vsub.f32 %v6354_v51, %v528_v34 }
  0x46   :  { %4047 = vmatprep.mubr.msk.f32.mxu1 %vm5955_vm0, %v7907_v13  ;;  %4662 = vmatprep.mubr.msk.f32.mxu0 %vm5955_vm0, %v7907_v13  ;;  %v6369_v3 = vand.u32 4294901760, %v152_v8 }
  0x47   :  { %v530_v5 = vand.u32 4294901760, %v529_v19 }
  0x49   :  { %4048 = vmatmul.mubr.f32.gmra.mrb[26].mxu1 %v490_v4  ;;  %4663 = vmatmul.mubr.f32.gmra.mrb[26].mxu0 %v488_v40  ;;  %v519_v40 = vsub.f32 %v6335_v7, %v518_v20  ;;  %v6366_v4 = vsub.f32 %v149_v54, %v6350_v9  ;;  %v36_v54 = vld [vmem:[%s7901_s0 + $0xa8] sm:$0xff] }
  0x4a   :  { %4050 = vmatprep.mubr.msk.f32.mxu1 %vm5955_vm0, %v7907_v13  ;;  %4665 = vmatprep.mubr.msk.f32.mxu0 %vm5955_vm0, %v7907_v13  ;;  %v155_v13 = vsel %vm93_vm1, %v35_v6, 0  ;;  %v6384_v6 = vsub.f32 %v152_v8, %v6369_v3  ;;  %v158_v7 = vsel %vm93_vm1, %v36_v54, 0 }
  0x4b   :  { %8049 = vst [vmem:[#allocation23_spill] sm:$0xff] %v6366_v4  ;;  %v520_v0 = vand.u32 4294901760, %v519_v40  ;;  %v37_v40 = vld [vmem:[%s7901_s0 + $0xb0] sm:$0xff]  ;;  %v6401_v51 = vand.u32 4294901760, %v158_v7 }
  0x4c   :  { %8051 = vst [vmem:[#allocation24_spill] sm:$0xff] %v6384_v6  ;;  %v548_v57 = vand.u32 4294901760, %v6384_v6 }
  0x4d   :  { %4051 = vmatmul.mubr.f32.gmra.mrb[28].mxu1 %v500_v37  ;;  %4666 = vmatmul.mubr.f32.gmra.mrb[28].mxu0 %v498_v22  ;;  %v538_v22 = vand.u32 4294901760, %v6366_v4  ;;  %v6380_v37 = vand.u32 4294901760, %v155_v13 }
  0x4e   :  { %4053 = vmatprep.mubr.msk.f32.mxu1 %vm5955_vm0, %v8050_v23  ;;  %4668 = vmatprep.mubr.msk.f32.mxu0 %vm5955_vm0, %v8050_v23  ;;  %v549_v43 = vsub.f32 %v6384_v6, %v548_v57 }
  0x4f   :  { %v539_v8 = vsub.f32 %v6366_v4, %v538_v22  ;;  %v6399_v54 = vsub.f32 %v155_v13, %v6380_v37  ;;  %v161_v13 = vsel %vm93_vm1, %v37_v40, 0  ;;  %v6415_v4 = vsub.f32 %v158_v7, %v6401_v51 }
  0x50   :  { %v6419_v28 = vand.u32 4294901760, %v161_v13 }
  0x51   :  { %4054 = vmatmul.mubr.f32.gmra.mrb[30].mxu1 %v510_v2  ;;  %4669 = vmatmul.mubr.f32.gmra.mrb[30].mxu0 %v508_v48  ;;  %v1032_v48 = vsub.f32 %v6054_v30, %v1031_v1  ;;  %v1038_v2 = vand.u32 4294901760, %v6056_v31  ;;  %8052 = vst [vmem:[#allocation25_spill] sm:$0xff] %v6399_v54  ;;  %v558_v19 = vand.u32 4294901760, %v6399_v54  ;;  %8053 = vst [vmem:[#allocation26_spill] sm:$0xff] %v6415_v4  ;;  %v568_v40 = vand.u32 4294901760, %v6415_v4 }
  0x52   :  { %4056 = vmatprep.mubr.msk.f32.mxu1 %vm5955_vm0, %v8050_v23  ;;  %4671 = vmatprep.mubr.msk.f32.mxu0 %vm5955_vm0, %v8050_v23 }
  0x53   :  { %v1033_v39 = vand.u32 4294901760, %v1032_v48  ;;  %v1039_v24 = vsub.f32 %v6056_v31, %v1038_v2  ;;  %v540_v48 = vand.u32 4294901760, %v539_v8  ;;  %v40_v8 = vld [vmem:[%s7901_s0 + $0xc8] sm:$0xff] }
  0x55   :  { %4057 = vmatmul.mubr.f32.gmra.mrb[32].mxu1 %v520_v0  ;;  %4672 = vmatmul.mubr.f32.gmra.mrb[32].mxu0 %v518_v20  ;;  %v5280_v0 = vpack.c.bf16 %v1038_v2, %v1031_v1  ;;  %v1040_v20 = vand.u32 4294901760, %v1039_v24  ;;  %v39_v1 = vld [vmem:[%s7901_s0 + $0xc0] sm:$0xff]  ;;  %v6436_v2 = vsub.f32 %v161_v13, %v6419_v28 }
  0x56   :  { %4059 = vmatprep.mubr.msk.f32.mxu1 %vm5955_vm0, %v8050_v23  ;;  %4674 = vmatprep.mubr.msk.f32.mxu0 %vm5955_vm0, %v8050_v23  ;;  %v167_v7 = vsel %vm93_vm1, %v39_v1, 0 }
  0x57   :  { %5281 = vmatpush3.bf16.msra.mxu0 %v5280_v0  ;;  %v5244_v24 = vpack.c.bf16 %v1040_v20, %v1033_v39  ;;  %v559_v39 = vsub.f32 %v6399_v54, %v558_v19  ;;  %8055 = vst [vmem:[#allocation27_spill] sm:$0xff] %v6436_v2  ;;  %v6445_v0 = vand.u32 4294901760, %v167_v7  ;;  %v578_v13 = vand.u32 4294901760, %v6436_v2 }
  0x58   :  { %5282 = vmatprep.subr.bf16.mxu0 %v8054_v52 }
  0x59   :  { %4060 = vmatmul.mubr.f32.gmra.mrb[34].mxu1 %v530_v5  ;;  %4675 = vmatmul.mubr.f32.gmra.mrb[34].mxu0 %v528_v34  ;;  %v6429_v5 = vand.u32 4294901760, %v164_v60  ;;  %v550_v34 = vand.u32 4294901760, %v549_v43  ;;  %v560_v43 = vand.u32 4294901760, %v559_v39  ;;  %v6461_v1 = vsub.f32 %v167_v7, %v6445_v0  ;;  %v42_v7 = vld [vmem:[%s7901_s0 + $0xd8] sm:$0xff] }
  0x5a   :  { %4062 = vmatprep.mubr.msk.f32.mxu1 %vm5955_vm0, %v8050_v23  ;;  %4677 = vmatprep.mubr.msk.f32.mxu0 %vm5955_vm0, %v8050_v23 }
  0x5b   :  { %5245 = vmatpush3.bf16.msra.mxu1 %v5244_v24  ;;  %v6450_v20 = vsub.f32 %v164_v60, %v6429_v5  ;;  %8057 = vst [vmem:[#allocation29_spill] sm:$0xff] %v6461_v1  ;;  %v579_v60 = vsub.f32 %v6436_v2, %v578_v13 }
  0x5c   :  { %5246 = vmatprep.subr.bf16.mxu1 %v8054_v52 }
  0x5d   :  { %4063 = vmatmul.mubr.f32.gmra.mrb[36].mxu1 %v540_v48  ;;  %4678 = vmatmul.mubr.f32.gmra.mrb[36].mxu0 %v538_v22  ;;  %v569_v22 = vsub.f32 %v6415_v4, %v568_v40  ;;  %8056 = vst [vmem:[#allocation28_spill] sm:$0xff] %v6450_v20  ;;  %v170_v48 = vsel %vm93_vm1, %v40_v8, 0 }
  0x5e   :  { %4065 = vmatprep.mubr.msk.f32.mxu1 %vm5955_vm0, %v8050_v23  ;;  %4680 = vmatprep.mubr.msk.f32.mxu0 %vm5955_vm0, %v8050_v23  ;;  %v6465_v39 = vand.u32 4294901760, %v170_v48 }
  0x5f   :  { %v570_v24 = vand.u32 4294901760, %v569_v22 }
  0x60   :  { %v6478_v2 = vsub.f32 %v170_v48, %v6465_v39 }
  0x61   :  { %4066 = vmatmul.mubr.f32.gmra.mrb[38].mxu1 %v550_v34  ;;  %4681 = vmatmul.mubr.f32.gmra.mrb[38].mxu0 %v548_v57  ;;  %v41_v57 = vld [vmem:[%s7901_s0 + $0xd0] sm:$0xff]  ;;  %v588_v34 = vand.u32 4294901760, %v6450_v20 }
  0x62   :  { %4068 = vmatprep.mubr.msk.f32.mxu1 %vm5955_vm0, %v8050_v23  ;;  %4683 = vmatprep.mubr.msk.f32.mxu0 %vm5955_vm0, %v8050_v23  ;;  %v173_v8 = vsel %vm93_vm1, %v41_v57, 0  ;;  %8058 = vst [vmem:[#allocation30_spill] sm:$0xff] %v6478_v2  ;;  %v43_v57 = vld [vmem:[%s7901_s0 + $0xe0] sm:$0xff] }
  0x63   :  { %v589_v22 = vsub.f32 %v6450_v20, %v588_v34  ;;  %v6480_v4 = vand.u32 4294901760, %v173_v8  ;;  %v608_v20 = vand.u32 4294901760, %v6478_v2 }
  0x65   :  { %4069 = vmatmul.mubr.f32.gmra.mrb[40].mxu1 %v560_v43  ;;  %4684 = vmatmul.mubr.f32.gmra.mrb[40].mxu0 %v558_v19  ;;  %v598_v19 = vand.u32 4294901760, %v6461_v1  ;;  %v580_v43 = vand.u32 4294901760, %v579_v60  ;;  %v179_v60 = vsel %vm93_vm1, %v43_v57, 0  ;;  %v590_v48 = vand.u32 4294901760, %v589_v22 }
  0x66   :  { %4071 = vmatprep.mubr.msk.f32.mxu1 %vm5955_vm0, %v8050_v23  ;;  %4686 = vmatprep.mubr.msk.f32.mxu0 %vm5955_vm0, %v8050_v23  ;;  %v6494_v54 = vsub.f32 %v173_v8, %v6480_v4 }
  0x68   :  { %8059 = vst [vmem:[#allocation31_spill] sm:$0xff] %v6494_v54  ;;  %v618_v22 = vand.u32 4294901760, %v6494_v54 }
  0x69   :  { %4072 = vmatmul.mubr.f32.gmra.mrb[42].mxu1 %v570_v24  ;;  %4687 = vmatmul.mubr.f32.gmra.mrb[42].mxu0 %v568_v40  ;;  %v176_v40 = vsel %vm93_vm1, %v42_v7, 0  ;;  %v599_v24 = vsub.f32 %v6461_v1, %v598_v19  ;;  %v6505_v7 = vand.u32 4294901760, %v179_v60 }
  0x6a   :  { %4074 = vmatprep.mubr.msk.f32.mxu1 %vm5955_vm0, %v8050_v23  ;;  %4689 = vmatprep.mubr.msk.f32.mxu0 %vm5955_vm0, %v8050_v23  ;;  %v6496_v6 = vand.u32 4294901760, %v176_v40 }
  0x6b   :  { %v600_v8 = vand.u32 4294901760, %v599_v24 }
  0x6c   :  { %v6511_v57 = vsub.f32 %v176_v40, %v6496_v6  ;;  %v619_v40 = vsub.f32 %v6494_v54, %v618_v22 }
  0x6d   :  { %4075 = vmatmul.mubr.f32.gmra.mrb[44].mxu1 %v580_v43  ;;  %4690 = vmatmul.mubr.f32.gmra.mrb[44].mxu0 %v578_v13  ;;  %v182_v13 = vsel %vm93_vm1, %v44_v12, 0  ;;  %v609_v43 = vsub.f32 %v6478_v2, %v608_v20  ;;  %v45_v12 = vld [vmem:[%s7901_s0 + $0xf0] sm:$0xff] }
  0x6e   :  { %4077 = vmatprep.mubr.msk.f32.mxu1 %vm5955_vm0, %v8050_v23  ;;  %4692 = vmatprep.mubr.msk.f32.mxu0 %vm5955_vm0, %v8050_v23  ;;  %8060 = vst [vmem:[#allocation32_spill] sm:$0xff] %v6511_v57  ;;  %v6523_v24 = vand.u32 4294901760, %v182_v13  ;;  %v628_v2 = vand.u32 4294901760, %v6511_v57  ;;  %v185_v1 = vsel %vm93_vm1, %v45_v12, 0 }
  0x70   :  { %v6541_v54 = vsub.f32 %v182_v13, %v6523_v24 }
  0x71   :  { %4078 = vmatmul.mubr.f32.gmra.mrb[46].mxu1 %v590_v48  ;;  %4693 = vmatmul.mubr.f32.gmra.mrb[46].mxu0 %v588_v34  ;;  %v6521_v34 = vsub.f32 %v179_v60, %v6505_v7  ;;  %v610_v48 = vand.u32 4294901760, %v609_v43  ;;  %v6535_v60 = vand.u32 4294901760, %v185_v1  ;;  %v629_v43 = vsub.f32 %v6511_v57, %v628_v2 }
  0x72   :  { %4080 = vmatprep.mubr.msk.f32.mxu1 %vm5955_vm0, %v8050_v23  ;;  %4695 = vmatprep.mubr.msk.f32.mxu0 %vm5955_vm0, %v8050_v23  ;;  %8062 = vst [vmem:[#allocation34_spill] sm:$0xff] %v6541_v54  ;;  %v648_v13 = vand.u32 4294901760, %v6541_v54 }
  0x73   :  { %8061 = vst [vmem:[#allocation33_spill] sm:$0xff] %v6521_v34  ;;  %v638_v12 = vand.u32 4294901760, %v6521_v34  ;;  %v6555_v57 = vsub.f32 %v185_v1, %v6535_v60 }
  0x74   :  { %v649_v1 = vsub.f32 %v6541_v54, %v648_v13 }
  0x75   :  { %4081 = vmatmul.mubr.f32.gmra.mrb[48].mxu1 %v600_v8  ;;  %4696 = vmatmul.mubr.f32.gmra.mrb[48].mxu0 %v598_v19  ;;  %v188_v19 = vsel %vm93_vm1, %v46_v62, 0  ;;  %v620_v8 = vand.u32 4294901760, %v619_v40  ;;  %v47_v62 = vld [vmem:[%s7901_s0 + $0x100] sm:$0xff]  ;;  %v639_v40 = vsub.f32 %v6521_v34, %v638_v12  ;;  %8064 = vst [vmem:[#allocation36_spill] sm:$0xff] %v6555_v57  ;;  %v658_v34 = vand.u32 4294901760, %v6555_v57 }
  0x76   :  { %4083 = vmatprep.mubr.msk.f32.mxu1 %vm5955_vm0, %v8050_v23  ;;  %4698 = vmatprep.mubr.msk.f32.mxu0 %vm5955_vm0, %v8050_v23  ;;  %v191_v58 = vsel %vm93_vm1, %v47_v62, 0 }
  0x77   :  { %v6570_v45 = vand.u32 4294901760, %v191_v58 }
  0x79   :  { %4084 = vmatmul.mubr.f32.gmra.mrb[50].mxu1 %v610_v48  ;;  %4699 = vmatmul.mubr.f32.gmra.mrb[50].mxu0 %v608_v20  ;;  %v6550_v48 = vand.u32 4294901760, %v188_v19  ;;  %v630_v20 = vand.u32 4294901760, %v629_v43  ;;  %v640_v43 = vand.u32 4294901760, %v639_v40  ;;  %8066 = vst [vmem:[#allocation38_spill] sm:$0xff] %v6570_v45  ;;  %v659_v40 = vsub.f32 %v6555_v57, %v658_v34 }
  0x7a   :  { %4086 = vmatprep.mubr.msk.f32.mxu1 %vm5955_vm0, %v8050_v23  ;;  %4701 = vmatprep.mubr.msk.f32.mxu0 %vm5955_vm0, %v8050_v23  ;;  %v6583_v54 = vsub.f32 %v191_v58, %v6570_v45 }
  0x7b   :  { %8063 = vst [vmem:[#allocation35_spill] sm:$0xff] %v6550_v48  ;;  %v660_v58 = vand.u32 4294901760, %v659_v40 }
  0x7c   :  { %8067 = vst [vmem:[#allocation39_spill] sm:$0xff] %v6583_v54 }
  0x7d   :  { %4087 = vmatmul.mubr.f32.gmra.mrb[52].mxu1 %v620_v8  ;;  %4702 = vmatmul.mubr.f32.gmra.mrb[52].mxu0 %v618_v22  ;;  %v48_v22 = vld [vmem:[%s7901_s0 + $0x108] sm:$0xff]  ;;  %v6566_v8 = vsub.f32 %v188_v19, %v6550_v48  ;;  %v49_v19 = vld [vmem:[%s7901_s0 + $0x110] sm:$0xff]  ;;  %v54_v48 = vld [vmem:[%s7901_s0 + $0x138] sm:$0xff] }
  0x7e   :  { %4089 = vmatprep.mubr.msk.f32.mxu1 %vm5955_vm0, %v8050_v23  ;;  %4704 = vmatprep.mubr.msk.f32.mxu0 %vm5955_vm0, %v8050_v23  ;;  %v194_v62 = vsel %vm93_vm1, %v48_v22, 0  ;;  %v197_v22 = vsel %vm93_vm1, %v49_v19, 0  ;;  %v51_v19 = vld [vmem:[%s7901_s0 + $0x120] sm:$0xff] }
  0x7f   :  { %8065 = vst [vmem:[#allocation37_spill] sm:$0xff] %v6566_v8  ;;  %v6585_v41 = vand.u32 4294901760, %v194_v62  ;;  %v6600_v36 = vand.u32 4294901760, %v197_v22  ;;  %v203_v40 = vsel %vm93_vm1, %v51_v19, 0 }
  0x81   :  { %4090 = vmatmul.mubr.f32.gmra.mrb[54].mxu1 %v630_v20  ;;  %4705 = vmatmul.mubr.f32.gmra.mrb[54].mxu0 %v628_v2  ;;  %v668_v2 = vand.u32 4294901760, %v6566_v8  ;;  %v650_v20 = vand.u32 4294901760, %v649_v1  ;;  %8068 = vst [vmem:[#allocation40_spill] sm:$0xff] %v6585_v41  ;;  %v678_v1 = vand.u32 4294901760, %v6583_v54  ;;  %v6598_v57 = vsub.f32 %v194_v62, %v6585_v41  ;;  %8070 = vst [vmem:[#allocation42_spill] sm:$0xff] %v6600_v36 }
  0x82   :  { %4092 = vmatprep.mubr.msk.f32.mxu1 %vm5955_vm0, %v8050_v23  ;;  %4707 = vmatprep.mubr.msk.f32.mxu0 %vm5955_vm0, %v8050_v23  ;;  %v6614_v41 = vsub.f32 %v197_v22, %v6600_v36 }
  0x83   :  { %8069 = vst [vmem:[#allocation41_spill] sm:$0xff] %v6598_v57  ;;  %v679_v62 = vsub.f32 %v6583_v54, %v678_v1  ;;  %v53_v54 = vld [vmem:[%s7901_s0 + $0x130] sm:$0xff] }
  0x84   :  { %8071 = vst [vmem:[#allocation43_spill] sm:$0xff] %v6614_v41 }
  0x85   :  { %4093 = vmatmul.mubr.f32.gmra.mrb[56].mxu1 %v640_v43  ;;  %4708 = vmatmul.mubr.f32.gmra.mrb[56].mxu0 %v638_v12  ;;  %v50_v12 = vld [vmem:[%s7901_s0 + $0x118] sm:$0xff]  ;;  %v669_v43 = vsub.f32 %v6566_v8, %v668_v2  ;;  %v688_v8 = vand.u32 4294901760, %v6598_v57 }
  0x86   :  { %4095 = vmatprep.mubr.msk.f32.mxu1 %vm5955_vm0, %v8050_v23  ;;  %4710 = vmatprep.mubr.msk.f32.mxu0 %vm5955_vm0, %v8050_v23 }
  0x87   :  { %v689_v22 = vsub.f32 %v6598_v57, %v688_v8 }
  0x89   :  { %4096 = vmatmul.mubr.f32.gmra.mrb[58].mxu1 %v650_v20  ;;  %4711 = vmatmul.mubr.f32.gmra.mrb[58].mxu0 %v648_v13  ;;  %v200_v13 = vsel %vm93_vm1, %v50_v12, 0  ;;  %v670_v20 = vand.u32 4294901760, %v669_v43  ;;  %v52_v12 = vld [vmem:[%s7901_s0 + $0x128] sm:$0xff]  ;;  %v680_v43 = vand.u32 4294901760, %v679_v62  ;;  %v209_v62 = vsel %vm93_vm1, %v53_v54, 0 }
  0x8a   :  { %4098 = vmatprep.mubr.msk.f32.mxu1 %vm5955_vm0, %v8050_v23  ;;  %4713 = vmatprep.mubr.msk.f32.mxu0 %vm5955_vm0, %v8050_v23  ;;  %v6616_v45 = vand.u32 4294901760, %v200_v13  ;;  %v6655_v54 = vand.u32 4294901760, %v209_v62 }
  0x8c   :  { %8072 = vst [vmem:[#allocation44_spill] sm:$0xff] %v6616_v45  ;;  %v6630_v19 = vsub.f32 %v200_v13, %v6616_v45  ;;  %v690_v13 = vand.u32 4294901760, %v689_v22  ;;  %8077 = vst [vmem:[#allocation49_spill] sm:$0xff] %v6655_v54 }
  0x8d   :  { %4099 = vmatmul.mubr.f32.gmra.mrb[60].mxu1 %v660_v58  ;;  %4714 = vmatmul.mubr.f32.gmra.mrb[60].mxu0 %v658_v34  ;;  %v6625_v34 = vand.u32 4294901760, %v203_v40  ;;  %v698_v58 = vand.u32 4294901760, %v6614_v41 }
  0x8e   :  { %4101 = vmatprep.mubr.msk.f32.mxu1 %vm5955_vm0, %v8050_v23  ;;  %4716 = vmatprep.mubr.msk.f32.mxu0 %vm5955_vm0, %v8050_v23  ;;  %8074 = vst [vmem:[#allocation46_spill] sm:$0xff] %v6630_v19  ;;  %v708_v45 = vand.u32 4294901760, %v6630_v19 }
  0x8f   :  { %8073 = vst [vmem:[#allocation45_spill] sm:$0xff] %v6625_v34  ;;  %v699_v57 = vsub.f32 %v6614_v41, %v698_v58 }
  0x91   :  { %4102 = vmatmul.mubr.f32.gmra.mrb[62].mxu1 %v670_v20  ;;  %4717 = vmatmul.mubr.f32.gmra.mrb[62].mxu0 %v668_v2  ;;  %v206_v2 = vsel %vm93_vm1, %v52_v12, 0  ;;  %v6641_v20 = vsub.f32 %v203_v40, %v6625_v34  ;;  %v700_v40 = vand.u32 4294901760, %v699_v57  ;;  %v709_v12 = vsub.f32 %v6630_v19, %v708_v45  ;;  %v62_v34 = vld [vmem:[%s7901_s0 + $0x178] sm:$0xff] }
  0x92   :  { %4104 = vmatprep.mubr.msk.f32.mxu1 %vm5955_vm0, %v8050_v23  ;;  %4719 = vmatprep.mubr.msk.f32.mxu0 %vm5955_vm0, %v8050_v23  ;;  %v6646_v36 = vand.u32 4294901760, %v206_v2  ;;  %v6675_v19 = vsub.f32 %v209_v62, %v6655_v54 }
  0x93   :  { %8075 = vst [vmem:[#allocation47_spill] sm:$0xff] %v6641_v20  ;;  %v710_v57 = vand.u32 4294901760, %v709_v12 }
  0x94   :  { %8076 = vst [vmem:[#allocation48_spill] sm:$0xff] %v6646_v36  ;;  %v6661_v22 = vsub.f32 %v206_v2, %v6646_v36  ;;  %8080 = vst [vmem:[#allocation52_spill] sm:$0xff] %v6675_v19 }
  0x95   :  { %4105 = vmatmul.mubr.f32.gmra.mrb[64].mxu1 %v680_v43  ;;  %4720 = vmatmul.mubr.f32.gmra.mrb[64].mxu0 %v678_v1  ;;  %v212_v1 = vsel %vm93_vm1, %v54_v48, 0  ;;  %v718_v43 = vand.u32 4294901760, %v6641_v20  ;;  %v55_v48 = vld [vmem:[%s7901_s0 + $0x140] sm:$0xff] }
  0x96   :  { %4107 = vmatprep.mubr.msk.f32.mxu1 %vm5955_vm0, %v8050_v23  ;;  %4722 = vmatprep.mubr.msk.f32.mxu0 %vm5955_vm0, %v8050_v23  ;;  %8078 = vst [vmem:[#allocation50_spill] sm:$0xff] %v6661_v22  ;;  %v728_v2 = vand.u32 4294901760, %v6661_v22  ;;  %v215_v41 = vsel %vm93_vm1, %v55_v48, 0 }
  0x97   :  { %v6690_v54 = vand.u32 4294901760, %v215_v41 }
  0x98   :  { %v729_v62 = vsub.f32 %v6661_v22, %v728_v2 }
  0x99   :  { %4108 = vmatmul.mubr.f32.gmra.mrb[66].mxu1 %v690_v13  ;;  %4723 = vmatmul.mubr.f32.gmra.mrb[66].mxu0 %v688_v8  ;;  %v6670_v13 = vand.u32 4294901760, %v212_v1  ;;  %v719_v8 = vsub.f32 %v6641_v20, %v718_v43  ;;  %v738_v20 = vand.u32 4294901760, %v6675_v19  ;;  %8082 = vst [vmem:[#allocation54_spill] sm:$0xff] %v6690_v54  ;;  %v6703_v22 = vsub.f32 %v215_v41, %v6690_v54 }
  0x9a   :  { %4110 = vmatprep.mubr.msk.f32.mxu1 %vm5955_vm0, %v8050_v23  ;;  %4725 = vmatprep.mubr.msk.f32.mxu0 %vm5955_vm0, %v8050_v23 }
  0x9b   :  { %8079 = vst [vmem:[#allocation51_spill] sm:$0xff] %v6670_v13  ;;  %v720_v12 = vand.u32 4294901760, %v719_v8  ;;  %v739_v8 = vsub.f32 %v6675_v19, %v738_v20  ;;  %8083 = vst [vmem:[#allocation55_spill] sm:$0xff] %v6703_v22 }
  0x9d   :  { %4111 = vmatmul.mubr.f32.gmra.mrb[68].mxu1 %v700_v40  ;;  %4726 = vmatmul.mubr.f32.gmra.mrb[68].mxu0 %v698_v58  ;;  %v56_v58 = vld [vmem:[%s7901_s0 + $0x148] sm:$0xff]  ;;  %v6686_v40 = vsub.f32 %v212_v1, %v6670_v13  ;;  %v57_v1 = vld [vmem:[%s7901_s0 + $0x150] sm:$0xff]  ;;  %v740_v41 = vand.u32 4294901760, %v739_v8 }
  0x9e   :  { %4113 = vmatprep.mubr.msk.f32.mxu1 %vm5955_vm0, %v8050_v23  ;;  %4728 = vmatprep.mubr.msk.f32.mxu0 %vm5955_vm0, %v8050_v23  ;;  %v218_v48 = vsel %vm93_vm1, %v56_v58, 0  ;;  %v221_v58 = vsel %vm93_vm1, %v57_v1, 0  ;;  %v59_v1 = vld [vmem:[%s7901_s0 + $0x160] sm:$0xff] }
  0x9f   :  { %8081 = vst [vmem:[#allocation53_spill] sm:$0xff] %v6686_v40  ;;  %v6705_v13 = vand.u32 4294901760, %v218_v48  ;;  %v6720_v54 = vand.u32 4294901760, %v221_v58  ;;  %v227_v8 = vsel %vm93_vm1, %v59_v1, 0 }
  0xa1   :  { %4114 = vmatmul.mubr.f32.gmra.mrb[70].mxu1 %v710_v57  ;;  %4729 = vmatmul.mubr.f32.gmra.mrb[70].mxu0 %v708_v45  ;;  %v748_v45 = vand.u32 4294901760, %v6686_v40  ;;  %v730_v57 = vand.u32 4294901760, %v729_v62  ;;  %8084 = vst [vmem:[#allocation56_spill] sm:$0xff] %v6705_v13  ;;  %v758_v62 = vand.u32 4294901760, %v6703_v22  ;;  %v6718_v19 = vsub.f32 %v218_v48, %v6705_v13  ;;  %8086 = vst [vmem:[#allocation58_spill] sm:$0xff] %v6720_v54 }
  0xa2   :  { %4116 = vmatprep.mubr.msk.f32.mxu1 %vm5955_vm0, %v8050_v23  ;;  %4731 = vmatprep.mubr.msk.f32.mxu0 %vm5955_vm0, %v8050_v23  ;;  %v6734_v13 = vsub.f32 %v221_v58, %v6720_v54 }
  0xa3   :  { %8085 = vst [vmem:[#allocation57_spill] sm:$0xff] %v6718_v19  ;;  %v759_v48 = vsub.f32 %v6703_v22, %v758_v62  ;;  %v61_v22 = vld [vmem:[%s7901_s0 + $0x170] sm:$0xff] }
  0xa4   :  { %8087 = vst [vmem:[#allocation59_spill] sm:$0xff] %v6734_v13 }
  0xa5   :  { %4117 = vmatmul.mubr.f32.gmra.mrb[72].mxu1 %v720_v12  ;;  %4732 = vmatmul.mubr.f32.gmra.mrb[72].mxu0 %v718_v43  ;;  %v58_v43 = vld [vmem:[%s7901_s0 + $0x158] sm:$0xff]  ;;  %v749_v12 = vsub.f32 %v6686_v40, %v748_v45  ;;  %v768_v40 = vand.u32 4294901760, %v6718_v19 }
  0xa6   :  { %4119 = vmatprep.mubr.msk.f32.mxu1 %vm5955_vm0, %v8050_v23  ;;  %4734 = vmatprep.mubr.msk.f32.mxu0 %vm5955_vm0, %v8050_v23 }
  0xa7   :  { %v769_v58 = vsub.f32 %v6718_v19, %v768_v40 }
  0xa9   :  { %4120 = vmatmul.mubr.f32.gmra.mrb[74].mxu1 %v730_v57  ;;  %4735 = vmatmul.mubr.f32.gmra.mrb[74].mxu0 %v728_v2  ;;  %v224_v2 = vsel %vm93_vm1, %v58_v43, 0  ;;  %v750_v57 = vand.u32 4294901760, %v749_v12  ;;  %v60_v43 = vld [vmem:[%s7901_s0 + $0x168] sm:$0xff]  ;;  %v760_v12 = vand.u32 4294901760, %v759_v48  ;;  %v233_v48 = vsel %vm93_vm1, %v61_v22, 0 }
  0xaa   :  { %4122 = vmatprep.mubr.msk.f32.mxu1 %vm5955_vm0, %v8050_v23  ;;  %4737 = vmatprep.mubr.msk.f32.mxu0 %vm5955_vm0, %v8050_v23  ;;  %v6736_v36 = vand.u32 4294901760, %v224_v2  ;;  %v6775_v22 = vand.u32 4294901760, %v233_v48 }
  0xac   :  { %8088 = vst [vmem:[#allocation60_spill] sm:$0xff] %v6736_v36  ;;  %v6750_v1 = vsub.f32 %v224_v2, %v6736_v36  ;;  %v770_v2 = vand.u32 4294901760, %v769_v58  ;;  %8092 = vst [vmem:[#allocation64_spill] sm:$0xff] %v6775_v22 }
  0xad   :  { %4123 = vmatmul.mubr.f32.gmra.mrb[76].mxu1 %v740_v41  ;;  %4738 = vmatmul.mubr.f32.gmra.mrb[76].mxu0 %v738_v20  ;;  %v6745_v20 = vand.u32 4294901760, %v227_v8  ;;  %v778_v41 = vand.u32 4294901760, %v6734_v13 }
  0xae   :  { %4125 = vmatprep.mubr.msk.f32.mxu1 %vm5955_vm0, %v8050_v23  ;;  %4740 = vmatprep.mubr.msk.f32.mxu0 %vm5955_vm0, %v8050_v23  ;;  %8089 = vst [vmem:[#allocation61_spill] sm:$0xff] %v6750_v1  ;;  %v788_v36 = vand.u32 4294901760, %v6750_v1 }
  0xaf   :  { %v779_v19 = vsub.f32 %v6734_v13, %v778_v41 }
  0xb1   :  { %4126 = vmatmul.mubr.f32.gmra.mrb[78].mxu1 %v750_v57  ;;  %4741 = vmatmul.mubr.f32.gmra.mrb[78].mxu0 %v748_v45  ;;  %v230_v45 = vsel %vm93_vm1, %v60_v43, 0  ;;  %v6761_v57 = vsub.f32 %v227_v8, %v6745_v20  ;;  %v780_v8 = vand.u32 4294901760, %v779_v19  ;;  %v789_v43 = vsub.f32 %v6750_v1, %v788_v36 }
  0xb2   :  { %4128 = vmatprep.mubr.msk.f32.mxu1 %vm5955_vm0, %v8050_v23  ;;  %4743 = vmatprep.mubr.msk.f32.mxu0 %vm5955_vm0, %v8050_v23  ;;  %v6766_v54 = vand.u32 4294901760, %v230_v45 }
  0xb3   :  { %8090 = vst [vmem:[#allocation62_spill] sm:$0xff] %v6761_v57 }
  0xb4   :  { %8091 = vst [vmem:[#allocation63_spill] sm:$0xff] %v6766_v54  ;;  %v6781_v58 = vsub.f32 %v230_v45, %v6766_v54 }
  0xb5   :  { %4129 = vmatmul.mubr.f32.gmra.mrb[80].mxu1 %v760_v12  ;;  %4744 = vmatmul.mubr.f32.gmra.mrb[80].mxu0 %v758_v62  ;;  %v236_v62 = vsel %vm93_vm1, %v62_v34, 0  ;;  %v798_v12 = vand.u32 4294901760, %v6761_v57  ;;  %v63_v34 = vld [vmem:[%s7901_s0 + $0x180] sm:$0xff] }
  0xb6   :  { %4131 = vmatprep.mubr.msk.f32.mxu1 %vm5955_vm0, %v8050_v23  ;;  %4746 = vmatprep.mubr.msk.f32.mxu0 %vm5955_vm0, %v8050_v23  ;;  %8093 = vst [vmem:[#allocation65_spill] sm:$0xff] %v6781_v58  ;;  %v6793_v19 = vand.u32 4294901760, %v236_v62  ;;  %v808_v1 = vand.u32 4294901760, %v6781_v58  ;;  %v239_v13 = vsel %vm93_vm1, %v63_v34, 0 }
  0xb7   :  { %v799_v45 = vsub.f32 %v6761_v57, %v798_v12 }
  0xb8   :  { %8095 = vst [vmem:[#allocation67_spill] sm:$0xff] %v6793_v19  ;;  %v809_v57 = vsub.f32 %v6781_v58, %v808_v1 }
  0xb9   :  { %4132 = vmatmul.mubr.f32.gmra.mrb[82].mxu1 %v770_v2  ;;  %4747 = vmatmul.mubr.f32.gmra.mrb[82].mxu0 %v768_v40  ;;  %v6791_v40 = vsub.f32 %v233_v48, %v6775_v22  ;;  %v790_v2 = vand.u32 4294901760, %v789_v43  ;;  %v64_v48 = vld [vmem:[%s7901_s0 + $0x188] sm:$0xff]  ;;  %v800_v43 = vand.u32 4294901760, %v799_v45  ;;  %v6810_v22 = vand.u32 4294901760, %v239_v13 }
  0xba   :  { %4134 = vmatprep.mubr.msk.f32.mxu1 %vm5955_vm0, %v8050_v23  ;;  %4749 = vmatprep.mubr.msk.f32.mxu0 %vm5955_vm0, %v8050_v23  ;;  %v242_v34 = vsel %vm93_vm1, %v64_v48, 0  ;;  %v810_v45 = vand.u32 4294901760, %v809_v57 }
  0xbb   :  { %8094 = vst [vmem:[#allocation66_spill] sm:$0xff] %v6791_v40  ;;  %8097 = vst [vmem:[#allocation69_spill] sm:$0xff] %v6810_v22  ;;  %v6823_v58 = vsub.f32 %v239_v13, %v6810_v22 }
  0xbd   :  { %4135 = vmatmul.mubr.f32.gmra.mrb[84].mxu1 %v780_v8  ;;  %4750 = vmatmul.mubr.f32.gmra.mrb[84].mxu0 %v778_v41  ;;  %v818_v8 = vand.u32 4294901760, %v6791_v40  ;;  %v6807_v41 = vsub.f32 %v236_v62, %v6793_v19  ;;  %v65_v62 = vld [vmem:[%s7901_s0 + $0x190] sm:$0xff]  ;;  %8098 = vst [vmem:[#allocation70_spill] sm:$0xff] %v6823_v58  ;;  %v6825_v19 = vand.u32 4294901760, %v242_v34  ;;  %v838_v13 = vand.u32 4294901760, %v6823_v58 }
  0xbe   :  { %4137 = vmatprep.mubr.msk.f32.mxu1 %vm5955_vm0, %v8050_v23  ;;  %4752 = vmatprep.mubr.msk.f32.mxu0 %vm5955_vm0, %v8050_v23  ;;  %v245_v48 = vsel %vm93_vm1, %v65_v62, 0  ;;  %v67_v62 = vld [vmem:[%s7901_s0 + $0x1a0] sm:$0xff] }
  0xbf   :  { %8096 = vst [vmem:[#allocation68_spill] sm:$0xff] %v6807_v41  ;;  %8099 = vst [vmem:[#allocation71_spill] sm:$0xff] %v6825_v19  ;;  %v6840_v22 = vand.u32 4294901760, %v245_v48 }
  0xc1   :  { %4138 = vmatmul.mubr.f32.gmra.mrb[86].mxu1 %v790_v2  ;;  %4753 = vmatmul.mubr.f32.gmra.mrb[86].mxu0 %v788_v36  ;;  %v819_v2 = vsub.f32 %v6791_v40, %v818_v8  ;;  %v828_v36 = vand.u32 4294901760, %v6807_v41  ;;  %v66_v40 = vld [vmem:[%s7901_s0 + $0x198] sm:$0xff]  ;;  %8101 = vst [vmem:[#allocation73_spill] sm:$0xff] %v6840_v22 }
  0xc2   :  { %4140 = vmatprep.mubr.msk.f32.mxu1 %vm5955_vm0, %v8050_v23  ;;  %4755 = vmatprep.mubr.msk.f32.mxu0 %vm5955_vm0, %v8050_v23  ;;  %v248_v54 = vsel %vm93_vm1, %v66_v40, 0  ;;  %v6855_v40 = vsub.f32 %v245_v48, %v6840_v22 }
  0xc3   :  { %v829_v57 = vsub.f32 %v6807_v41, %v828_v36  ;;  %v251_v41 = vsel %vm93_vm1, %v67_v62, 0 }
  0xc4   :  { %8103 = vst [vmem:[#allocation75_spill] sm:$0xff] %v6855_v40 }
  0xc5   :  { %4141 = vmatmul.mubr.f32.gmra.mrb[88].mxu1 %v800_v43  ;;  %4756 = vmatmul.mubr.f32.gmra.mrb[88].mxu0 %v798_v12  ;;  %v820_v43 = vand.u32 4294901760, %v819_v2  ;;  %v6838_v12 = vsub.f32 %v242_v34, %v6825_v19  ;;  %v6850_v2 = vand.u32 4294901760, %v248_v54  ;;  %v839_v34 = vsub.f32 %v6823_v58, %v838_v13 }
  0xc6   :  { %4143 = vmatprep.mubr.msk.f32.mxu1 %vm5955_vm0, %v8050_v23  ;;  %4758 = vmatprep.mubr.msk.f32.mxu0 %vm5955_vm0, %v8050_v23  ;;  %v858_v58 = vand.u32 4294901760, %v6855_v40 }
  0xc7   :  { %8100 = vst [vmem:[#allocation72_spill] sm:$0xff] %v6838_v12  ;;  %8102 = vst [vmem:[#allocation74_spill] sm:$0xff] %v6850_v2  ;;  %v840_v48 = vand.u32 4294901760, %v839_v34 }
  0xc9   :  { %4144 = vmatmul.mubr.f32.gmra.mrb[90].mxu1 %v810_v45  ;;  %4759 = vmatmul.mubr.f32.gmra.mrb[90].mxu0 %v808_v1  ;;  %v830_v1 = vand.u32 4294901760, %v829_v57  ;;  %v848_v45 = vand.u32 4294901760, %v6838_v12  ;;  %v6868_v57 = vand.u32 4294901760, %v251_v41 }
  0xca   :  { %4146 = vmatprep.mubr.msk.f32.mxu1 %vm5955_vm0, %v8050_v23  ;;  %4761 = vmatprep.mubr.msk.f32.mxu0 %vm5955_vm0, %v8050_v23 }
  0xcb   :  { %8105 = vst [vmem:[#allocation77_spill] sm:$0xff] %v6868_v57  ;;  %v849_v62 = vsub.f32 %v6838_v12, %v848_v45 }
  0xcd   :  { %4147 = vmatmul.mubr.f32.gmra.mrb[92].mxu1 %v820_v43  ;;  %4762 = vmatmul.mubr.f32.gmra.mrb[92].mxu0 %v818_v8  ;;  %v68_v43 = vld [vmem:[%s7901_s0 + $0x1a8] sm:$0xff]  ;;  %v6866_v8 = vsub.f32 %v248_v54, %v6850_v2  ;;  %v69_v54 = vld [vmem:[%s7901_s0 + $0x1b0] sm:$0xff]  ;;  %v850_v34 = vand.u32 4294901760, %v849_v62 }
  0xce   :  { %4149 = vmatprep.mubr.msk.f32.mxu1 %vm5955_vm0, %v8050_v23  ;;  %4764 = vmatprep.mubr.msk.f32.mxu0 %vm5955_vm0, %v8050_v23  ;;  %v254_v22 = vsel %vm93_vm1, %v68_v43, 0  ;;  %v859_v43 = vsub.f32 %v6855_v40, %v858_v58  ;;  %v257_v2 = vsel %vm93_vm1, %v69_v54, 0 }
  0xcf   :  { %8104 = vst [vmem:[#allocation76_spill] sm:$0xff] %v6866_v8  ;;  %v868_v12 = vand.u32 4294901760, %v6866_v8 }
  0xd0   :  { %v860_v62 = vand.u32 4294901760, %v859_v43 }
  0xd1   :  { %4150 = vmatmul.mubr.f32.gmra.mrb[94].mxu1 %v830_v1  ;;  %4765 = vmatmul.mubr.f32.gmra.mrb[94].mxu0 %v828_v36  ;;  %v6881_v1 = vsub.f32 %v251_v41, %v6868_v57  ;;  %v6883_v36 = vand.u32 4294901760, %v254_v22  ;;  %v70_v41 = vld [vmem:[%s7901_s0 + $0x1b8] sm:$0xff]  ;;  %v869_v54 = vsub.f32 %v6866_v8, %v868_v12 }
  0xd2   :  { %4152 = vmatprep.mubr.msk.f32.mxu1 %vm5955_vm0, %v8050_v23  ;;  %4767 = vmatprep.mubr.msk.f32.mxu0 %vm5955_vm0, %v8050_v23  ;;  %v260_v57 = vsel %vm93_vm1, %v70_v41, 0 }
  0xd3   :  { %8106 = vst [vmem:[#allocation78_spill] sm:$0xff] %v6881_v1  ;;  %8107 = vst [vmem:[#allocation79_spill] sm:$0xff] %v6883_v36  ;;  %v878_v40 = vand.u32 4294901760, %v6881_v1  ;;  %v870_v43 = vand.u32 4294901760, %v869_v54 }
  0xd5   :  { %4153 = vmatmul.mubr.f32.gmra.mrb[96].mxu1 %v840_v48  ;;  %4768 = vmatmul.mubr.f32.gmra.mrb[96].mxu0 %v838_v13  ;;  %v6896_v48 = vsub.f32 %v254_v22, %v6883_v36  ;;  %v6898_v13 = vand.u32 4294901760, %v257_v2  ;;  %v71_v22 = vld [vmem:[%s7901_s0 + $0x1c0] sm:$0xff]  ;;  %v879_v8 = vsub.f32 %v6881_v1, %v878_v40  ;;  %v6915_v36 = vand.u32 4294901760, %v260_v57 }
  0xd6   :  { %4155 = vmatprep.mubr.msk.f32.mxu1 %vm5955_vm0, %v8050_v23  ;;  %4770 = vmatprep.mubr.msk.f32.mxu0 %vm5955_vm0, %v8050_v23  ;;  %v263_v41 = vsel %vm93_vm1, %v71_v22, 0 }
  0xd7   :  { %8108 = vst [vmem:[#allocation80_spill] sm:$0xff] %v6896_v48  ;;  %8109 = vst [vmem:[#allocation81_spill] sm:$0xff] %v6898_v13  ;;  %v880_v54 = vand.u32 4294901760, %v879_v8  ;;  %v6928_v1 = vsub.f32 %v260_v57, %v6915_v36 }
  0xd8   :  { %8111 = vst [vmem:[#allocation83_spill] sm:$0xff] %v6915_v36 }
  0xd9   :  { %4156 = vmatmul.mubr.f32.gmra.mrb[98].mxu1 %v850_v34  ;;  %4771 = vmatmul.mubr.f32.gmra.mrb[98].mxu0 %v848_v45  ;;  %v888_v34 = vand.u32 4294901760, %v6896_v48  ;;  %v6912_v45 = vsub.f32 %v257_v2, %v6898_v13  ;;  %v72_v2 = vld [vmem:[%s7901_s0 + $0x1c8] sm:$0xff]  ;;  %8112 = vst [vmem:[#allocation84_spill] sm:$0xff] %v6928_v1  ;;  %v6930_v13 = vand.u32 4294901760, %v263_v41  ;;  %v908_v8 = vand.u32 4294901760, %v6928_v1 }
  0xda   :  { %4158 = vmatprep.mubr.msk.f32.mxu1 %vm5955_vm0, %v8050_v23  ;;  %4773 = vmatprep.mubr.msk.f32.mxu0 %vm5955_vm0, %v8050_v23  ;;  %v266_v22 = vsel %vm93_vm1, %v72_v2, 0  ;;  %v74_v2 = vld [vmem:[%s7901_s0 + $0x1d8] sm:$0xff] }
  0xdb   :  { %8110 = vst [vmem:[#allocation82_spill] sm:$0xff] %v6912_v45  ;;  %8113 = vst [vmem:[#allocation85_spill] sm:$0xff] %v6930_v13  ;;  %v6943_v57 = vsub.f32 %v263_v41, %v6930_v13  ;;  %v6945_v36 = vand.u32 4294901760, %v266_v22 }
  0xdd   :  { %4159 = vmatmul.mubr.f32.gmra.mrb[100].mxu1 %v860_v62  ;;  %4774 = vmatmul.mubr.f32.gmra.mrb[100].mxu0 %v858_v58  ;;  %v889_v62 = vsub.f32 %v6896_v48, %v888_v34  ;;  %v898_v58 = vand.u32 4294901760, %v6912_v45  ;;  %v73_v48 = vld [vmem:[%s7901_s0 + $0x1d0] sm:$0xff]  ;;  %8114 = vst [vmem:[#allocation86_spill] sm:$0xff] %v6943_v57  ;;  %8115 = vst [vmem:[#allocation87_spill] sm:$0xff] %v6945_v36 }
  0xde   :  { %4161 = vmatprep.mubr.msk.f32.mxu1 %vm5955_vm0, %v8050_v23  ;;  %4776 = vmatprep.mubr.msk.f32.mxu0 %vm5955_vm0, %v8050_v23  ;;  %v269_v19 = vsel %vm93_vm1, %v73_v48, 0  ;;  %v6960_v48 = vsub.f32 %v266_v22, %v6945_v36 }
  0xe0   :  { %8117 = vst [vmem:[#allocation89_spill] sm:$0xff] %v6960_v48 }
  0xe1   :  { %4162 = vmatmul.mubr.f32.gmra.mrb[102].mxu1 %v870_v43  ;;  %4777 = vmatmul.mubr.f32.gmra.mrb[102].mxu0 %v868_v12  ;;  %v890_v43 = vand.u32 4294901760, %v889_v62  ;;  %v899_v12 = vsub.f32 %v6912_v45, %v898_v58  ;;  %v909_v62 = vsub.f32 %v6928_v1, %v908_v8  ;;  %v272_v45 = vsel %vm93_vm1, %v74_v2, 0 }
  0xe2   :  { %4164 = vmatprep.mubr.msk.f32.mxu1 %vm5955_vm0, %v8050_v23  ;;  %4779 = vmatprep.mubr.msk.f32.mxu0 %vm5955_vm0, %v8050_v23  ;;  %v928_v1 = vand.u32 4294901760, %v6960_v48  ;;  %v6975_v36 = vand.u32 4294901760, %v272_v45 }
  0xe3   :  { %v900_v41 = vand.u32 4294901760, %v899_v12  ;;  %v910_v12 = vand.u32 4294901760, %v909_v62 }
  0xe4   :  { %8119 = vst [vmem:[#allocation91_spill] sm:$0xff] %v6975_v36  ;;  %v929_v62 = vsub.f32 %v6960_v48, %v928_v1 }
  0xe5   :  { %4165 = vmatmul.mubr.f32.gmra.mrb[104].mxu1 %v880_v54  ;;  %4780 = vmatmul.mubr.f32.gmra.mrb[104].mxu0 %v878_v40  ;;  %v6955_v40 = vand.u32 4294901760, %v269_v19  ;;  %v918_v54 = vand.u32 4294901760, %v6943_v57 }
  0xe6   :  { %4167 = vmatprep.mubr.msk.f32.mxu1 %vm5955_vm0, %v8050_v23  ;;  %4782 = vmatprep.mubr.msk.f32.mxu0 %vm5955_vm0, %v8050_v23 }
  0xe7   :  { %8116 = vst [vmem:[#allocation88_spill] sm:$0xff] %v6955_v40  ;;  %v919_v22 = vsub.f32 %v6943_v57, %v918_v54  ;;  %v6988_v57 = vsub.f32 %v272_v45, %v6975_v36  ;;  %v930_v45 = vand.u32 4294901760, %v929_v62 }
  0xe9   :  { %4168 = vmatmul.mubr.f32.gmra.mrb[106].mxu1 %v890_v43  ;;  %4783 = vmatmul.mubr.f32.gmra.mrb[106].mxu0 %v888_v34  ;;  %v75_v34 = vld [vmem:[%s7901_s0 + $0x1e0] sm:$0xff]  ;;  %v6971_v43 = vsub.f32 %v269_v19, %v6955_v40  ;;  %v76_v19 = vld [vmem:[%s7901_s0 + $0x1e8] sm:$0xff]  ;;  %8120 = vst [vmem:[#allocation92_spill] sm:$0xff] %v6988_v57 }
  0xea   :  { %4170 = vmatprep.mubr.msk.f32.mxu1 %vm5955_vm0, %v8050_v23  ;;  %4785 = vmatprep.mubr.msk.f32.mxu0 %vm5955_vm0, %v8050_v23  ;;  %v275_v2 = vsel %vm93_vm1, %v75_v34, 0  ;;  %v278_v34 = vsel %vm93_vm1, %v76_v19, 0 }
  0xeb   :  { %8118 = vst [vmem:[#allocation90_spill] sm:$0xff] %v6971_v43  ;;  %v6990_v40 = vand.u32 4294901760, %v275_v2  ;;  %v7005_v36 = vand.u32 4294901760, %v278_v34 }
  0xed   :  { %4171 = vmatmul.mubr.f32.gmra.mrb[108].mxu1 %v900_v41  ;;  %4786 = vmatmul.mubr.f32.gmra.mrb[108].mxu0 %v898_v58  ;;  %v938_v58 = vand.u32 4294901760, %v6971_v43  ;;  %v920_v41 = vand.u32 4294901760, %v919_v22  ;;  %8121 = vst [vmem:[#allocation93_spill] sm:$0xff] %v6990_v40  ;;  %v948_v22 = vand.u32 4294901760, %v6988_v57  ;;  %v7003_v48 = vsub.f32 %v275_v2, %v6990_v40  ;;  %8123 = vst [vmem:[#allocation95_spill] sm:$0xff] %v7005_v36 }
  0xee   :  { %4173 = vmatprep.mubr.msk.f32.mxu1 %vm5955_vm0, %v8050_v23  ;;  %4788 = vmatprep.mubr.msk.f32.mxu0 %vm5955_vm0, %v8050_v23  ;;  %v7015_v2 = vsub.f32 %v278_v34, %v7005_v36 }
  0xef   :  { %8122 = vst [vmem:[#allocation94_spill] sm:$0xff] %v7003_v48 }
  0xf0   :  { %8124 = vst [vmem:[#allocation96_spill] sm:$0xff] %v7015_v2 }
  0xf1   :  { %4174 = vmatmul.mubr.f32.gmra.mrb[110].mxu1 %v910_v12  ;;  %4789 = vmatmul.mubr.f32.gmra.mrb[110].mxu0 %v908_v8  ;;  %v77_v8 = vld [vmem:[%s7901_s0 + $0x1f0] sm:$0xf]  ;;  %v939_v12 = vsub.f32 %v6971_v43, %v938_v58  ;;  %v8154_v43 = vld [vmem:[#allocation91_spill] sm:$0xff] }
  0xf2   :  { %4176 = vmatprep.mubr.msk.f32.mxu1 %vm5955_vm0, %v8050_v23  ;;  %4791 = vmatprep.mubr.msk.f32.mxu0 %vm5955_vm0, %v8050_v23  ;;  %v281_v19 = vsel %vm93_vm1, %v77_v8, 0 }
  0xf3   :  { %v940_v13 = vand.u32 4294901760, %v939_v12  ;;  %v7017_v62 = vand.u32 4294901760, %v281_v19  ;;  %v968_v12 = vand.u32 4294901760, %v7015_v2 }
  0xf5   :  { %4177 = vmatmul.mubr.f32.gmra.mrb[112].mxu1 %v920_v41  ;;  %4792 = vmatmul.mubr.f32.gmra.mrb[112].mxu0 %v918_v54  ;;  %v949_v54 = vsub.f32 %v6988_v57, %v948_v22  ;;  %v958_v41 = vand.u32 4294901760, %v7003_v48  ;;  %8125 = vst [vmem:[#allocation97_spill] sm:$0xff] %v7017_v62  ;;  %v8153_v57 = vld [vmem:[#allocation88_spill] sm:$0xff] }
  0xf6   :  { %4179 = vmatprep.mubr.msk.f32.mxu1 %vm5955_vm0, %v8050_v23  ;;  %4794 = vmatprep.mubr.msk.f32.mxu0 %vm5955_vm0, %v8050_v23 }
  0xf7   :  { %v950_v8 = vand.u32 4294901760, %v949_v54 }
  0xf9   :  { %4180 = vmatmul.mubr.f32.gmra.mrb[114].mxu1 %v930_v45  ;;  %4795 = vmatmul.mubr.f32.gmra.mrb[114].mxu0 %v928_v1  ;;  %v959_v1 = vsub.f32 %v7003_v48, %v958_v41  ;;  %v7026_v45 = vsub.f32 %v281_v19, %v7017_v62  ;;  %v8152_v48 = vld [vmem:[#allocation87_spill] sm:$0xff] }
  0xfa   :  { %4182 = vmatprep.mubr.msk.f32.mxu1 %vm5955_vm0, %v8050_v23  ;;  %4797 = vmatprep.mubr.msk.f32.mxu0 %vm5955_vm0, %v8050_v23 }
  0xfb   :  { %8126 = vst [vmem:[#allocation98_spill] sm:$0xff] %v7026_v45  ;;  %v960_v34 = vand.u32 4294901760, %v959_v1  ;;  %v8138_v1 = vld [vmem:[#allocation58_spill] sm:$0xff] }
  0xfd   :  { %4183 = vmatmul.mubr.f32.gmra.mrb[116].mxu1 %v940_v13  ;;  %4798 = vmatmul.mubr.f32.gmra.mrb[116].mxu0 %v938_v58  ;;  %v969_v13 = vsub.f32 %v7015_v2, %v968_v12  ;;  %v978_v58 = vand.u32 4294901760, %v7026_v45  ;;  %v8151_v2 = vld [vmem:[#allocation85_spill] sm:$0xff] }
  0xfe   :  { %4185 = vmatprep.mubr.msk.f32.mxu1 %vm5955_vm0, %v8050_v23  ;;  %4800 = vmatprep.mubr.msk.f32.mxu0 %vm5955_vm0, %v8050_v23 }
  0xff   :  { %v970_v19 = vand.u32 4294901760, %v969_v13  ;;  %v979_v54 = vsub.f32 %v7026_v45, %v978_v58  ;;  %v8141_v13 = vld [vmem:[#allocation64_spill] sm:$0xff]  ;;  %v8150_v45 = vld [vmem:[#allocation83_spill] sm:$0xff] }
 0x101   :  { %4186 = vmatmul.mubr.f32.gmra.mrb[118].mxu1 %v950_v8  ;;  %4801 = vmatmul.mubr.f32.gmra.mrb[118].mxu0 %v948_v22  ;;  %v980_v22 = vand.u32 4294901760, %v979_v54  ;;  %v5250_v8 = vpack.c.bf16 %v6164_v29, %v6155_v26  ;;  %v8133_v26 = vld [vmem:[#allocation48_spill] sm:$0xff]  ;;  %v8134_v29 = vld [vmem:[#allocation49_spill] sm:$0xff]  ;;  %v8144_v54 = vld [vmem:[#allocation71_spill] sm:$0xff] }
 0x102   :  { %4188 = vmatprep.mubr.msk.f32.mxu1 %vm5955_vm0, %v8050_v23  ;;  %4803 = vmatprep.mubr.msk.f32.mxu0 %vm5955_vm0, %v8050_v23 }
 0x105   :  { %4189 = vmatmul.mubr.f32.gmra.mrb[120].mxu1 %v960_v34  ;;  %4804 = vmatmul.mubr.f32.gmra.mrb[120].mxu0 %v958_v41  ;;  %v5247_v41 = vpack.c.bf16 %v6024_v16, %v6022_v15  ;;  %v5256_v15 = vpack.c.bf16 %v6056_v31, %v6054_v30  ;;  %v8127_v16 = vld [vmem:[#allocation35_spill] sm:$0xff]  ;;  %v8129_v30 = vld [vmem:[#allocation40_spill] sm:$0xff]  ;;  %v8130_v31 = vld [vmem:[#allocation42_spill] sm:$0xff] }
 0x106   :  { %4191 = vmatprep.mubr.msk.f32.mxu1 %vm5955_vm0, %v8050_v23  ;;  %4806 = vmatprep.mubr.msk.f32.mxu0 %vm5955_vm0, %v8050_v23  ;;  %v8140_v34 = vld [vmem:[#allocation63_spill] sm:$0xff] }
 0x109   :  { %4192 = vmatmul.mubr.f32.gmra.mrb[122].mxu1 %v970_v19  ;;  %4807 = vmatmul.mubr.f32.gmra.mrb[122].mxu0 %v968_v12  ;;  %v8139_v12 = vld [vmem:[#allocation60_spill] sm:$0xff]  ;;  %v8143_v19 = vld [vmem:[#allocation69_spill] sm:$0xff] }
 0x10a   :  { %4194 = vmatprep.mubr.msk.f32.mxu1 %vm5955_vm0, %v8050_v23  ;;  %4809 = vmatprep.mubr.msk.f32.mxu0 %vm5955_vm0, %v8050_v23 }
 0x10d   :  { %4195 = vmatmul.mubr.f32.gmra.mrb[124].mxu1 %v980_v22  ;;  %4810 = vmatmul.mubr.f32.gmra.mrb[124].mxu0 %v978_v58  ;;  %v8142_v58 = vld [vmem:[#allocation67_spill] sm:$0xff]  ;;  %v8145_v22 = vld [vmem:[#allocation73_spill] sm:$0xff] }
 0x10e   :  { %4213 = vmatprep.mubr.msk.f32.mxu1 %vm5955_vm0, %v8050_v23  ;;  %4828 = vmatprep.mubr.msk.f32.mxu0 %vm5955_vm0, %v8050_v23 }
 0x111   :  { %4214 = vmatmul.mubr.f32.vlgmr.msra.gmra.mrb[0].mxu1 %v6058_v32  ;;  %4829 = vmatmul.mubr.f32.vlgmr.msra.gmra.mrb[0].mxu0 %v6058_v32 }
 0x112   :  { %5248 = vmatpush3.bf16.msra.mxu1 %v5247_v41  ;;  %4216 = vmatprep.mubr.msk.f32.mxu1 %vm5955_vm0, %v8050_v23  ;;  %v8146_v41 = vld [vmem:[#allocation74_spill] sm:$0xff] }
 0x113   :  { %4831 = vmatprep.mubr.msk.f32.mxu0 %vm5955_vm0, %v8050_v23  ;;  %5284 = vmatpush3.bf16.msra.mxu0 %v6020_v14  ;;  %v5253_v14 = vpack.c.bf16 %v6266_v56, %v6261_v55  ;;  %v8135_v55 = vld [vmem:[#allocation51_spill] sm:$0xff]  ;;  %v8136_v56 = vld [vmem:[#allocation54_spill] sm:$0xff] }
 0x114   :  { %5249 = vmatprep.subr.bf16.mxu1 %v8054_v52  ;;  %5285 = vmatprep.subr.bf16.mxu0 %v8054_v52 }
 0x115   :  { %4217 = vmatmul.mubr.f32.gmra.mrb[2].mxu1 %v6067_v35  ;;  %4832 = vmatmul.mubr.f32.gmra.mrb[2].mxu0 %v6067_v35 }
 0x116   :  { %4219 = vmatprep.mubr.msk.f32.mxu1 %vm5955_vm0, %v8050_v23  ;;  %4834 = vmatprep.mubr.msk.f32.mxu0 %vm5955_vm0, %v8050_v23 }
 0x117   :  { %5251 = vmatpush3.bf16.msra.mxu1 %v5250_v8  ;;  %5287 = vmatpush3.bf16.msra.mxu0 %v6040_v21  ;;  %v8128_v21 = vld [vmem:[#allocation38_spill] sm:$0xff]  ;;  %v8147_v8 = vld [vmem:[#allocation77_spill] sm:$0xff] }
 0x118   :  { %5252 = vmatprep.subr.bf16.mxu1 %v8054_v52  ;;  %5288 = vmatprep.subr.bf16.mxu0 %v8054_v52 }
 0x119   :  { %4220 = vmatmul.mubr.f32.gmra.mrb[4].mxu1 %v6085_v42  ;;  %4835 = vmatmul.mubr.f32.gmra.mrb[4].mxu0 %v6085_v42 }
 0x11a   :  { %4222 = vmatprep.mubr.msk.f32.mxu1 %vm5955_vm0, %v8050_v23  ;;  %4837 = vmatprep.mubr.msk.f32.mxu0 %vm5955_vm0, %v8050_v23 }
 0x11b   :  { %5254 = vmatpush3.bf16.msra.mxu1 %v5253_v14  ;;  %5290 = vmatpush3.bf16.msra.mxu0 %v6064_v33  ;;  %v8131_v33 = vld [vmem:[#allocation44_spill] sm:$0xff]  ;;  %v8148_v14 = vld [vmem:[#allocation79_spill] sm:$0xff] }
 0x11c   :  { %5255 = vmatprep.subr.bf16.mxu1 %v8054_v52  ;;  %5291 = vmatprep.subr.bf16.mxu0 %v8054_v52  ;;  %v8137_v52 = vld [vmem:[#allocation56_spill] sm:$0xff] }
 0x11d   :  { %4223 = vmatmul.mubr.f32.gmra.mrb[6].mxu1 %v6092_v46  ;;  %4838 = vmatmul.mubr.f32.gmra.mrb[6].mxu0 %v6092_v46 }
 0x11e   :  { %4225 = vmatprep.mubr.msk.f32.mxu1 %vm5955_vm0, %v8050_v23  ;;  %4840 = vmatprep.mubr.msk.f32.mxu0 %vm5955_vm0, %v8050_v23 }
 0x11f   :  { %5293 = vmatpush3.bf16.msra.mxu0 %v6100_v49  ;;  %5257 = vmatpush3.bf16.msra.mxu1 %v5256_v15  ;;  %v8132_v49 = vld [vmem:[#allocation45_spill] sm:$0xff] }
 0x120   :  { %v8149_v15 = vld [vmem:[#allocation81_spill] sm:$0xff] }
 0x121   :  { %4226 = vmatmul.mubr.f32.gmra.mrb[8].mxu1 %v6105_v53  ;;  %4841 = vmatmul.mubr.f32.gmra.mrb[8].mxu0 %v6105_v53 }
 0x122   :  { %4228 = vmatprep.mubr.msk.f32.mxu1 %vm5955_vm0, %v8050_v23  ;;  %4843 = vmatprep.mubr.msk.f32.mxu0 %vm5955_vm0, %v8050_v23 }
 0x125   :  { %4229 = vmatmul.mubr.f32.gmra.mrb[10].mxu1 %v6123_v63  ;;  %4844 = vmatmul.mubr.f32.gmra.mrb[10].mxu0 %v6123_v63 }
 0x126   :  { %4231 = vmatprep.mubr.msk.f32.mxu1 %vm5955_vm0, %v8050_v23  ;;  %4846 = vmatprep.mubr.msk.f32.mxu0 %vm5955_vm0, %v8050_v23 }
 0x129   :  { %4232 = vmatmul.mubr.f32.gmra.mrb[12].mxu1 %v6138_v17  ;;  %4847 = vmatmul.mubr.f32.gmra.mrb[12].mxu0 %v6138_v17 }
 0x12a   :  { %4234 = vmatprep.mubr.msk.f32.mxu1 %vm5955_vm0, %v8050_v23  ;;  %4849 = vmatprep.mubr.msk.f32.mxu0 %vm5955_vm0, %v8050_v23 }
 0x12d   :  { %4235 = vmatmul.mubr.f32.gmra.mrb[14].mxu1 %v6167_v38  ;;  %4850 = vmatmul.mubr.f32.gmra.mrb[14].mxu0 %v6167_v38 }
 0x12e   :  { %4237 = vmatprep.mubr.msk.f32.mxu1 %vm5955_vm0, %v8050_v23  ;;  %4852 = vmatprep.mubr.msk.f32.mxu0 %vm5955_vm0, %v8050_v23 }
 0x131   :  { %4238 = vmatmul.mubr.f32.gmra.mrb[16].mxu1 %v6183_v44  ;;  %4853 = vmatmul.mubr.f32.gmra.mrb[16].mxu0 %v6183_v44 }
 0x132   :  { %4240 = vmatprep.mubr.msk.f32.mxu1 %vm5955_vm0, %v8050_v23  ;;  %4855 = vmatprep.mubr.msk.f32.mxu0 %vm5955_vm0, %v8050_v23 }
 0x135   :  { %4241 = vmatmul.mubr.f32.gmra.mrb[18].mxu1 %v6201_v61  ;;  %4856 = vmatmul.mubr.f32.gmra.mrb[18].mxu0 %v6201_v61 }
 0x136   :  { %4243 = vmatprep.mubr.msk.f32.mxu1 %vm5955_vm0, %v8050_v23  ;;  %4858 = vmatprep.mubr.msk.f32.mxu0 %vm5955_vm0, %v8050_v23 }
 0x139   :  { %4244 = vmatmul.mubr.f32.gmra.mrb[20].mxu1 %v6218_v25  ;;  %4859 = vmatmul.mubr.f32.gmra.mrb[20].mxu0 %v6218_v25 }
 0x13a   :  { %4246 = vmatprep.mubr.msk.f32.mxu1 %vm5955_vm0, %v8050_v23  ;;  %4861 = vmatprep.mubr.msk.f32.mxu0 %vm5955_vm0, %v8050_v23 }
 0x13d   :  { %4247 = vmatmul.mubr.f32.gmra.mrb[22].mxu1 %v6227_v27  ;;  %4862 = vmatmul.mubr.f32.gmra.mrb[22].mxu0 %v6227_v27 }
 0x13e   :  { %4249 = vmatprep.mubr.msk.f32.mxu1 %vm5955_vm0, %v8050_v23  ;;  %4864 = vmatprep.mubr.msk.f32.mxu0 %vm5955_vm0, %v8050_v23 }
 0x141   :  { %4250 = vmatmul.mubr.f32.gmra.mrb[24].mxu1 %v6243_v47  ;;  %4865 = vmatmul.mubr.f32.gmra.mrb[24].mxu0 %v6243_v47 }
 0x142   :  { %4252 = vmatprep.mubr.msk.f32.mxu1 %vm5955_vm0, %v8050_v23  ;;  %4867 = vmatprep.mubr.msk.f32.mxu0 %vm5955_vm0, %v8050_v23 }
 0x145   :  { %4253 = vmatmul.mubr.f32.gmra.mrb[26].mxu1 %v6271_v59  ;;  %4868 = vmatmul.mubr.f32.gmra.mrb[26].mxu0 %v6271_v59 }
 0x146   :  { %4255 = vmatprep.mubr.msk.f32.mxu1 %vm5955_vm0, %v8050_v23  ;;  %4870 = vmatprep.mubr.msk.f32.mxu0 %vm5955_vm0, %v8050_v23 }
 0x149   :  { %4256 = vmatmul.mubr.f32.gmra.mrb[28].mxu1 %v6288_v11  ;;  %4871 = vmatmul.mubr.f32.gmra.mrb[28].mxu0 %v6288_v11 }
 0x14a   :  { %4258 = vmatprep.mubr.msk.f32.mxu1 %vm5955_vm0, %v8050_v23  ;;  %4873 = vmatprep.mubr.msk.f32.mxu0 %vm5955_vm0, %v8050_v23 }
 0x14d   :  { %4259 = vmatmul.mubr.f32.gmra.mrb[30].mxu1 %v6303_v10  ;;  %4874 = vmatmul.mubr.f32.gmra.mrb[30].mxu0 %v6303_v10 }
 0x14e   :  { %4261 = vmatprep.mubr.msk.f32.mxu1 %vm5955_vm0, %v8050_v23  ;;  %4876 = vmatprep.mubr.msk.f32.mxu0 %vm5955_vm0, %v8050_v23 }
 0x151   :  { %4262 = vmatmul.mubr.f32.gmra.mrb[32].mxu1 %v6318_v18  ;;  %4877 = vmatmul.mubr.f32.gmra.mrb[32].mxu0 %v6318_v18 }
 0x152   :  { %4264 = vmatprep.mubr.msk.f32.mxu1 %vm5955_vm0, %v8050_v23  ;;  %4879 = vmatprep.mubr.msk.f32.mxu0 %vm5955_vm0, %v8050_v23 }
 0x155   :  { %4265 = vmatmul.mubr.f32.gmra.mrb[34].mxu1 %v6339_v50  ;;  %4880 = vmatmul.mubr.f32.gmra.mrb[34].mxu0 %v6339_v50 }
 0x156   :  { %4267 = vmatprep.mubr.msk.f32.mxu1 %vm5955_vm0, %v8050_v23  ;;  %4882 = vmatprep.mubr.msk.f32.mxu0 %vm5955_vm0, %v8050_v23 }
 0x159   :  { %4268 = vmatmul.mubr.f32.gmra.mrb[36].mxu1 %v6350_v9  ;;  %4883 = vmatmul.mubr.f32.gmra.mrb[36].mxu0 %v6350_v9 }
 0x15a   :  { %4270 = vmatprep.mubr.msk.f32.mxu1 %vm5955_vm0, %v8050_v23  ;;  %4885 = vmatprep.mubr.msk.f32.mxu0 %vm5955_vm0, %v8050_v23 }
 0x15d   :  { %4271 = vmatmul.mubr.f32.gmra.mrb[38].mxu1 %v6369_v3  ;;  %4886 = vmatmul.mubr.f32.gmra.mrb[38].mxu0 %v6369_v3 }
 0x15e   :  { %4273 = vmatprep.mubr.msk.f32.mxu1 %vm5955_vm0, %v8050_v23  ;;  %4888 = vmatprep.mubr.msk.f32.mxu0 %vm5955_vm0, %v8050_v23 }
 0x161   :  { %4274 = vmatmul.mubr.f32.gmra.mrb[40].mxu1 %v6380_v37  ;;  %4889 = vmatmul.mubr.f32.gmra.mrb[40].mxu0 %v6380_v37 }
 0x162   :  { %4276 = vmatprep.mubr.msk.f32.mxu1 %vm5955_vm0, %v8050_v23  ;;  %4891 = vmatprep.mubr.msk.f32.mxu0 %vm5955_vm0, %v8050_v23 }
 0x165   :  { %4277 = vmatmul.mubr.f32.gmra.mrb[42].mxu1 %v6401_v51  ;;  %4892 = vmatmul.mubr.f32.gmra.mrb[42].mxu0 %v6401_v51 }
 0x166   :  { %4279 = vmatprep.mubr.msk.f32.mxu1 %vm5955_vm0, %v8050_v23  ;;  %4894 = vmatprep.mubr.msk.f32.mxu0 %vm5955_vm0, %v8050_v23 }
 0x169   :  { %4280 = vmatmul.mubr.f32.gmra.mrb[44].mxu1 %v6419_v28  ;;  %4895 = vmatmul.mubr.f32.gmra.mrb[44].mxu0 %v6419_v28 }
 0x16a   :  { %4282 = vmatprep.mubr.msk.f32.mxu1 %vm5955_vm0, %v8050_v23  ;;  %4897 = vmatprep.mubr.msk.f32.mxu0 %vm5955_vm0, %v8050_v23 }
 0x16d   :  { %4283 = vmatmul.mubr.f32.gmra.mrb[46].mxu1 %v6429_v5  ;;  %4898 = vmatmul.mubr.f32.gmra.mrb[46].mxu0 %v6429_v5 }
 0x16e   :  { %4285 = vmatprep.mubr.msk.f32.mxu1 %vm5955_vm0, %v8050_v23  ;;  %4900 = vmatprep.mubr.msk.f32.mxu0 %vm5955_vm0, %v8050_v23 }
 0x171   :  { %4286 = vmatmul.mubr.f32.gmra.mrb[48].mxu1 %v6445_v0  ;;  %4901 = vmatmul.mubr.f32.gmra.mrb[48].mxu0 %v6445_v0 }
 0x172   :  { %4288 = vmatprep.mubr.msk.f32.mxu1 %vm5955_vm0, %v8050_v23  ;;  %4903 = vmatprep.mubr.msk.f32.mxu0 %vm5955_vm0, %v8050_v23 }
 0x175   :  { %4289 = vmatmul.mubr.f32.gmra.mrb[50].mxu1 %v6465_v39  ;;  %4904 = vmatmul.mubr.f32.gmra.mrb[50].mxu0 %v6465_v39 }
 0x176   :  { %4291 = vmatprep.mubr.msk.f32.mxu1 %vm5955_vm0, %v8050_v23  ;;  %4906 = vmatprep.mubr.msk.f32.mxu0 %vm5955_vm0, %v8050_v23 }
 0x179   :  { %4292 = vmatmul.mubr.f32.gmra.mrb[52].mxu1 %v6480_v4  ;;  %4907 = vmatmul.mubr.f32.gmra.mrb[52].mxu0 %v6480_v4 }
 0x17a   :  { %4294 = vmatprep.mubr.msk.f32.mxu1 %vm5955_vm0, %v8050_v23  ;;  %4909 = vmatprep.mubr.msk.f32.mxu0 %vm5955_vm0, %v8050_v23 }
 0x17d   :  { %4295 = vmatmul.mubr.f32.gmra.mrb[54].mxu1 %v6496_v6  ;;  %4910 = vmatmul.mubr.f32.gmra.mrb[54].mxu0 %v6496_v6 }
 0x17e   :  { %4297 = vmatprep.mubr.msk.f32.mxu1 %vm5955_vm0, %v8050_v23  ;;  %4912 = vmatprep.mubr.msk.f32.mxu0 %vm5955_vm0, %v8050_v23 }
 0x181   :  { %4298 = vmatmul.mubr.f32.gmra.mrb[56].mxu1 %v6505_v7  ;;  %4913 = vmatmul.mubr.f32.gmra.mrb[56].mxu0 %v6505_v7 }
 0x182   :  { %4300 = vmatprep.mubr.msk.f32.mxu1 %vm5955_vm0, %v8050_v23  ;;  %4915 = vmatprep.mubr.msk.f32.mxu0 %vm5955_vm0, %v8050_v23 }
 0x185   :  { %4301 = vmatmul.mubr.f32.gmra.mrb[58].mxu1 %v6523_v24  ;;  %4916 = vmatmul.mubr.f32.gmra.mrb[58].mxu0 %v6523_v24 }
 0x186   :  { %4303 = vmatprep.mubr.msk.f32.mxu1 %vm5955_vm0, %v8050_v23  ;;  %4918 = vmatprep.mubr.msk.f32.mxu0 %vm5955_vm0, %v8050_v23 }
 0x189   :  { %4304 = vmatmul.mubr.f32.gmra.mrb[60].mxu1 %v6535_v60  ;;  %4919 = vmatmul.mubr.f32.gmra.mrb[60].mxu0 %v6535_v60 }
 0x18a   :  { %4306 = vmatprep.mubr.msk.f32.mxu1 %vm5955_vm0, %v8050_v23  ;;  %4921 = vmatprep.mubr.msk.f32.mxu0 %vm5955_vm0, %v8050_v23 }
 0x18d   :  { %4307 = vmatmul.mubr.f32.gmra.mrb[62].mxu1 %v8127_v16  ;;  %4922 = vmatmul.mubr.f32.gmra.mrb[62].mxu0 %v8127_v16 }
 0x18e   :  { %4309 = vmatprep.mubr.msk.f32.mxu1 %vm5955_vm0, %v8050_v23  ;;  %4924 = vmatprep.mubr.msk.f32.mxu0 %vm5955_vm0, %v8050_v23 }
 0x191   :  { %4310 = vmatmul.mubr.f32.gmra.mrb[64].mxu1 %v8128_v21  ;;  %4925 = vmatmul.mubr.f32.gmra.mrb[64].mxu0 %v8128_v21 }
 0x192   :  { %4312 = vmatprep.mubr.msk.f32.mxu1 %vm5955_vm0, %v8050_v23  ;;  %4927 = vmatprep.mubr.msk.f32.mxu0 %vm5955_vm0, %v8050_v23 }
 0x195   :  { %4313 = vmatmul.mubr.f32.gmra.mrb[66].mxu1 %v8129_v30  ;;  %4928 = vmatmul.mubr.f32.gmra.mrb[66].mxu0 %v8129_v30 }
 0x196   :  { %4315 = vmatprep.mubr.msk.f32.mxu1 %vm5955_vm0, %v8050_v23  ;;  %4930 = vmatprep.mubr.msk.f32.mxu0 %vm5955_vm0, %v8050_v23 }
 0x199   :  { %4316 = vmatmul.mubr.f32.gmra.mrb[68].mxu1 %v8130_v31  ;;  %4931 = vmatmul.mubr.f32.gmra.mrb[68].mxu0 %v8130_v31 }
 0x19a   :  { %4318 = vmatprep.mubr.msk.f32.mxu1 %vm5955_vm0, %v8050_v23  ;;  %4933 = vmatprep.mubr.msk.f32.mxu0 %vm5955_vm0, %v8050_v23 }
 0x19d   :  { %4319 = vmatmul.mubr.f32.gmra.mrb[70].mxu1 %v8131_v33  ;;  %4934 = vmatmul.mubr.f32.gmra.mrb[70].mxu0 %v8131_v33 }
 0x19e   :  { %4321 = vmatprep.mubr.msk.f32.mxu1 %vm5955_vm0, %v8050_v23  ;;  %4936 = vmatprep.mubr.msk.f32.mxu0 %vm5955_vm0, %v8050_v23 }
 0x1a1   :  { %4322 = vmatmul.mubr.f32.gmra.mrb[72].mxu1 %v8132_v49  ;;  %4937 = vmatmul.mubr.f32.gmra.mrb[72].mxu0 %v8132_v49 }
 0x1a2   :  { %4324 = vmatprep.mubr.msk.f32.mxu1 %vm5955_vm0, %v8050_v23  ;;  %4939 = vmatprep.mubr.msk.f32.mxu0 %vm5955_vm0, %v8050_v23 }
 0x1a5   :  { %4325 = vmatmul.mubr.f32.gmra.mrb[74].mxu1 %v8133_v26  ;;  %4940 = vmatmul.mubr.f32.gmra.mrb[74].mxu0 %v8133_v26 }
 0x1a6   :  { %4327 = vmatprep.mubr.msk.f32.mxu1 %vm5955_vm0, %v8050_v23  ;;  %4942 = vmatprep.mubr.msk.f32.mxu0 %vm5955_vm0, %v8050_v23 }
 0x1a9   :  { %4328 = vmatmul.mubr.f32.gmra.mrb[76].mxu1 %v8134_v29  ;;  %4943 = vmatmul.mubr.f32.gmra.mrb[76].mxu0 %v8134_v29 }
 0x1aa   :  { %4330 = vmatprep.mubr.msk.f32.mxu1 %vm5955_vm0, %v8050_v23  ;;  %4945 = vmatprep.mubr.msk.f32.mxu0 %vm5955_vm0, %v8050_v23 }
 0x1ad   :  { %4331 = vmatmul.mubr.f32.gmra.mrb[78].mxu1 %v8135_v55  ;;  %4946 = vmatmul.mubr.f32.gmra.mrb[78].mxu0 %v8135_v55 }
 0x1ae   :  { %4333 = vmatprep.mubr.msk.f32.mxu1 %vm5955_vm0, %v8050_v23  ;;  %4948 = vmatprep.mubr.msk.f32.mxu0 %vm5955_vm0, %v8050_v23 }
 0x1b1   :  { %4334 = vmatmul.mubr.f32.gmra.mrb[80].mxu1 %v8136_v56  ;;  %4949 = vmatmul.mubr.f32.gmra.mrb[80].mxu0 %v8136_v56 }
 0x1b2   :  { %4336 = vmatprep.mubr.msk.f32.mxu1 %vm5955_vm0, %v8050_v23  ;;  %4951 = vmatprep.mubr.msk.f32.mxu0 %vm5955_vm0, %v8050_v23 }
 0x1b5   :  { %4337 = vmatmul.mubr.f32.gmra.mrb[82].mxu1 %v8137_v52  ;;  %4952 = vmatmul.mubr.f32.gmra.mrb[82].mxu0 %v8137_v52 }
 0x1b6   :  { %4339 = vmatprep.mubr.msk.f32.mxu1 %vm5955_vm0, %v8050_v23  ;;  %4954 = vmatprep.mubr.msk.f32.mxu0 %vm5955_vm0, %v8050_v23 }
 0x1b9   :  { %4340 = vmatmul.mubr.f32.gmra.mrb[84].mxu1 %v8138_v1  ;;  %4955 = vmatmul.mubr.f32.gmra.mrb[84].mxu0 %v8138_v1 }
 0x1ba   :  { %4342 = vmatprep.mubr.msk.f32.mxu1 %vm5955_vm0, %v8050_v23  ;;  %4957 = vmatprep.mubr.msk.f32.mxu0 %vm5955_vm0, %v8050_v23 }
 0x1bd   :  { %4343 = vmatmul.mubr.f32.gmra.mrb[86].mxu1 %v8139_v12  ;;  %4958 = vmatmul.mubr.f32.gmra.mrb[86].mxu0 %v8139_v12 }
 0x1be   :  { %4345 = vmatprep.mubr.msk.f32.mxu1 %vm5955_vm0, %v8050_v23  ;;  %4960 = vmatprep.mubr.msk.f32.mxu0 %vm5955_vm0, %v8050_v23 }
 0x1c1   :  { %4346 = vmatmul.mubr.f32.gmra.mrb[88].mxu1 %v6745_v20  ;;  %4961 = vmatmul.mubr.f32.gmra.mrb[88].mxu0 %v6745_v20 }
 0x1c2   :  { %4348 = vmatprep.mubr.msk.f32.mxu1 %vm5955_vm0, %v8050_v23  ;;  %4963 = vmatprep.mubr.msk.f32.mxu0 %vm5955_vm0, %v8050_v23 }
 0x1c5   :  { %4349 = vmatmul.mubr.f32.gmra.mrb[90].mxu1 %v8140_v34  ;;  %4964 = vmatmul.mubr.f32.gmra.mrb[90].mxu0 %v8140_v34 }
 0x1c6   :  { %4351 = vmatprep.mubr.msk.f32.mxu1 %vm5955_vm0, %v8050_v23  ;;  %4966 = vmatprep.mubr.msk.f32.mxu0 %vm5955_vm0, %v8050_v23 }
 0x1c9   :  { %4352 = vmatmul.mubr.f32.gmra.mrb[92].mxu1 %v8141_v13  ;;  %4967 = vmatmul.mubr.f32.gmra.mrb[92].mxu0 %v8141_v13 }
 0x1ca   :  { %4354 = vmatprep.mubr.msk.f32.mxu1 %vm5955_vm0, %v8050_v23  ;;  %4969 = vmatprep.mubr.msk.f32.mxu0 %vm5955_vm0, %v8050_v23 }
 0x1cd   :  { %4355 = vmatmul.mubr.f32.gmra.mrb[94].mxu1 %v8142_v58  ;;  %4970 = vmatmul.mubr.f32.gmra.mrb[94].mxu0 %v8142_v58 }
 0x1ce   :  { %4357 = vmatprep.mubr.msk.f32.mxu1 %vm5955_vm0, %v8050_v23  ;;  %4972 = vmatprep.mubr.msk.f32.mxu0 %vm5955_vm0, %v8050_v23 }
 0x1d1   :  { %4358 = vmatmul.mubr.f32.gmra.mrb[96].mxu1 %v8143_v19  ;;  %4973 = vmatmul.mubr.f32.gmra.mrb[96].mxu0 %v8143_v19 }
 0x1d2   :  { %4360 = vmatprep.mubr.msk.f32.mxu1 %vm5955_vm0, %v8050_v23  ;;  %4975 = vmatprep.mubr.msk.f32.mxu0 %vm5955_vm0, %v8050_v23 }
 0x1d5   :  { %4361 = vmatmul.mubr.f32.gmra.mrb[98].mxu1 %v8144_v54  ;;  %4976 = vmatmul.mubr.f32.gmra.mrb[98].mxu0 %v8144_v54 }
 0x1d6   :  { %4363 = vmatprep.mubr.msk.f32.mxu1 %vm5955_vm0, %v8050_v23  ;;  %4978 = vmatprep.mubr.msk.f32.mxu0 %vm5955_vm0, %v8050_v23 }
 0x1d9   :  { %4364 = vmatmul.mubr.f32.gmra.mrb[100].mxu1 %v8145_v22  ;;  %4979 = vmatmul.mubr.f32.gmra.mrb[100].mxu0 %v8145_v22 }
 0x1da   :  { %4366 = vmatprep.mubr.msk.f32.mxu1 %vm5955_vm0, %v8050_v23  ;;  %4981 = vmatprep.mubr.msk.f32.mxu0 %vm5955_vm0, %v8050_v23 }
 0x1dd   :  { %4367 = vmatmul.mubr.f32.gmra.mrb[102].mxu1 %v8146_v41  ;;  %4982 = vmatmul.mubr.f32.gmra.mrb[102].mxu0 %v8146_v41 }
 0x1de   :  { %4369 = vmatprep.mubr.msk.f32.mxu1 %vm5955_vm0, %v8050_v23  ;;  %4984 = vmatprep.mubr.msk.f32.mxu0 %vm5955_vm0, %v8050_v23 }
 0x1e1   :  { %4370 = vmatmul.mubr.f32.gmra.mrb[104].mxu1 %v8147_v8  ;;  %4985 = vmatmul.mubr.f32.gmra.mrb[104].mxu0 %v8147_v8 }
 0x1e2   :  { %4372 = vmatprep.mubr.msk.f32.mxu1 %vm5955_vm0, %v8050_v23  ;;  %4987 = vmatprep.mubr.msk.f32.mxu0 %vm5955_vm0, %v8050_v23 }
 0x1e5   :  { %4373 = vmatmul.mubr.f32.gmra.mrb[106].mxu1 %v8148_v14  ;;  %4988 = vmatmul.mubr.f32.gmra.mrb[106].mxu0 %v8148_v14 }
 0x1e6   :  { %4375 = vmatprep.mubr.msk.f32.mxu1 %vm5955_vm0, %v8050_v23  ;;  %4990 = vmatprep.mubr.msk.f32.mxu0 %vm5955_vm0, %v8050_v23 }
 0x1e9   :  { %4376 = vmatmul.mubr.f32.gmra.mrb[108].mxu1 %v8149_v15  ;;  %4991 = vmatmul.mubr.f32.gmra.mrb[108].mxu0 %v8149_v15 }
 0x1ea   :  { %4378 = vmatprep.mubr.msk.f32.mxu1 %vm5955_vm0, %v8050_v23  ;;  %4993 = vmatprep.mubr.msk.f32.mxu0 %vm5955_vm0, %v8050_v23 }
 0x1ed   :  { %4379 = vmatmul.mubr.f32.gmra.mrb[110].mxu1 %v8150_v45  ;;  %4994 = vmatmul.mubr.f32.gmra.mrb[110].mxu0 %v8150_v45 }
 0x1ee   :  { %4381 = vmatprep.mubr.msk.f32.mxu1 %vm5955_vm0, %v8050_v23  ;;  %4996 = vmatprep.mubr.msk.f32.mxu0 %vm5955_vm0, %v8050_v23 }
 0x1f1   :  { %4382 = vmatmul.mubr.f32.gmra.mrb[112].mxu1 %v8151_v2  ;;  %4997 = vmatmul.mubr.f32.gmra.mrb[112].mxu0 %v8151_v2 }
 0x1f2   :  { %4384 = vmatprep.mubr.msk.f32.mxu1 %vm5955_vm0, %v8050_v23  ;;  %4999 = vmatprep.mubr.msk.f32.mxu0 %vm5955_vm0, %v8050_v23 }
 0x1f5   :  { %4385 = vmatmul.mubr.f32.gmra.mrb[114].mxu1 %v8152_v48  ;;  %5000 = vmatmul.mubr.f32.gmra.mrb[114].mxu0 %v8152_v48 }
 0x1f6   :  { %4387 = vmatprep.mubr.msk.f32.mxu1 %vm5955_vm0, %v8050_v23  ;;  %5002 = vmatprep.mubr.msk.f32.mxu0 %vm5955_vm0, %v8050_v23 }
 0x1f9   :  { %4388 = vmatmul.mubr.f32.gmra.mrb[116].mxu1 %v8153_v57  ;;  %5003 = vmatmul.mubr.f32.gmra.mrb[116].mxu0 %v8153_v57 }
 0x1fa   :  { %4390 = vmatprep.mubr.msk.f32.mxu1 %vm5955_vm0, %v8050_v23  ;;  %5005 = vmatprep.mubr.msk.f32.mxu0 %vm5955_vm0, %v8050_v23 }
 0x1fd   :  { %4391 = vmatmul.mubr.f32.gmra.mrb[118].mxu1 %v8154_v43  ;;  %5006 = vmatmul.mubr.f32.gmra.mrb[118].mxu0 %v8154_v43 }
 0x1fe   :  { %4393 = vmatprep.mubr.msk.f32.mxu1 %vm5955_vm0, %v8050_v23  ;;  %5008 = vmatprep.mubr.msk.f32.mxu0 %vm5955_vm0, %v8050_v23 }
 0x201   :  { %4394 = vmatmul.mubr.f32.gmra.mrb[120].mxu1 %v6990_v40  ;;  %5009 = vmatmul.mubr.f32.gmra.mrb[120].mxu0 %v6990_v40  ;;  %v8155_v40 = vld [vmem:[#allocation5_spill] sm:$0xff] }
 0x202   :  { %4396 = vmatprep.mubr.msk.f32.mxu1 %vm5955_vm0, %v8050_v23  ;;  %5011 = vmatprep.mubr.msk.f32.mxu0 %vm5955_vm0, %v8050_v23 }
 0x205   :  { %4397 = vmatmul.mubr.f32.gmra.mrb[122].mxu1 %v7005_v36  ;;  %5012 = vmatmul.mubr.f32.gmra.mrb[122].mxu0 %v7005_v36  ;;  %v8156_v36 = vld [vmem:[#allocation6_spill] sm:$0xff] }
 0x206   :  { %4399 = vmatprep.mubr.msk.f32.mxu1 %vm5955_vm0, %v8050_v23  ;;  %5014 = vmatprep.mubr.msk.f32.mxu0 %vm5955_vm0, %v8050_v23 }
 0x209   :  { %4400 = vmatmul.mubr.f32.gmra.mrb[124].mxu1 %v7017_v62  ;;  %5015 = vmatmul.mubr.f32.gmra.mrb[124].mxu0 %v7017_v62  ;;  %v8157_v62 = vld [vmem:[#allocation7_spill] sm:$0xff] }
 0x20a   :  { %4418 = vmatprep.mubr.msk.f32.mxu1 %vm5955_vm0, %v8050_v23  ;;  %5033 = vmatprep.mubr.msk.f32.mxu0 %vm5955_vm0, %v8050_v23 }
 0x20d   :  { %4419 = vmatmul.mubr.f32.vlgmr.msra.gmra.mrb[0].mxu1 %v8155_v40  ;;  %5034 = vmatmul.mubr.f32.vlgmr.msra.gmra.mrb[0].mxu0 %v6058_v32  ;;  %v8158_v32 = vld [vmem:[#allocation8_spill] sm:$0xff]  ;;  %v8190_v40 = vld [vmem:[#allocation46_spill] sm:$0xff] }
 0x20e   :  { %4421 = vmatprep.mubr.msk.f32.mxu1 %vm5955_vm0, %v8050_v23  ;;  %5036 = vmatprep.mubr.msk.f32.mxu0 %vm5955_vm0, %v8050_v23 }
 0x211   :  { %4422 = vmatmul.mubr.f32.gmra.mrb[2].mxu1 %v8156_v36  ;;  %5037 = vmatmul.mubr.f32.gmra.mrb[2].mxu0 %v6067_v35  ;;  %v8159_v35 = vld [vmem:[#allocation9_spill] sm:$0xff]  ;;  %v8189_v36 = vld [vmem:[#allocation43_spill] sm:$0xff] }
 0x212   :  { %4424 = vmatprep.mubr.msk.f32.mxu1 %vm5955_vm0, %v8050_v23  ;;  %5039 = vmatprep.mubr.msk.f32.mxu0 %vm5955_vm0, %v8050_v23 }
 0x215   :  { %4425 = vmatmul.mubr.f32.gmra.mrb[4].mxu1 %v8157_v62  ;;  %5040 = vmatmul.mubr.f32.gmra.mrb[4].mxu0 %v6085_v42  ;;  %v8160_v42 = vld [vmem:[#allocation10_spill] sm:$0xff]  ;;  %v8191_v62 = vld [vmem:[#allocation47_spill] sm:$0xff] }
 0x216   :  { %4427 = vmatprep.mubr.msk.f32.mxu1 %vm5955_vm0, %v8050_v23  ;;  %5042 = vmatprep.mubr.msk.f32.mxu0 %vm5955_vm0, %v8050_v23 }
 0x219   :  { %4428 = vmatmul.mubr.f32.gmra.mrb[6].mxu1 %v8158_v32  ;;  %5043 = vmatmul.mubr.f32.gmra.mrb[6].mxu0 %v6092_v46  ;;  %v8161_v46 = vld [vmem:[#allocation11_spill] sm:$0xff]  ;;  %v8208_v32 = vld [vmem:[#allocation80_spill] sm:$0xff] }
 0x21a   :  { %4430 = vmatprep.mubr.msk.f32.mxu1 %vm5955_vm0, %v8050_v23  ;;  %5045 = vmatprep.mubr.msk.f32.mxu0 %vm5955_vm0, %v8050_v23 }
 0x21d   :  { %4431 = vmatmul.mubr.f32.gmra.mrb[8].mxu1 %v8159_v35  ;;  %5046 = vmatmul.mubr.f32.gmra.mrb[8].mxu0 %v6105_v53  ;;  %v8162_v53 = vld [vmem:[#allocation12_spill] sm:$0xff] }
 0x21e   :  { %4433 = vmatprep.mubr.msk.f32.mxu1 %vm5955_vm0, %v8050_v23  ;;  %5048 = vmatprep.mubr.msk.f32.mxu0 %vm5955_vm0, %v8050_v23 }
 0x221   :  { %4434 = vmatmul.mubr.f32.gmra.mrb[10].mxu1 %v8160_v42  ;;  %5049 = vmatmul.mubr.f32.gmra.mrb[10].mxu0 %v6123_v63  ;;  %v8163_v63 = vld [vmem:[#allocation13_spill] sm:$0xff] }
 0x222   :  { %4436 = vmatprep.mubr.msk.f32.mxu1 %vm5955_vm0, %v8050_v23  ;;  %5051 = vmatprep.mubr.msk.f32.mxu0 %vm5955_vm0, %v8050_v23 }
 0x225   :  { %4437 = vmatmul.mubr.f32.gmra.mrb[12].mxu1 %v8161_v46  ;;  %5052 = vmatmul.mubr.f32.gmra.mrb[12].mxu0 %v6138_v17  ;;  %v8164_v17 = vld [vmem:[#allocation14_spill] sm:$0xff] }
 0x226   :  { %4439 = vmatprep.mubr.msk.f32.mxu1 %vm5955_vm0, %v8050_v23  ;;  %5054 = vmatprep.mubr.msk.f32.mxu0 %vm5955_vm0, %v8050_v23 }
 0x229   :  { %4440 = vmatmul.mubr.f32.gmra.mrb[14].mxu1 %v8162_v53  ;;  %5055 = vmatmul.mubr.f32.gmra.mrb[14].mxu0 %v6167_v38  ;;  %v8165_v38 = vld [vmem:[#allocation15_spill] sm:$0xff] }
 0x22a   :  { %4442 = vmatprep.mubr.msk.f32.mxu1 %vm5955_vm0, %v8050_v23  ;;  %5057 = vmatprep.mubr.msk.f32.mxu0 %vm5955_vm0, %v8050_v23 }
 0x22d   :  { %4443 = vmatmul.mubr.f32.gmra.mrb[16].mxu1 %v8163_v63  ;;  %5058 = vmatmul.mubr.f32.gmra.mrb[16].mxu0 %v6183_v44  ;;  %v8166_v44 = vld [vmem:[#allocation16_spill] sm:$0xff] }
 0x22e   :  { %4445 = vmatprep.mubr.msk.f32.mxu1 %vm5955_vm0, %v8050_v23  ;;  %5060 = vmatprep.mubr.msk.f32.mxu0 %vm5955_vm0, %v8050_v23 }
 0x231   :  { %4446 = vmatmul.mubr.f32.gmra.mrb[18].mxu1 %v8164_v17  ;;  %5061 = vmatmul.mubr.f32.gmra.mrb[18].mxu0 %v6201_v61  ;;  %v8167_v61 = vld [vmem:[#allocation17_spill] sm:$0xff]  ;;  %v8209_v17 = vld [vmem:[#allocation82_spill] sm:$0xff] }
 0x232   :  { %4448 = vmatprep.mubr.msk.f32.mxu1 %vm5955_vm0, %v8050_v23  ;;  %5063 = vmatprep.mubr.msk.f32.mxu0 %vm5955_vm0, %v8050_v23 }
 0x235   :  { %4449 = vmatmul.mubr.f32.gmra.mrb[20].mxu1 %v8165_v38  ;;  %5064 = vmatmul.mubr.f32.gmra.mrb[20].mxu0 %v6218_v25  ;;  %v8168_v25 = vld [vmem:[#allocation18_spill] sm:$0xff] }
 0x236   :  { %4451 = vmatprep.mubr.msk.f32.mxu1 %vm5955_vm0, %v8050_v23  ;;  %5066 = vmatprep.mubr.msk.f32.mxu0 %vm5955_vm0, %v8050_v23 }
 0x239   :  { %4452 = vmatmul.mubr.f32.gmra.mrb[22].mxu1 %v8166_v44  ;;  %5067 = vmatmul.mubr.f32.gmra.mrb[22].mxu0 %v6227_v27  ;;  %v8169_v27 = vld [vmem:[#allocation19_spill] sm:$0xff] }
 0x23a   :  { %4454 = vmatprep.mubr.msk.f32.mxu1 %vm5955_vm0, %v8050_v23  ;;  %5069 = vmatprep.mubr.msk.f32.mxu0 %vm5955_vm0, %v8050_v23 }
 0x23d   :  { %4455 = vmatmul.mubr.f32.gmra.mrb[24].mxu1 %v8167_v61  ;;  %5070 = vmatmul.mubr.f32.gmra.mrb[24].mxu0 %v6243_v47  ;;  %v8170_v47 = vld [vmem:[#allocation20_spill] sm:$0xff] }
 0x23e   :  { %4457 = vmatprep.mubr.msk.f32.mxu1 %vm5955_vm0, %v8050_v23  ;;  %5072 = vmatprep.mubr.msk.f32.mxu0 %vm5955_vm0, %v8050_v23 }
 0x241   :  { %4458 = vmatmul.mubr.f32.gmra.mrb[26].mxu1 %v8168_v25  ;;  %5073 = vmatmul.mubr.f32.gmra.mrb[26].mxu0 %v6271_v59  ;;  %v8171_v59 = vld [vmem:[#allocation21_spill] sm:$0xff] }
 0x242   :  { %4460 = vmatprep.mubr.msk.f32.mxu1 %vm5955_vm0, %v8050_v23  ;;  %5075 = vmatprep.mubr.msk.f32.mxu0 %vm5955_vm0, %v8050_v23 }
 0x245   :  { %4461 = vmatmul.mubr.f32.gmra.mrb[28].mxu1 %v8169_v27  ;;  %5076 = vmatmul.mubr.f32.gmra.mrb[28].mxu0 %v6288_v11  ;;  %v8172_v11 = vld [vmem:[#allocation22_spill] sm:$0xff] }
 0x246   :  { %4463 = vmatprep.mubr.msk.f32.mxu1 %vm5955_vm0, %v8050_v23  ;;  %5078 = vmatprep.mubr.msk.f32.mxu0 %vm5955_vm0, %v8050_v23 }
 0x249   :  { %4464 = vmatmul.mubr.f32.gmra.mrb[30].mxu1 %v8170_v47  ;;  %5079 = vmatmul.mubr.f32.gmra.mrb[30].mxu0 %v6303_v10  ;;  %v8173_v10 = vld [vmem:[#allocation23_spill] sm:$0xff]  ;;  %v8210_v47 = vld [vmem:[#allocation84_spill] sm:$0xff] }
 0x24a   :  { %4466 = vmatprep.mubr.msk.f32.mxu1 %vm5955_vm0, %v8050_v23  ;;  %5081 = vmatprep.mubr.msk.f32.mxu0 %vm5955_vm0, %v8050_v23 }
 0x24d   :  { %4467 = vmatmul.mubr.f32.gmra.mrb[32].mxu1 %v8171_v59  ;;  %5082 = vmatmul.mubr.f32.gmra.mrb[32].mxu0 %v6318_v18  ;;  %v8174_v18 = vld [vmem:[#allocation24_spill] sm:$0xff] }
 0x24e   :  { %4469 = vmatprep.mubr.msk.f32.mxu1 %vm5955_vm0, %v8050_v23  ;;  %5084 = vmatprep.mubr.msk.f32.mxu0 %vm5955_vm0, %v8050_v23 }
 0x251   :  { %4470 = vmatmul.mubr.f32.gmra.mrb[34].mxu1 %v8172_v11  ;;  %5085 = vmatmul.mubr.f32.gmra.mrb[34].mxu0 %v6339_v50  ;;  %v8175_v50 = vld [vmem:[#allocation25_spill] sm:$0xff] }
 0x252   :  { %4472 = vmatprep.mubr.msk.f32.mxu1 %vm5955_vm0, %v8050_v23  ;;  %5087 = vmatprep.mubr.msk.f32.mxu0 %vm5955_vm0, %v8050_v23 }
 0x255   :  { %4473 = vmatmul.mubr.f32.gmra.mrb[36].mxu1 %v8173_v10  ;;  %5088 = vmatmul.mubr.f32.gmra.mrb[36].mxu0 %v6350_v9  ;;  %v8176_v9 = vld [vmem:[#allocation26_spill] sm:$0xff] }
 0x256   :  { %4475 = vmatprep.mubr.msk.f32.mxu1 %vm5955_vm0, %v8050_v23  ;;  %5090 = vmatprep.mubr.msk.f32.mxu0 %vm5955_vm0, %v8050_v23 }
 0x259   :  { %4476 = vmatmul.mubr.f32.gmra.mrb[38].mxu1 %v8174_v18  ;;  %5091 = vmatmul.mubr.f32.gmra.mrb[38].mxu0 %v6369_v3  ;;  %v8177_v3 = vld [vmem:[#allocation27_spill] sm:$0xff] }
 0x25a   :  { %4478 = vmatprep.mubr.msk.f32.mxu1 %vm5955_vm0, %v8050_v23  ;;  %5093 = vmatprep.mubr.msk.f32.mxu0 %vm5955_vm0, %v8050_v23 }
 0x25d   :  { %4479 = vmatmul.mubr.f32.gmra.mrb[40].mxu1 %v8175_v50  ;;  %5094 = vmatmul.mubr.f32.gmra.mrb[40].mxu0 %v6380_v37  ;;  %v8178_v37 = vld [vmem:[#allocation28_spill] sm:$0xff] }
 0x25e   :  { %4481 = vmatprep.mubr.msk.f32.mxu1 %vm5955_vm0, %v8050_v23  ;;  %5096 = vmatprep.mubr.msk.f32.mxu0 %vm5955_vm0, %v8050_v23 }
 0x261   :  { %4482 = vmatmul.mubr.f32.gmra.mrb[42].mxu1 %v8176_v9  ;;  %5097 = vmatmul.mubr.f32.gmra.mrb[42].mxu0 %v6401_v51  ;;  %v8179_v51 = vld [vmem:[#allocation29_spill] sm:$0xff]  ;;  %v8211_v9 = vld [vmem:[#allocation86_spill] sm:$0xff] }
 0x262   :  { %4484 = vmatprep.mubr.msk.f32.mxu1 %vm5955_vm0, %v8050_v23  ;;  %5099 = vmatprep.mubr.msk.f32.mxu0 %vm5955_vm0, %v8050_v23 }
 0x265   :  { %4485 = vmatmul.mubr.f32.gmra.mrb[44].mxu1 %v8177_v3  ;;  %5100 = vmatmul.mubr.f32.gmra.mrb[44].mxu0 %v6419_v28  ;;  %v8180_v28 = vld [vmem:[#allocation30_spill] sm:$0xff] }
 0x266   :  { %4487 = vmatprep.mubr.msk.f32.mxu1 %vm5955_vm0, %v8050_v23  ;;  %5102 = vmatprep.mubr.msk.f32.mxu0 %vm5955_vm0, %v8050_v23 }
 0x269   :  { %4488 = vmatmul.mubr.f32.gmra.mrb[46].mxu1 %v8178_v37  ;;  %5103 = vmatmul.mubr.f32.gmra.mrb[46].mxu0 %v6429_v5  ;;  %v8181_v5 = vld [vmem:[#allocation31_spill] sm:$0xff] }
 0x26a   :  { %4490 = vmatprep.mubr.msk.f32.mxu1 %vm5955_vm0, %v8050_v23  ;;  %5105 = vmatprep.mubr.msk.f32.mxu0 %vm5955_vm0, %v8050_v23 }
 0x26d   :  { %4491 = vmatmul.mubr.f32.gmra.mrb[48].mxu1 %v8179_v51  ;;  %5106 = vmatmul.mubr.f32.gmra.mrb[48].mxu0 %v6445_v0  ;;  %v8182_v0 = vld [vmem:[#allocation32_spill] sm:$0xff] }
 0x26e   :  { %4493 = vmatprep.mubr.msk.f32.mxu1 %vm5955_vm0, %v8050_v23  ;;  %5108 = vmatprep.mubr.msk.f32.mxu0 %vm5955_vm0, %v8050_v23 }
 0x271   :  { %4494 = vmatmul.mubr.f32.gmra.mrb[50].mxu1 %v8180_v28  ;;  %5109 = vmatmul.mubr.f32.gmra.mrb[50].mxu0 %v6465_v39  ;;  %v8183_v39 = vld [vmem:[#allocation33_spill] sm:$0xff] }
 0x272   :  { %4496 = vmatprep.mubr.msk.f32.mxu1 %vm5955_vm0, %v8050_v23  ;;  %5111 = vmatprep.mubr.msk.f32.mxu0 %vm5955_vm0, %v8050_v23 }
 0x275   :  { %4497 = vmatmul.mubr.f32.gmra.mrb[52].mxu1 %v8181_v5  ;;  %5112 = vmatmul.mubr.f32.gmra.mrb[52].mxu0 %v6480_v4  ;;  %v8184_v4 = vld [vmem:[#allocation34_spill] sm:$0xff] }
 0x276   :  { %4499 = vmatprep.mubr.msk.f32.mxu1 %vm5955_vm0, %v8050_v23  ;;  %5114 = vmatprep.mubr.msk.f32.mxu0 %vm5955_vm0, %v8050_v23 }
 0x279   :  { %4500 = vmatmul.mubr.f32.gmra.mrb[54].mxu1 %v8182_v0  ;;  %5115 = vmatmul.mubr.f32.gmra.mrb[54].mxu0 %v6496_v6  ;;  %v8185_v6 = vld [vmem:[#allocation36_spill] sm:$0xff]  ;;  %v8212_v0 = vld [vmem:[#allocation89_spill] sm:$0xff] }
 0x27a   :  { %4502 = vmatprep.mubr.msk.f32.mxu1 %vm5955_vm0, %v8050_v23  ;;  %5117 = vmatprep.mubr.msk.f32.mxu0 %vm5955_vm0, %v8050_v23 }
 0x27d   :  { %4503 = vmatmul.mubr.f32.gmra.mrb[56].mxu1 %v8183_v39  ;;  %5118 = vmatmul.mubr.f32.gmra.mrb[56].mxu0 %v6505_v7  ;;  %v8186_v7 = vld [vmem:[#allocation37_spill] sm:$0xff] }
 0x27e   :  { %4505 = vmatprep.mubr.msk.f32.mxu1 %vm5955_vm0, %v8050_v23  ;;  %5120 = vmatprep.mubr.msk.f32.mxu0 %vm5955_vm0, %v8050_v23 }
 0x281   :  { %4506 = vmatmul.mubr.f32.gmra.mrb[58].mxu1 %v8184_v4  ;;  %5121 = vmatmul.mubr.f32.gmra.mrb[58].mxu0 %v6523_v24  ;;  %v8187_v24 = vld [vmem:[#allocation39_spill] sm:$0xff] }
 0x282   :  { %4508 = vmatprep.mubr.msk.f32.mxu1 %vm5955_vm0, %v8050_v23  ;;  %5123 = vmatprep.mubr.msk.f32.mxu0 %vm5955_vm0, %v8050_v23 }
 0x285   :  { %4509 = vmatmul.mubr.f32.gmra.mrb[60].mxu1 %v8185_v6  ;;  %5124 = vmatmul.mubr.f32.gmra.mrb[60].mxu0 %v6535_v60  ;;  %v8188_v60 = vld [vmem:[#allocation41_spill] sm:$0xff] }
 0x286   :  { %4511 = vmatprep.mubr.msk.f32.mxu1 %vm5955_vm0, %v8050_v23  ;;  %5126 = vmatprep.mubr.msk.f32.mxu0 %vm5955_vm0, %v8050_v23 }
 0x289   :  { %4512 = vmatmul.mubr.f32.gmra.mrb[62].mxu1 %v8186_v7  ;;  %5127 = vmatmul.mubr.f32.gmra.mrb[62].mxu0 %v8127_v16  ;;  %v8192_v16 = vld [vmem:[#allocation50_spill] sm:$0xff] }
 0x28a   :  { %4514 = vmatprep.mubr.msk.f32.mxu1 %vm5955_vm0, %v8050_v23  ;;  %5129 = vmatprep.mubr.msk.f32.mxu0 %vm5955_vm0, %v8050_v23 }
 0x28d   :  { %4515 = vmatmul.mubr.f32.gmra.mrb[64].mxu1 %v8187_v24  ;;  %5130 = vmatmul.mubr.f32.gmra.mrb[64].mxu0 %v8128_v21  ;;  %v8193_v21 = vld [vmem:[#allocation52_spill] sm:$0xff] }
 0x28e   :  { %4517 = vmatprep.mubr.msk.f32.mxu1 %vm5955_vm0, %v8050_v23  ;;  %5132 = vmatprep.mubr.msk.f32.mxu0 %vm5955_vm0, %v8050_v23 }
 0x291   :  { %4518 = vmatmul.mubr.f32.gmra.mrb[66].mxu1 %v8188_v60  ;;  %5133 = vmatmul.mubr.f32.gmra.mrb[66].mxu0 %v8129_v30  ;;  %v8194_v30 = vld [vmem:[#allocation53_spill] sm:$0xff]  ;;  %v8213_v60 = vld [vmem:[#allocation90_spill] sm:$0xff] }
 0x292   :  { %4520 = vmatprep.mubr.msk.f32.mxu1 %vm5955_vm0, %v8050_v23  ;;  %5135 = vmatprep.mubr.msk.f32.mxu0 %vm5955_vm0, %v8050_v23 }
 0x295   :  { %4521 = vmatmul.mubr.f32.gmra.mrb[68].mxu1 %v8189_v36  ;;  %5136 = vmatmul.mubr.f32.gmra.mrb[68].mxu0 %v8130_v31  ;;  %v8195_v31 = vld [vmem:[#allocation55_spill] sm:$0xff] }
 0x296   :  { %4523 = vmatprep.mubr.msk.f32.mxu1 %vm5955_vm0, %v8050_v23  ;;  %5138 = vmatprep.mubr.msk.f32.mxu0 %vm5955_vm0, %v8050_v23 }
 0x299   :  { %4524 = vmatmul.mubr.f32.gmra.mrb[70].mxu1 %v8190_v40  ;;  %5139 = vmatmul.mubr.f32.gmra.mrb[70].mxu0 %v8131_v33  ;;  %v8196_v33 = vld [vmem:[#allocation57_spill] sm:$0xff] }
 0x29a   :  { %4526 = vmatprep.mubr.msk.f32.mxu1 %vm5955_vm0, %v8050_v23  ;;  %5141 = vmatprep.mubr.msk.f32.mxu0 %vm5955_vm0, %v8050_v23 }
 0x29d   :  { %4527 = vmatmul.mubr.f32.gmra.mrb[72].mxu1 %v8191_v62  ;;  %5142 = vmatmul.mubr.f32.gmra.mrb[72].mxu0 %v8132_v49  ;;  %v8197_v49 = vld [vmem:[#allocation59_spill] sm:$0xff] }
 0x29e   :  { %4529 = vmatprep.mubr.msk.f32.mxu1 %vm5955_vm0, %v8050_v23  ;;  %5144 = vmatprep.mubr.msk.f32.mxu0 %vm5955_vm0, %v8050_v23 }
 0x2a1   :  { %4530 = vmatmul.mubr.f32.gmra.mrb[74].mxu1 %v8192_v16  ;;  %5145 = vmatmul.mubr.f32.gmra.mrb[74].mxu0 %v8133_v26  ;;  %v8198_v26 = vld [vmem:[#allocation61_spill] sm:$0xff] }
 0x2a2   :  { %4532 = vmatprep.mubr.msk.f32.mxu1 %vm5955_vm0, %v8050_v23  ;;  %5147 = vmatprep.mubr.msk.f32.mxu0 %vm5955_vm0, %v8050_v23 }
 0x2a5   :  { %4533 = vmatmul.mubr.f32.gmra.mrb[76].mxu1 %v8193_v21  ;;  %5148 = vmatmul.mubr.f32.gmra.mrb[76].mxu0 %v8134_v29  ;;  %v8199_v29 = vld [vmem:[#allocation62_spill] sm:$0xff] }
 0x2a6   :  { %4535 = vmatprep.mubr.msk.f32.mxu1 %vm5955_vm0, %v8050_v23  ;;  %5150 = vmatprep.mubr.msk.f32.mxu0 %vm5955_vm0, %v8050_v23 }
 0x2a9   :  { %4536 = vmatmul.mubr.f32.gmra.mrb[78].mxu1 %v8194_v30  ;;  %5151 = vmatmul.mubr.f32.gmra.mrb[78].mxu0 %v8135_v55  ;;  %v8200_v55 = vld [vmem:[#allocation65_spill] sm:$0xff]  ;;  %v8214_v30 = vld [vmem:[#allocation92_spill] sm:$0xff] }
 0x2aa   :  { %4538 = vmatprep.mubr.msk.f32.mxu1 %vm5955_vm0, %v8050_v23  ;;  %5153 = vmatprep.mubr.msk.f32.mxu0 %vm5955_vm0, %v8050_v23 }
 0x2ad   :  { %4539 = vmatmul.mubr.f32.gmra.mrb[80].mxu1 %v8195_v31  ;;  %5154 = vmatmul.mubr.f32.gmra.mrb[80].mxu0 %v8136_v56  ;;  %v8201_v56 = vld [vmem:[#allocation66_spill] sm:$0xff] }
 0x2ae   :  { %4541 = vmatprep.mubr.msk.f32.mxu1 %vm5955_vm0, %v8050_v23  ;;  %5156 = vmatprep.mubr.msk.f32.mxu0 %vm5955_vm0, %v8050_v23 }
 0x2b1   :  { %4542 = vmatmul.mubr.f32.gmra.mrb[82].mxu1 %v8196_v33  ;;  %5157 = vmatmul.mubr.f32.gmra.mrb[82].mxu0 %v8137_v52  ;;  %v8203_v52 = vld [vmem:[#allocation70_spill] sm:$0xff] }
 0x2b2   :  { %4544 = vmatprep.mubr.msk.f32.mxu1 %vm5955_vm0, %v8050_v23  ;;  %5159 = vmatprep.mubr.msk.f32.mxu0 %vm5955_vm0, %v8050_v23 }
 0x2b5   :  { %4545 = vmatmul.mubr.f32.gmra.mrb[84].mxu1 %v8197_v49  ;;  %5160 = vmatmul.mubr.f32.gmra.mrb[84].mxu0 %v8138_v1  ;;  %v8204_v1 = vld [vmem:[#allocation72_spill] sm:$0xff] }
 0x2b6   :  { %4547 = vmatprep.mubr.msk.f32.mxu1 %vm5955_vm0, %v8050_v23  ;;  %5162 = vmatprep.mubr.msk.f32.mxu0 %vm5955_vm0, %v8050_v23 }
 0x2b9   :  { %4548 = vmatmul.mubr.f32.gmra.mrb[86].mxu1 %v8198_v26  ;;  %5163 = vmatmul.mubr.f32.gmra.mrb[86].mxu0 %v8139_v12  ;;  %v8205_v12 = vld [vmem:[#allocation75_spill] sm:$0xff] }
 0x2ba   :  { %4550 = vmatprep.mubr.msk.f32.mxu1 %vm5955_vm0, %v8050_v23  ;;  %5165 = vmatprep.mubr.msk.f32.mxu0 %vm5955_vm0, %v8050_v23 }
 0x2bd   :  { %4551 = vmatmul.mubr.f32.gmra.mrb[88].mxu1 %v8199_v29  ;;  %5166 = vmatmul.mubr.f32.gmra.mrb[88].mxu0 %v6745_v20  ;;  %v8202_v20 = vld [vmem:[#allocation68_spill] sm:$0xff] }
 0x2be   :  { %4553 = vmatprep.mubr.msk.f32.mxu1 %vm5955_vm0, %v8050_v23  ;;  %5168 = vmatprep.mubr.msk.f32.mxu0 %vm5955_vm0, %v8050_v23 }
 0x2c1   :  { %4554 = vmatmul.mubr.f32.gmra.mrb[90].mxu1 %v8200_v55  ;;  %5169 = vmatmul.mubr.f32.gmra.mrb[90].mxu0 %v8140_v34  ;;  %v8206_v34 = vld [vmem:[#allocation76_spill] sm:$0xff]  ;;  %v8215_v55 = vld [vmem:[#allocation94_spill] sm:$0xff] }
 0x2c2   :  { %4556 = vmatprep.mubr.msk.f32.mxu1 %vm5955_vm0, %v8050_v23  ;;  %5171 = vmatprep.mubr.msk.f32.mxu0 %vm5955_vm0, %v8050_v23 }
 0x2c5   :  { %4557 = vmatmul.mubr.f32.gmra.mrb[92].mxu1 %v8201_v56  ;;  %5172 = vmatmul.mubr.f32.gmra.mrb[92].mxu0 %v8141_v13  ;;  %v8207_v13 = vld [vmem:[#allocation78_spill] sm:$0xff] }
 0x2c6   :  { %4559 = vmatprep.mubr.msk.f32.mxu1 %vm5955_vm0, %v8050_v23  ;;  %5174 = vmatprep.mubr.msk.f32.mxu0 %vm5955_vm0, %v8050_v23 }
 0x2c9   :  { %4560 = vmatmul.mubr.f32.gmra.mrb[94].mxu1 %v8202_v20  ;;  %5175 = vmatmul.mubr.f32.gmra.mrb[94].mxu0 %v8142_v58  ;;  %v7764_v58 = vld [vmem:[%s7903_s2] ss:$0 sm:$0xff]  ;;  %v8216_v20 = vld [vmem:[#allocation93_spill] sm:$0xff]  ;;  %s5957_s2 = smov [#allocation2]  }
 0x2ca   :  { %4562 = vmatprep.mubr.msk.f32.mxu1 %vm5955_vm0, %v8050_v23  ;;  %5177 = vmatprep.mubr.msk.f32.mxu0 %vm5955_vm0, %v8050_v23  ;;  %s3554_s15 = sshll.u32 %s5957_s2, 4  ;;  %s3555_s15 = int_to_ptr.vmem [resolvable:$true] %s3554_s15 }
 0x2cb   :  { %s5930_s16 = scalar_lea.vmem %s3555_s15, 8064  ;;  %p5935_p1 = scmp.lt.s32.totalorder %s3555_s15, %s3555_s15 }
 0x2cc   :  { %p5931_p0 = scmp.ne.s32.totalorder %s3555_s15, %s5930_s16  ;;  %p5936_p2 = scmp.lt.s32.totalorder %s5930_s16, %s5930_s16 }
 0x2cd   :  { %4563 = vmatmul.mubr.f32.gmra.mrb[96].mxu1 %v8203_v52  ;;  %5178 = vmatmul.mubr.f32.gmra.mrb[96].mxu0 %v8143_v19 }
 0x2ce   :  { %4565 = vmatprep.mubr.msk.f32.mxu1 %vm5955_vm0, %v8050_v23  ;;  %5180 = vmatprep.mubr.msk.f32.mxu0 %vm5955_vm0, %v8050_v23  ;;  %p5937_p3 = por %p5936_p2, %p5935_p1 }
 0x2d0   :  { %p5938_p4 = pnand %p5937_p3, %p5931_p0 }
 0x2d1   :  { %4566 = vmatmul.mubr.f32.gmra.mrb[98].mxu1 %v8204_v1  ;;  %5181 = vmatmul.mubr.f32.gmra.mrb[98].mxu0 %v8144_v54 }
 0x2d2   :  { %4568 = vmatprep.mubr.msk.f32.mxu1 %vm5955_vm0, %v8050_v23  ;;  %5183 = vmatprep.mubr.msk.f32.mxu0 %vm5955_vm0, %v8050_v23 }
 0x2d5   :  { %4569 = vmatmul.mubr.f32.gmra.mrb[100].mxu1 %v8205_v12  ;;  %5184 = vmatmul.mubr.f32.gmra.mrb[100].mxu0 %v8145_v22 }
 0x2d6   :  { %4571 = vmatprep.mubr.msk.f32.mxu1 %vm5955_vm0, %v8050_v23  ;;  %5186 = vmatprep.mubr.msk.f32.mxu0 %vm5955_vm0, %v8050_v23 }
 0x2d9   :  { %4572 = vmatmul.mubr.f32.gmra.mrb[102].mxu1 %v8206_v34  ;;  %5187 = vmatmul.mubr.f32.gmra.mrb[102].mxu0 %v8146_v41 }
 0x2da   :  { %4574 = vmatprep.mubr.msk.f32.mxu1 %vm5955_vm0, %v8050_v23  ;;  %5189 = vmatprep.mubr.msk.f32.mxu0 %vm5955_vm0, %v8050_v23 }
 0x2dd   :  { %4575 = vmatmul.mubr.f32.gmra.mrb[104].mxu1 %v8207_v13  ;;  %5190 = vmatmul.mubr.f32.gmra.mrb[104].mxu0 %v8147_v8  ;;  %v8217_v13 = vld [vmem:[#allocation96_spill] sm:$0xff] }
 0x2de   :  { %4577 = vmatprep.mubr.msk.f32.mxu1 %vm5955_vm0, %v8050_v23  ;;  %5192 = vmatprep.mubr.msk.f32.mxu0 %vm5955_vm0, %v8050_v23 }
 0x2e0   :  { %v1553_v19 = vpop.f32.mrb[0].mxu1  ;;  %v3110_v54 = vpop.f32.mrb[0].mxu0 }
 0x2e1   :  { %v5294_v22 = vadd.f32 %v7764_v58, %v1553_v19  ;;  %v4420_v41 = vpop.f32.mrb[1].mxu1  ;;  %4578 = vmatmul.mubr.f32.gmra.mrb[106].mxu1 %v8208_v32  ;;  %v5035_v35 = vpop.f32.mrb[1].mxu0  ;;  %5193 = vmatmul.mubr.f32.gmra.mrb[106].mxu0 %v8148_v14 }
 0x2e2   :  { %4580 = vmatprep.mubr.msk.f32.mxu1 %vm5955_vm0, %v8050_v23  ;;  %5195 = vmatprep.mubr.msk.f32.mxu0 %vm5955_vm0, %v8050_v23 }
 0x2e3   :  { %v5295_v8 = vadd.f32 %v5294_v22, %v3110_v54  ;;  %v8218_v54 = vld [vmem:[#allocation95_spill] sm:$0xff] }
 0x2e4   :  { %v1560_v42 = vpop.f32.mrb[2].mxu1  ;;  %v3116_v46 = vpop.f32.mrb[2].mxu0 }
 0x2e5   :  { %3486 = vst [vmem:[#allocation2] sm:$0xff] %v5295_v8  ;;  %v5296_v53 = vadd.f32 %v7764_v58, %v1560_v42  ;;  %v4423_v63 = vpop.f32.mrb[3].mxu1  ;;  %4581 = vmatmul.mubr.f32.gmra.mrb[108].mxu1 %v8209_v17  ;;  %v5038_v38 = vpop.f32.mrb[3].mxu0  ;;  %5196 = vmatmul.mubr.f32.gmra.mrb[108].mxu0 %v8149_v15  ;;  %v8219_v42 = vld [vmem:[#allocation98_spill] sm:$0xff] }
 0x2e6   :  { %4583 = vmatprep.mubr.msk.f32.mxu1 %vm5955_vm0, %v8050_v23  ;;  %5198 = vmatprep.mubr.msk.f32.mxu0 %vm5955_vm0, %v8050_v23 }
 0x2e7   :  { %v5297_v14 = vadd.f32 %v5296_v53, %v3116_v46  ;;  %v8220_v53 = vld [vmem:[#allocation97_spill] sm:$0xff] }
 0x2e8   :  { %v1567_v44 = vpop.f32.mrb[4].mxu1  ;;  %v3122_v61 = vpop.f32.mrb[4].mxu0 }
 0x2e9   :  { %3487 = vst [vmem:[#allocation2 + $0x8] sm:$0xff] %v5297_v14  ;;  %v5298_v25 = vadd.f32 %v7764_v58, %v1567_v44  ;;  %v4426_v27 = vpop.f32.mrb[5].mxu1  ;;  %4584 = vmatmul.mubr.f32.gmra.mrb[110].mxu1 %v8210_v47  ;;  %v5041_v59 = vpop.f32.mrb[5].mxu0  ;;  %5199 = vmatmul.mubr.f32.gmra.mrb[110].mxu0 %v8150_v45 }
 0x2ea   :  { %4586 = vmatprep.mubr.msk.f32.mxu1 %vm5955_vm0, %v8050_v23  ;;  %5201 = vmatprep.mubr.msk.f32.mxu0 %vm5955_vm0, %v8050_v23 }
 0x2eb   :  { %v5299_v15 = vadd.f32 %v5298_v25, %v3122_v61 }
 0x2ec   :  { %v1574_v11 = vpop.f32.mrb[6].mxu1  ;;  %v3128_v10 = vpop.f32.mrb[6].mxu0 }
 0x2ed   :  { %3488 = vst [vmem:[#allocation2 + $0x10] sm:$0xff] %v5299_v15  ;;  %v5300_v18 = vadd.f32 %v7764_v58, %v1574_v11  ;;  %v4429_v50 = vpop.f32.mrb[7].mxu1  ;;  %4587 = vmatmul.mubr.f32.gmra.mrb[112].mxu1 %v8211_v9  ;;  %v5044_v3 = vpop.f32.mrb[7].mxu0  ;;  %5202 = vmatmul.mubr.f32.gmra.mrb[112].mxu0 %v8151_v2 }
 0x2ee   :  { %4589 = vmatprep.mubr.msk.f32.mxu1 %vm5955_vm0, %v8050_v23  ;;  %5204 = vmatprep.mubr.msk.f32.mxu0 %vm5955_vm0, %v8050_v23 }
 0x2ef   :  { %v5301_v45 = vadd.f32 %v5300_v18, %v3128_v10 }
 0x2f0   :  { %v1581_v37 = vpop.f32.mrb[8].mxu1  ;;  %v3134_v51 = vpop.f32.mrb[8].mxu0 }
 0x2f1   :  { %3489 = vst [vmem:[#allocation2 + $0x18] sm:$0xff] %v5301_v45  ;;  %v5302_v28 = vadd.f32 %v7764_v58, %v1581_v37  ;;  %v4432_v5 = vpop.f32.mrb[9].mxu1  ;;  %4590 = vmatmul.mubr.f32.gmra.mrb[114].mxu1 %v8212_v0  ;;  %v5047_v39 = vpop.f32.mrb[9].mxu0  ;;  %5205 = vmatmul.mubr.f32.gmra.mrb[114].mxu0 %v8152_v48 }
 0x2f2   :  { %4592 = vmatprep.mubr.msk.f32.mxu1 %vm5955_vm0, %v8050_v23  ;;  %5207 = vmatprep.mubr.msk.f32.mxu0 %vm5955_vm0, %v8050_v23 }
 0x2f3   :  { %v5303_v2 = vadd.f32 %v5302_v28, %v3134_v51 }
 0x2f4   :  { %v1588_v4 = vpop.f32.mrb[10].mxu1  ;;  %v3140_v6 = vpop.f32.mrb[10].mxu0 }
 0x2f5   :  { %3490 = vst [vmem:[#allocation2 + $0x20] sm:$0xff] %v5303_v2  ;;  %v5304_v7 = vadd.f32 %v7764_v58, %v1588_v4  ;;  %v4435_v24 = vpop.f32.mrb[11].mxu1  ;;  %4593 = vmatmul.mubr.f32.gmra.mrb[116].mxu1 %v8213_v60  ;;  %v5050_v36 = vpop.f32.mrb[11].mxu0  ;;  %5208 = vmatmul.mubr.f32.gmra.mrb[116].mxu0 %v8153_v57 }
 0x2f6   :  { %4595 = vmatprep.mubr.msk.f32.mxu1 %vm5955_vm0, %v8050_v23  ;;  %5210 = vmatprep.mubr.msk.f32.mxu0 %vm5955_vm0, %v8050_v23 }
 0x2f7   :  { %v5305_v48 = vadd.f32 %v5304_v7, %v3140_v6 }
 0x2f8   :  { %v1595_v40 = vpop.f32.mrb[12].mxu1  ;;  %v3146_v62 = vpop.f32.mrb[12].mxu0 }
 0x2f9   :  { %3491 = vst [vmem:[#allocation2 + $0x28] sm:$0xff] %v5305_v48  ;;  %v5306_v16 = vadd.f32 %v7764_v58, %v1595_v40  ;;  %v4438_v21 = vpop.f32.mrb[13].mxu1  ;;  %4596 = vmatmul.mubr.f32.gmra.mrb[118].mxu1 %v8214_v30  ;;  %v5053_v31 = vpop.f32.mrb[13].mxu0  ;;  %5211 = vmatmul.mubr.f32.gmra.mrb[118].mxu0 %v8154_v43 }
 0x2fa   :  { %4598 = vmatprep.mubr.msk.f32.mxu1 %vm5955_vm0, %v8050_v23  ;;  %5213 = vmatprep.mubr.msk.f32.mxu0 %vm5955_vm0, %v8050_v23 }
 0x2fb   :  { %v5307_v57 = vadd.f32 %v5306_v16, %v3146_v62 }
 0x2fc   :  { %v1602_v33 = vpop.f32.mrb[14].mxu1  ;;  %v3152_v49 = vpop.f32.mrb[14].mxu0 }
 0x2fd   :  { %3492 = vst [vmem:[#allocation2 + $0x30] sm:$0xff] %v5307_v57  ;;  %v5308_v26 = vadd.f32 %v7764_v58, %v1602_v33  ;;  %v4441_v29 = vpop.f32.mrb[15].mxu1  ;;  %4599 = vmatmul.mubr.f32.gmra.mrb[120].mxu1 %v8215_v55  ;;  %v5056_v56 = vpop.f32.mrb[15].mxu0  ;;  %5214 = vmatmul.mubr.f32.gmra.mrb[120].mxu0 %v8216_v20 }
 0x2fe   :  { %4601 = vmatprep.mubr.msk.f32.mxu1 %vm5955_vm0, %v8050_v23  ;;  %5216 = vmatprep.mubr.msk.f32.mxu0 %vm5955_vm0, %v8050_v23 }
 0x2ff   :  { %v5309_v43 = vadd.f32 %v5308_v26, %v3152_v49 }
 0x300   :  { %v1609_v52 = vpop.f32.mrb[16].mxu1  ;;  %v3158_v1 = vpop.f32.mrb[16].mxu0 }
 0x301   :  { %3493 = vst [vmem:[#allocation2 + $0x38] sm:$0xff] %v5309_v43  ;;  %v5310_v12 = vadd.f32 %v7764_v58, %v1609_v52  ;;  %v4444_v34 = vpop.f32.mrb[17].mxu1  ;;  %4602 = vmatmul.mubr.f32.gmra.mrb[122].mxu1 %v8217_v13  ;;  %v5059_v19 = vpop.f32.mrb[17].mxu0  ;;  %5217 = vmatmul.mubr.f32.gmra.mrb[122].mxu0 %v8218_v54 }
 0x302   :  { %4604 = vmatprep.mubr.msk.f32.mxu1 %vm5955_vm0, %v8050_v23  ;;  %5219 = vmatprep.mubr.msk.f32.mxu0 %vm5955_vm0, %v8050_v23 }
 0x303   :  { %v5311_v22 = vadd.f32 %v5310_v12, %v3158_v1 }
 0x304   :  { %v1616_v41 = vpop.f32.mrb[18].mxu1  ;;  %v3164_v32 = vpop.f32.mrb[18].mxu0 }
 0x305   :  { %3494 = vst [vmem:[#allocation2 + $0x40] sm:$0xff] %v5311_v22  ;;  %v5312_v35 = vadd.f32 %v7764_v58, %v1616_v41  ;;  %v4447_v8 = vpop.f32.mrb[19].mxu1  ;;  %4605 = vmatmul.mubr.f32.gmra.mrb[124].mxu1 %v8219_v42  ;;  %v5062_v46 = vpop.f32.mrb[19].mxu0  ;;  %5220 = vmatmul.mubr.f32.gmra.mrb[124].mxu0 %v8220_v53 }
 0x307   :  { %v5313_v63 = vadd.f32 %v5312_v35, %v3164_v32 }
 0x308   :  { %v1623_v17 = vpop.f32.mrb[20].mxu1  ;;  %v3170_v38 = vpop.f32.mrb[20].mxu0 }
 0x309   :  { %3495 = vst [vmem:[#allocation2 + $0x48] sm:$0xff] %v5313_v63  ;;  %v5314_v14 = vadd.f32 %v7764_v58, %v1623_v17  ;;  %v4450_v44 = vpop.f32.mrb[21].mxu1  ;;  %v5065_v23 = vpop.f32.mrb[21].mxu0 }
 0x30b   :  { %v5315_v61 = vadd.f32 %v5314_v14, %v3170_v38 }
 0x30c   :  { %v1630_v25 = vpop.f32.mrb[22].mxu1  ;;  %v3176_v27 = vpop.f32.mrb[22].mxu0 }
 0x30d   :  { %3496 = vst [vmem:[#allocation2 + $0x50] sm:$0xff] %v5315_v61  ;;  %v5316_v47 = vadd.f32 %v7764_v58, %v1630_v25  ;;  %v4453_v59 = vpop.f32.mrb[23].mxu1  ;;  %v5068_v15 = vpop.f32.mrb[23].mxu0 }
 0x30f   :  { %v5317_v11 = vadd.f32 %v5316_v47, %v3176_v27 }
 0x310   :  { %v1637_v10 = vpop.f32.mrb[24].mxu1  ;;  %v3182_v18 = vpop.f32.mrb[24].mxu0 }
 0x311   :  { %3497 = vst [vmem:[#allocation2 + $0x58] sm:$0xff] %v5317_v11  ;;  %v5318_v50 = vadd.f32 %v7764_v58, %v1637_v10  ;;  %v4456_v9 = vpop.f32.mrb[25].mxu1  ;;  %v5071_v3 = vpop.f32.mrb[25].mxu0 }
 0x313   :  { %v5319_v45 = vadd.f32 %v5318_v50, %v3182_v18 }
 0x314   :  { %v1644_v37 = vpop.f32.mrb[26].mxu1  ;;  %v3188_v51 = vpop.f32.mrb[26].mxu0 }
 0x315   :  { %3498 = vst [vmem:[#allocation2 + $0x60] sm:$0xff] %v5319_v45  ;;  %v5320_v28 = vadd.f32 %v7764_v58, %v1644_v37  ;;  %v4459_v5 = vpop.f32.mrb[27].mxu1  ;;  %v5074_v0 = vpop.f32.mrb[27].mxu0 }
 0x317   :  { %v5321_v39 = vadd.f32 %v5320_v28, %v3188_v51 }
 0x318   :  { %v1651_v2 = vpop.f32.mrb[28].mxu1  ;;  %v3194_v4 = vpop.f32.mrb[28].mxu0 }
 0x319   :  { %3499 = vst [vmem:[#allocation2 + $0x68] sm:$0xff] %v5321_v39  ;;  %v5322_v6 = vadd.f32 %v7764_v58, %v1651_v2  ;;  %v4462_v7 = vpop.f32.mrb[29].mxu1  ;;  %v5077_v24 = vpop.f32.mrb[29].mxu0 }
 0x31b   :  { %v5323_v60 = vadd.f32 %v5322_v6, %v3194_v4 }
 0x31c   :  { %v1658_v36 = vpop.f32.mrb[30].mxu1  ;;  %v3200_v48 = vpop.f32.mrb[30].mxu0 }
 0x31d   :  { %3500 = vst [vmem:[#allocation2 + $0x70] sm:$0xff] %v5323_v60  ;;  %v5324_v40 = vadd.f32 %v7764_v58, %v1658_v36  ;;  %v4465_v62 = vpop.f32.mrb[31].mxu1  ;;  %v5080_v16 = vpop.f32.mrb[31].mxu0 }
 0x31f   :  { %v5325_v21 = vadd.f32 %v5324_v40, %v3200_v48 }
 0x320   :  { %v1665_v30 = vpop.f32.mrb[32].mxu1  ;;  %v3206_v31 = vpop.f32.mrb[32].mxu0 }
 0x321   :  { %3501 = vst [vmem:[#allocation2 + $0x78] sm:$0xff] %v5325_v21  ;;  %v5326_v57 = vadd.f32 %v7764_v58, %v1665_v30  ;;  %v4468_v33 = vpop.f32.mrb[33].mxu1  ;;  %v5083_v49 = vpop.f32.mrb[33].mxu0 }
 0x323   :  { %v5327_v26 = vadd.f32 %v5326_v57, %v3206_v31 }
 0x324   :  { %v1672_v29 = vpop.f32.mrb[34].mxu1  ;;  %v3212_v55 = vpop.f32.mrb[34].mxu0 }
 0x325   :  { %3502 = vst [vmem:[#allocation2 + $0x80] sm:$0xff] %v5327_v26  ;;  %v5328_v56 = vadd.f32 %v7764_v58, %v1672_v29  ;;  %v4471_v20 = vpop.f32.mrb[35].mxu1  ;;  %v5086_v43 = vpop.f32.mrb[35].mxu0 }
 0x327   :  { %v5329_v52 = vadd.f32 %v5328_v56, %v3212_v55 }
 0x328   :  { %v1679_v1 = vpop.f32.mrb[36].mxu1  ;;  %v3218_v12 = vpop.f32.mrb[36].mxu0 }
 0x329   :  { %3503 = vst [vmem:[#allocation2 + $0x88] sm:$0xff] %v5329_v52  ;;  %v5330_v34 = vadd.f32 %v7764_v58, %v1679_v1  ;;  %v4474_v13 = vpop.f32.mrb[37].mxu1  ;;  %v5089_v19 = vpop.f32.mrb[37].mxu0 }
 0x32b   :  { %v5331_v54 = vadd.f32 %v5330_v34, %v3218_v12 }
 0x32c   :  { %v1686_v22 = vpop.f32.mrb[38].mxu1  ;;  %v3224_v41 = vpop.f32.mrb[38].mxu0 }
 0x32d   :  { %3504 = vst [vmem:[#allocation2 + $0x90] sm:$0xff] %v5331_v54  ;;  %v5332_v32 = vadd.f32 %v7764_v58, %v1686_v22  ;;  %v4477_v35 = vpop.f32.mrb[39].mxu1  ;;  %v5092_v8 = vpop.f32.mrb[39].mxu0 }
 0x32f   :  { %v5333_v42 = vadd.f32 %v5332_v32, %v3224_v41 }
 0x330   :  { %v1693_v46 = vpop.f32.mrb[40].mxu1  ;;  %v3230_v53 = vpop.f32.mrb[40].mxu0 }
 0x331   :  { %3505 = vst [vmem:[#allocation2 + $0x98] sm:$0xff] %v5333_v42  ;;  %v5334_v63 = vadd.f32 %v7764_v58, %v1693_v46  ;;  %v4480_v17 = vpop.f32.mrb[41].mxu1  ;;  %v5095_v38 = vpop.f32.mrb[41].mxu0 }
 0x333   :  { %v5335_v14 = vadd.f32 %v5334_v63, %v3230_v53 }
 0x334   :  { %v1700_v44 = vpop.f32.mrb[42].mxu1  ;;  %v3236_v23 = vpop.f32.mrb[42].mxu0 }
 0x335   :  { %3506 = vst [vmem:[#allocation2 + $0xa0] sm:$0xff] %v5335_v14  ;;  %v5336_v61 = vadd.f32 %v7764_v58, %v1700_v44  ;;  %v4483_v25 = vpop.f32.mrb[43].mxu1  ;;  %v5098_v27 = vpop.f32.mrb[43].mxu0 }
 0x337   :  { %v5337_v47 = vadd.f32 %v5336_v61, %v3236_v23 }
 0x338   :  { %v1707_v59 = vpop.f32.mrb[44].mxu1  ;;  %v3242_v15 = vpop.f32.mrb[44].mxu0 }
 0x339   :  { %3507 = vst [vmem:[#allocation2 + $0xa8] sm:$0xff] %v5337_v47  ;;  %v5338_v11 = vadd.f32 %v7764_v58, %v1707_v59  ;;  %v4486_v10 = vpop.f32.mrb[45].mxu1  ;;  %v5101_v18 = vpop.f32.mrb[45].mxu0 }
 0x33b   :  { %v5339_v50 = vadd.f32 %v5338_v11, %v3242_v15 }
 0x33c   :  { %v1714_v9 = vpop.f32.mrb[46].mxu1  ;;  %v3248_v3 = vpop.f32.mrb[46].mxu0 }
 0x33d   :  { %3508 = vst [vmem:[#allocation2 + $0xb0] sm:$0xff] %v5339_v50  ;;  %v5340_v45 = vadd.f32 %v7764_v58, %v1714_v9  ;;  %v4489_v37 = vpop.f32.mrb[47].mxu1  ;;  %v5104_v51 = vpop.f32.mrb[47].mxu0 }
 0x33f   :  { %v5341_v28 = vadd.f32 %v5340_v45, %v3248_v3 }
 0x340   :  { %v1721_v5 = vpop.f32.mrb[48].mxu1  ;;  %v3254_v0 = vpop.f32.mrb[48].mxu0 }
 0x341   :  { %3509 = vst [vmem:[#allocation2 + $0xb8] sm:$0xff] %v5341_v28  ;;  %v5342_v39 = vadd.f32 %v7764_v58, %v1721_v5  ;;  %v4492_v2 = vpop.f32.mrb[49].mxu1  ;;  %v5107_v4 = vpop.f32.mrb[49].mxu0 }
 0x343   :  { %v5343_v6 = vadd.f32 %v5342_v39, %v3254_v0 }
 0x344   :  { %v1728_v7 = vpop.f32.mrb[50].mxu1  ;;  %v3260_v24 = vpop.f32.mrb[50].mxu0 }
 0x345   :  { %3510 = vst [vmem:[#allocation2 + $0xc0] sm:$0xff] %v5343_v6  ;;  %v5344_v60 = vadd.f32 %v7764_v58, %v1728_v7  ;;  %v4495_v36 = vpop.f32.mrb[51].mxu1  ;;  %v5110_v48 = vpop.f32.mrb[51].mxu0 }
 0x347   :  { %v5345_v40 = vadd.f32 %v5344_v60, %v3260_v24 }
 0x348   :  { %v1735_v62 = vpop.f32.mrb[52].mxu1  ;;  %v3266_v16 = vpop.f32.mrb[52].mxu0 }
 0x349   :  { %3511 = vst [vmem:[#allocation2 + $0xc8] sm:$0xff] %v5345_v40  ;;  %v5346_v21 = vadd.f32 %v7764_v58, %v1735_v62  ;;  %v4498_v30 = vpop.f32.mrb[53].mxu1  ;;  %v5113_v31 = vpop.f32.mrb[53].mxu0 }
 0x34b   :  { %v5347_v57 = vadd.f32 %v5346_v21, %v3266_v16 }
 0x34c   :  { %v1742_v33 = vpop.f32.mrb[54].mxu1  ;;  %v3272_v49 = vpop.f32.mrb[54].mxu0 }
 0x34d   :  { %3512 = vst [vmem:[#allocation2 + $0xd0] sm:$0xff] %v5347_v57  ;;  %v5348_v26 = vadd.f32 %v7764_v58, %v1742_v33  ;;  %v4501_v29 = vpop.f32.mrb[55].mxu1  ;;  %v5116_v55 = vpop.f32.mrb[55].mxu0 }
 0x34f   :  { %v5349_v56 = vadd.f32 %v5348_v26, %v3272_v49 }
 0x350   :  { %v1749_v20 = vpop.f32.mrb[56].mxu1  ;;  %v3278_v43 = vpop.f32.mrb[56].mxu0 }
 0x351   :  { %3513 = vst [vmem:[#allocation2 + $0xd8] sm:$0xff] %v5349_v56  ;;  %v5350_v52 = vadd.f32 %v7764_v58, %v1749_v20  ;;  %v4504_v1 = vpop.f32.mrb[57].mxu1  ;;  %v5119_v12 = vpop.f32.mrb[57].mxu0 }
 0x353   :  { %v5351_v34 = vadd.f32 %v5350_v52, %v3278_v43 }
 0x354   :  { %v1756_v13 = vpop.f32.mrb[58].mxu1  ;;  %v3284_v19 = vpop.f32.mrb[58].mxu0 }
 0x355   :  { %3514 = vst [vmem:[#allocation2 + $0xe0] sm:$0xff] %v5351_v34  ;;  %v5352_v54 = vadd.f32 %v7764_v58, %v1756_v13  ;;  %v4507_v22 = vpop.f32.mrb[59].mxu1  ;;  %v5122_v41 = vpop.f32.mrb[59].mxu0 }
 0x357   :  { %v5353_v32 = vadd.f32 %v5352_v54, %v3284_v19 }
 0x358   :  { %v1763_v35 = vpop.f32.mrb[60].mxu1  ;;  %v3290_v8 = vpop.f32.mrb[60].mxu0 }
 0x359   :  { %3515 = vst [vmem:[#allocation2 + $0xe8] sm:$0xff] %v5353_v32  ;;  %v5354_v42 = vadd.f32 %v7764_v58, %v1763_v35  ;;  %v4510_v46 = vpop.f32.mrb[61].mxu1  ;;  %v5125_v53 = vpop.f32.mrb[61].mxu0 }
 0x35b   :  { %v5355_v63 = vadd.f32 %v5354_v42, %v3290_v8 }
 0x35c   :  { %v1770_v17 = vpop.f32.mrb[62].mxu1  ;;  %v3296_v38 = vpop.f32.mrb[62].mxu0 }
 0x35d   :  { %3516 = vst [vmem:[#allocation2 + $0xf0] sm:$0xff] %v5355_v63  ;;  %v5356_v14 = vadd.f32 %v7764_v58, %v1770_v17  ;;  %v4513_v44 = vpop.f32.mrb[63].mxu1  ;;  %v5128_v23 = vpop.f32.mrb[63].mxu0 }
 0x35f   :  { %v5357_v61 = vadd.f32 %v5356_v14, %v3296_v38 }
 0x360   :  { %v1777_v25 = vpop.f32.mrb[64].mxu1  ;;  %v3302_v27 = vpop.f32.mrb[64].mxu0 }
 0x361   :  { %3517 = vst [vmem:[#allocation2 + $0xf8] sm:$0xff] %v5357_v61  ;;  %v5358_v47 = vadd.f32 %v7764_v58, %v1777_v25  ;;  %v4516_v59 = vpop.f32.mrb[65].mxu1  ;;  %v5131_v15 = vpop.f32.mrb[65].mxu0 }
 0x363   :  { %v5359_v11 = vadd.f32 %v5358_v47, %v3302_v27 }
 0x364   :  { %v1784_v10 = vpop.f32.mrb[66].mxu1  ;;  %v3308_v18 = vpop.f32.mrb[66].mxu0 }
 0x365   :  { %3518 = vst [vmem:[#allocation2 + $0x100] sm:$0xff] %v5359_v11  ;;  %v5360_v50 = vadd.f32 %v7764_v58, %v1784_v10  ;;  %v4519_v9 = vpop.f32.mrb[67].mxu1  ;;  %v5134_v3 = vpop.f32.mrb[67].mxu0 }
 0x367   :  { %v5361_v45 = vadd.f32 %v5360_v50, %v3308_v18 }
 0x368   :  { %v1791_v37 = vpop.f32.mrb[68].mxu1  ;;  %v3314_v51 = vpop.f32.mrb[68].mxu0 }
 0x369   :  { %3519 = vst [vmem:[#allocation2 + $0x108] sm:$0xff] %v5361_v45  ;;  %v5362_v28 = vadd.f32 %v7764_v58, %v1791_v37  ;;  %v4522_v5 = vpop.f32.mrb[69].mxu1  ;;  %v5137_v0 = vpop.f32.mrb[69].mxu0 }
 0x36b   :  { %v5363_v39 = vadd.f32 %v5362_v28, %v3314_v51 }
 0x36c   :  { %v1798_v2 = vpop.f32.mrb[70].mxu1  ;;  %v3320_v4 = vpop.f32.mrb[70].mxu0 }
 0x36d   :  { %3520 = vst [vmem:[#allocation2 + $0x110] sm:$0xff] %v5363_v39  ;;  %v5364_v6 = vadd.f32 %v7764_v58, %v1798_v2  ;;  %v4525_v7 = vpop.f32.mrb[71].mxu1  ;;  %v5140_v24 = vpop.f32.mrb[71].mxu0 }
 0x36f   :  { %v5365_v60 = vadd.f32 %v5364_v6, %v3320_v4 }
 0x370   :  { %v1805_v36 = vpop.f32.mrb[72].mxu1  ;;  %v3326_v48 = vpop.f32.mrb[72].mxu0 }
 0x371   :  { %3521 = vst [vmem:[#allocation2 + $0x118] sm:$0xff] %v5365_v60  ;;  %v5366_v40 = vadd.f32 %v7764_v58, %v1805_v36  ;;  %v4528_v62 = vpop.f32.mrb[73].mxu1  ;;  %v5143_v16 = vpop.f32.mrb[73].mxu0 }
 0x373   :  { %v5367_v21 = vadd.f32 %v5366_v40, %v3326_v48 }
 0x374   :  { %v1812_v30 = vpop.f32.mrb[74].mxu1  ;;  %v3332_v31 = vpop.f32.mrb[74].mxu0 }
 0x375   :  { %3522 = vst [vmem:[#allocation2 + $0x120] sm:$0xff] %v5367_v21  ;;  %v5368_v57 = vadd.f32 %v7764_v58, %v1812_v30  ;;  %v4531_v33 = vpop.f32.mrb[75].mxu1  ;;  %v5146_v49 = vpop.f32.mrb[75].mxu0 }
 0x377   :  { %v5369_v26 = vadd.f32 %v5368_v57, %v3332_v31 }
 0x378   :  { %v1819_v29 = vpop.f32.mrb[76].mxu1  ;;  %v3338_v55 = vpop.f32.mrb[76].mxu0 }
 0x379   :  { %3523 = vst [vmem:[#allocation2 + $0x128] sm:$0xff] %v5369_v26  ;;  %v5370_v56 = vadd.f32 %v7764_v58, %v1819_v29  ;;  %v4534_v20 = vpop.f32.mrb[77].mxu1  ;;  %v5149_v43 = vpop.f32.mrb[77].mxu0 }
 0x37b   :  { %v5371_v52 = vadd.f32 %v5370_v56, %v3338_v55 }
 0x37c   :  { %v1826_v1 = vpop.f32.mrb[78].mxu1  ;;  %v3344_v12 = vpop.f32.mrb[78].mxu0 }
 0x37d   :  { %3524 = vst [vmem:[#allocation2 + $0x130] sm:$0xff] %v5371_v52  ;;  %v5372_v34 = vadd.f32 %v7764_v58, %v1826_v1  ;;  %v4537_v13 = vpop.f32.mrb[79].mxu1  ;;  %v5152_v19 = vpop.f32.mrb[79].mxu0 }
 0x37f   :  { %v5373_v54 = vadd.f32 %v5372_v34, %v3344_v12 }
 0x380   :  { %v1833_v22 = vpop.f32.mrb[80].mxu1  ;;  %v3350_v41 = vpop.f32.mrb[80].mxu0 }
 0x381   :  { %3525 = vst [vmem:[#allocation2 + $0x138] sm:$0xff] %v5373_v54  ;;  %v5374_v32 = vadd.f32 %v7764_v58, %v1833_v22  ;;  %v4540_v35 = vpop.f32.mrb[81].mxu1  ;;  %v5155_v8 = vpop.f32.mrb[81].mxu0 }
 0x383   :  { %v5375_v42 = vadd.f32 %v5374_v32, %v3350_v41 }
 0x384   :  { %v1840_v46 = vpop.f32.mrb[82].mxu1  ;;  %v3356_v53 = vpop.f32.mrb[82].mxu0 }
 0x385   :  { %3526 = vst [vmem:[#allocation2 + $0x140] sm:$0xff] %v5375_v42  ;;  %v5376_v63 = vadd.f32 %v7764_v58, %v1840_v46  ;;  %v4543_v17 = vpop.f32.mrb[83].mxu1  ;;  %v5158_v38 = vpop.f32.mrb[83].mxu0 }
 0x387   :  { %v5377_v14 = vadd.f32 %v5376_v63, %v3356_v53 }
 0x388   :  { %v1847_v44 = vpop.f32.mrb[84].mxu1  ;;  %v3362_v23 = vpop.f32.mrb[84].mxu0 }
 0x389   :  { %3527 = vst [vmem:[#allocation2 + $0x148] sm:$0xff] %v5377_v14  ;;  %v5378_v61 = vadd.f32 %v7764_v58, %v1847_v44  ;;  %v4546_v25 = vpop.f32.mrb[85].mxu1  ;;  %v5161_v27 = vpop.f32.mrb[85].mxu0 }
 0x38b   :  { %v5379_v47 = vadd.f32 %v5378_v61, %v3362_v23 }
 0x38c   :  { %v1854_v59 = vpop.f32.mrb[86].mxu1  ;;  %v3368_v15 = vpop.f32.mrb[86].mxu0 }
 0x38d   :  { %3528 = vst [vmem:[#allocation2 + $0x150] sm:$0xff] %v5379_v47  ;;  %v5380_v11 = vadd.f32 %v7764_v58, %v1854_v59  ;;  %v4549_v10 = vpop.f32.mrb[87].mxu1  ;;  %v5164_v18 = vpop.f32.mrb[87].mxu0 }
 0x38f   :  { %v5381_v50 = vadd.f32 %v5380_v11, %v3368_v15 }
 0x390   :  { %v1861_v9 = vpop.f32.mrb[88].mxu1  ;;  %v3374_v3 = vpop.f32.mrb[88].mxu0 }
 0x391   :  { %3529 = vst [vmem:[#allocation2 + $0x158] sm:$0xff] %v5381_v50  ;;  %v5382_v45 = vadd.f32 %v7764_v58, %v1861_v9  ;;  %v4552_v37 = vpop.f32.mrb[89].mxu1  ;;  %v5167_v51 = vpop.f32.mrb[89].mxu0 }
 0x393   :  { %v5383_v28 = vadd.f32 %v5382_v45, %v3374_v3 }
 0x394   :  { %v1868_v5 = vpop.f32.mrb[90].mxu1  ;;  %v3380_v0 = vpop.f32.mrb[90].mxu0 }
 0x395   :  { %3530 = vst [vmem:[#allocation2 + $0x160] sm:$0xff] %v5383_v28  ;;  %v5384_v39 = vadd.f32 %v7764_v58, %v1868_v5  ;;  %v4555_v2 = vpop.f32.mrb[91].mxu1  ;;  %v5170_v4 = vpop.f32.mrb[91].mxu0 }
 0x397   :  { %v5385_v6 = vadd.f32 %v5384_v39, %v3380_v0 }
 0x398   :  { %v1875_v7 = vpop.f32.mrb[92].mxu1  ;;  %v3386_v24 = vpop.f32.mrb[92].mxu0 }
 0x399   :  { %3531 = vst [vmem:[#allocation2 + $0x168] sm:$0xff] %v5385_v6  ;;  %v5386_v60 = vadd.f32 %v7764_v58, %v1875_v7  ;;  %v4558_v36 = vpop.f32.mrb[93].mxu1  ;;  %v5173_v48 = vpop.f32.mrb[93].mxu0 }
 0x39b   :  { %v5387_v40 = vadd.f32 %v5386_v60, %v3386_v24 }
 0x39c   :  { %v1882_v62 = vpop.f32.mrb[94].mxu1  ;;  %v3392_v16 = vpop.f32.mrb[94].mxu0 }
 0x39d   :  { %3532 = vst [vmem:[#allocation2 + $0x170] sm:$0xff] %v5387_v40  ;;  %v5388_v21 = vadd.f32 %v7764_v58, %v1882_v62  ;;  %v4561_v30 = vpop.f32.mrb[95].mxu1  ;;  %v5176_v31 = vpop.f32.mrb[95].mxu0 }
 0x39f   :  { %v5389_v57 = vadd.f32 %v5388_v21, %v3392_v16 }
 0x3a0   :  { %v1889_v33 = vpop.f32.mrb[96].mxu1  ;;  %v3398_v49 = vpop.f32.mrb[96].mxu0 }
 0x3a1   :  { %3533 = vst [vmem:[#allocation2 + $0x178] sm:$0xff] %v5389_v57  ;;  %v5390_v26 = vadd.f32 %v7764_v58, %v1889_v33  ;;  %v4564_v29 = vpop.f32.mrb[97].mxu1  ;;  %v5179_v55 = vpop.f32.mrb[97].mxu0 }
 0x3a3   :  { %v5391_v56 = vadd.f32 %v5390_v26, %v3398_v49 }
 0x3a4   :  { %v1896_v20 = vpop.f32.mrb[98].mxu1  ;;  %v3404_v43 = vpop.f32.mrb[98].mxu0 }
 0x3a5   :  { %3534 = vst [vmem:[#allocation2 + $0x180] sm:$0xff] %v5391_v56  ;;  %v5392_v52 = vadd.f32 %v7764_v58, %v1896_v20  ;;  %v4567_v1 = vpop.f32.mrb[99].mxu1  ;;  %v5182_v12 = vpop.f32.mrb[99].mxu0 }
 0x3a7   :  { %v5393_v34 = vadd.f32 %v5392_v52, %v3404_v43 }
 0x3a8   :  { %v1903_v13 = vpop.f32.mrb[100].mxu1  ;;  %v3410_v19 = vpop.f32.mrb[100].mxu0 }
 0x3a9   :  { %3535 = vst [vmem:[#allocation2 + $0x188] sm:$0xff] %v5393_v34  ;;  %v5394_v54 = vadd.f32 %v7764_v58, %v1903_v13  ;;  %v4570_v22 = vpop.f32.mrb[101].mxu1  ;;  %v5185_v41 = vpop.f32.mrb[101].mxu0 }
 0x3ab   :  { %v5395_v32 = vadd.f32 %v5394_v54, %v3410_v19 }
 0x3ac   :  { %v1910_v35 = vpop.f32.mrb[102].mxu1  ;;  %v3416_v8 = vpop.f32.mrb[102].mxu0 }
 0x3ad   :  { %3536 = vst [vmem:[#allocation2 + $0x190] sm:$0xff] %v5395_v32  ;;  %v5396_v42 = vadd.f32 %v7764_v58, %v1910_v35  ;;  %v4573_v46 = vpop.f32.mrb[103].mxu1  ;;  %v5188_v53 = vpop.f32.mrb[103].mxu0 }
 0x3af   :  { %v5397_v63 = vadd.f32 %v5396_v42, %v3416_v8 }
 0x3b0   :  { %v1917_v17 = vpop.f32.mrb[104].mxu1  ;;  %v3422_v38 = vpop.f32.mrb[104].mxu0 }
 0x3b1   :  { %3537 = vst [vmem:[#allocation2 + $0x198] sm:$0xff] %v5397_v63  ;;  %v5398_v14 = vadd.f32 %v7764_v58, %v1917_v17  ;;  %v4576_v44 = vpop.f32.mrb[105].mxu1  ;;  %v5191_v23 = vpop.f32.mrb[105].mxu0 }
 0x3b3   :  { %v5399_v61 = vadd.f32 %v5398_v14, %v3422_v38 }
 0x3b4   :  { %v1924_v25 = vpop.f32.mrb[106].mxu1  ;;  %v3428_v27 = vpop.f32.mrb[106].mxu0 }
 0x3b5   :  { %3538 = vst [vmem:[#allocation2 + $0x1a0] sm:$0xff] %v5399_v61  ;;  %v5400_v47 = vadd.f32 %v7764_v58, %v1924_v25  ;;  %v4579_v59 = vpop.f32.mrb[107].mxu1  ;;  %v5194_v15 = vpop.f32.mrb[107].mxu0 }
 0x3b7   :  { %v5401_v11 = vadd.f32 %v5400_v47, %v3428_v27 }
 0x3b8   :  { %v1931_v10 = vpop.f32.mrb[108].mxu1  ;;  %v3434_v18 = vpop.f32.mrb[108].mxu0 }
 0x3b9   :  { %3539 = vst [vmem:[#allocation2 + $0x1a8] sm:$0xff] %v5401_v11  ;;  %v5402_v50 = vadd.f32 %v7764_v58, %v1931_v10  ;;  %v4582_v9 = vpop.f32.mrb[109].mxu1  ;;  %v5197_v3 = vpop.f32.mrb[109].mxu0 }
 0x3bb   :  { %v5403_v45 = vadd.f32 %v5402_v50, %v3434_v18 }
 0x3bc   :  { %v1938_v37 = vpop.f32.mrb[110].mxu1  ;;  %v3440_v51 = vpop.f32.mrb[110].mxu0 }
 0x3bd   :  { %3540 = vst [vmem:[#allocation2 + $0x1b0] sm:$0xff] %v5403_v45  ;;  %v5404_v28 = vadd.f32 %v7764_v58, %v1938_v37  ;;  %v4585_v5 = vpop.f32.mrb[111].mxu1  ;;  %v5200_v0 = vpop.f32.mrb[111].mxu0 }
 0x3bf   :  { %v5405_v39 = vadd.f32 %v5404_v28, %v3440_v51 }
 0x3c0   :  { %v1945_v2 = vpop.f32.mrb[112].mxu1  ;;  %v3446_v4 = vpop.f32.mrb[112].mxu0 }
 0x3c1   :  { %3541 = vst [vmem:[#allocation2 + $0x1b8] sm:$0xff] %v5405_v39  ;;  %v5406_v6 = vadd.f32 %v7764_v58, %v1945_v2  ;;  %v4588_v7 = vpop.f32.mrb[113].mxu1  ;;  %v5203_v24 = vpop.f32.mrb[113].mxu0 }
 0x3c3   :  { %v5407_v60 = vadd.f32 %v5406_v6, %v3446_v4 }
 0x3c4   :  { %v1952_v36 = vpop.f32.mrb[114].mxu1  ;;  %v3452_v48 = vpop.f32.mrb[114].mxu0 }
 0x3c5   :  { %3542 = vst [vmem:[#allocation2 + $0x1c0] sm:$0xff] %v5407_v60  ;;  %v5408_v40 = vadd.f32 %v7764_v58, %v1952_v36  ;;  %v4591_v62 = vpop.f32.mrb[115].mxu1  ;;  %v5206_v16 = vpop.f32.mrb[115].mxu0 }
 0x3c7   :  { %v5409_v21 = vadd.f32 %v5408_v40, %v3452_v48 }
 0x3c8   :  { %v1959_v30 = vpop.f32.mrb[116].mxu1  ;;  %v3458_v31 = vpop.f32.mrb[116].mxu0 }
 0x3c9   :  { %3543 = vst [vmem:[#allocation2 + $0x1c8] sm:$0xff] %v5409_v21  ;;  %v5410_v57 = vadd.f32 %v7764_v58, %v1959_v30  ;;  %v4594_v33 = vpop.f32.mrb[117].mxu1  ;;  %v5209_v49 = vpop.f32.mrb[117].mxu0 }
 0x3cb   :  { %v5411_v26 = vadd.f32 %v5410_v57, %v3458_v31 }
 0x3cc   :  { %v1966_v29 = vpop.f32.mrb[118].mxu1  ;;  %v3464_v55 = vpop.f32.mrb[118].mxu0 }
 0x3cd   :  { %3544 = vst [vmem:[#allocation2 + $0x1d0] sm:$0xff] %v5411_v26  ;;  %v5412_v56 = vadd.f32 %v7764_v58, %v1966_v29  ;;  %v4597_v20 = vpop.f32.mrb[119].mxu1  ;;  %v5212_v43 = vpop.f32.mrb[119].mxu0 }
 0x3cf   :  { %v5413_v52 = vadd.f32 %v5412_v56, %v3464_v55 }
 0x3d0   :  { %v1973_v1 = vpop.f32.mrb[120].mxu1  ;;  %v3470_v12 = vpop.f32.mrb[120].mxu0 }
 0x3d1   :  { %3545 = vst [vmem:[#allocation2 + $0x1d8] sm:$0xff] %v5413_v52  ;;  %v5414_v34 = vadd.f32 %v7764_v58, %v1973_v1  ;;  %v4600_v13 = vpop.f32.mrb[121].mxu1  ;;  %v5215_v19 = vpop.f32.mrb[121].mxu0 }
 0x3d3   :  { %v5415_v54 = vadd.f32 %v5414_v34, %v3470_v12 }
 0x3d4   :  { %v1980_v22 = vpop.f32.mrb[122].mxu1  ;;  %v3476_v41 = vpop.f32.mrb[122].mxu0 }
 0x3d5   :  { %3546 = vst [vmem:[#allocation2 + $0x1e0] sm:$0xff] %v5415_v54  ;;  %v5416_v32 = vadd.f32 %v7764_v58, %v1980_v22  ;;  %v4603_v35 = vpop.f32.mrb[123].mxu1  ;;  %v5218_v8 = vpop.f32.mrb[123].mxu0 }
 0x3d7   :  { %v5417_v42 = vadd.f32 %v5416_v32, %v3476_v41 }
 0x3d8   :  { %v1987_v46 = vpop.f32.mrb[124].mxu1  ;;  %v3482_v53 = vpop.f32.mrb[124].mxu0 }
 0x3d9   :  { %3547 = vst [vmem:[#allocation2 + $0x1e8] sm:$0xff] %v5417_v42  ;;  %v5418_v63 = vadd.f32 %v7764_v58, %v1987_v46  ;;  %v4606_v17 = vpop.f32.mrb[125].mxu1  ;;  %v5221_v38 = vpop.f32.mrb[125].mxu0 }
 0x3db   :  { %v5419_v14 = vadd.f32 %v5418_v63, %v3482_v53 }
 0x3dd   :  { %3548 = vst [vmem:[#allocation2 + $0x1f0] sm:$0xf] %v5419_v14 }
 0x3de   :  { %5941 = shalt.err (!%p5938_p4)
}
 0x3df   :  { %s5942_s19 = scalar_lea.hbm %s7904_s3, 8064 }
 0x3e0   :  { %p5943_p5 = scmp.ne.s32.totalorder %s7904_s3, %s5942_s19  ;;  %p5946_p6 = scmp.lt.u32.totalorder %s5942_s19, %s7904_s3 }
 0x3e2   :  { %p5948_p7 = pnand %p5946_p6, %p5943_p5 }
 0x3e4   :  { %5951 = shalt.err (!%p5948_p7)
}
 0x3e5   :  { %s5958_s24 = smov 128   ;;  %s5959_s25 = smov 8  }
 0x3e6   :  { %3560 = dma.vmem_to_hbm [thread:$0]  %s3555_s15, 8064, %s7904_s3, [#allocation3], %s5958_s24, %s5958_s24, %s5959_s25  }
 0x3e7   :  { %5952 = dma.done.wait [#allocation3], 8064  }
 0x3e8   :  { %5953 = vsyncadd [#allocation3], 4294959232 }
 0x3e9   :  { %3564 = vsyncpa [#allocation3], 1 }

</bundles_post_ra>
